<compile_context>
chip_gen: v7x
topology: tpu7x:2x2x1
jax: 0.10.0
libtpu: 0.0.40
codegen_flags: <defaults>
</compile_context>

<pallas_src>
import functools

import jax
import jax.numpy as jnp
from jax.experimental import pallas as pl
from jax.experimental.pallas import tpu as pltpu

EPS = 1e-5                          # nn.BatchNorm2d default eps
MXU_DTYPE = jnp.bfloat16            # matmul operand dtype (f32 accumulate)
VMEM_LIMIT_BYTES = 48 * 1024 * 1024  # <= v7x 64 MiB physical; headroom on v5e/v6e


def _round_up(v, m):
    return -(-v // m) * m


def _pixel_tile(hw, max_tile=1024):
    """Largest pixel tile that is a multiple of 128 and divides hw (capped)."""
    if hw % 128 != 0:
        return hw
    t = min(max_tile, hw)
    t -= t % 128
    while hw % t != 0:
        t -= 128
    return t


def _boundary_masks(H, W):
    """(9, H*W) f32 validity masks for the 3x3 taps, tap order (ki*3 + kj)."""
    hw = H * W
    row = jnp.arange(hw, dtype=jnp.int32) // W
    col = jnp.arange(hw, dtype=jnp.int32) % W
    masks = []
    for di in (-1, 0, 1):
        for dj in (-1, 0, 1):
            valid = jnp.ones((hw,), jnp.bool_)
            if di == -1:
                valid = valid & (row >= 1)
            if di == 1:
                valid = valid & (row < H - 1)
            if dj == -1:
                valid = valid & (col >= 1)
            if dj == 1:
                valid = valid & (col < W - 1)
            masks.append(valid)
    return jnp.stack(masks, axis=0).astype(jnp.float32)


# --------------------------- kernel bodies ---------------------------------

def _bn_relu_conv1x1_kernel(x_ref, s_ref, b_ref, w_ref, y_ref, st_ref):
    """BN1(scale/shift) + ReLU + 1x1 conv + per-tile (sum, sumsq) of y.

    x_ref: (1, Cp, PT) f32   s_ref/b_ref: (Cp, 1) f32   w_ref: (C4, Cp) bf16
    y_ref: (1, C4, PT) f32   st_ref: (1, 1, C4, 2) f32
    """
    h = jnp.maximum(x_ref[0] * s_ref[...] + b_ref[...], 0.0)        # f32 VPU
    y = jnp.dot(w_ref[...], h.astype(w_ref.dtype),
                preferred_element_type=jnp.float32)                 # MXU
    y_ref[0] = y
    st_ref[0, 0] = jnp.concatenate(                                  # fused stats
        [jnp.sum(y, axis=-1, keepdims=True),
         jnp.sum(y * y, axis=-1, keepdims=True)], axis=-1)


def _bn_relu_conv3x3_kernel(y_ref, s_ref, b_ref, w_ref, m_ref, feat_ref,
                            o_ref, st_ref, *, W):
    """BN2 + ReLU + 3x3 conv (pad=1) per batch element.

    Per-tap matmul on UNshifted activations, then roll/mask only the narrow
    (G, HW) partial products and accumulate in f32 (no 9*C4*HW im2col).

    y_ref: (1, C4, HW) f32      s_ref/b_ref: (C4, 1) f32
    w_ref: (9, G, C4) bf16      m_ref: (9, HW) f32
    feat_ref: aliased HBM concat buffer (never read)
    o_ref: (1, G, HW) f32 slice of the concat buffer   st_ref: (1, G, 2) f32
    """
    del feat_ref  # only present to establish input/output aliasing
    G = w_ref.shape[1]
    HW = y_ref.shape[2]

    h = jnp.maximum(y_ref[0] * s_ref[...] + b_ref[...], 0.0)
    h = h.astype(w_ref.dtype)                                        # bf16 MXU operand

    acc = jnp.zeros((G, HW), jnp.float32)
    t = 0
    for di in (-1, 0, 1):
        for dj in (-1, 0, 1):
            part = jnp.dot(w_ref[t], h, preferred_element_type=jnp.float32)
            shift = di * W + dj
            if shift:
                part = jnp.roll(part, -shift, axis=1)                # XLU on (G,HW)
            if di != 0 or dj != 0:
                part = part * m_ref[pl.ds(t, 1), :]                  # precomputed mask
            acc = acc + part
            t += 1

    o_ref[0] = acc
    st_ref[0] = jnp.concatenate(                                     # fused stats
        [jnp.sum(acc, axis=-1, keepdims=True),
         jnp.sum(acc * acc, axis=-1, keepdims=True)], axis=-1)


# --------------------------- layer wrapper ----------------------------------

def _dense_layer(feat, run_sum, run_sumsq, masks, p, c_in, H, W):
    """One DenseLayer: reads channels [0, c_in) of feat, writes [c_in, c_in+G)."""
    N, C_total, HW = feat.shape
    C4 = p["w1"].shape[0]
    G = p["w2"].shape[0]
    assert G % 8 == 0, "growth_rate must be a multiple of 8 for the aliased slice write"
    assert c_in % G == 0, "num_channels must be a multiple of growth_rate"
    count = float(N * HW)

    # ---- BN1 scale/shift from running (sum, sumsq) stats -- no re-read of feat ----
    mean1 = run_sum[:c_in] / count
    var1 = jnp.maximum(run_sumsq[:c_in] / count - mean1 * mean1, 0.0)
    scale1 = p["gamma1"] * jax.lax.rsqrt(var1 + EPS)
    shift1 = p["beta1"] - mean1 * scale1

    # pad only to a sublane multiple (NOT to C_total): no zero-channel HBM traffic
    c_in_pad = min(_round_up(c_in, 8), C_total)
    scale1p = jnp.zeros((c_in_pad, 1), jnp.float32).at[:c_in, 0].set(scale1)
    shift1p = jnp.zeros((c_in_pad, 1), jnp.float32).at[:c_in, 0].set(shift1)
    w1p = jnp.zeros((C4, c_in_pad), MXU_DTYPE).at[:, :c_in].set(
        p["w1"].astype(MXU_DTYPE))

    # ---- fused BN1 + ReLU + 1x1 conv (+ y statistics) ----
    PT = _pixel_tile(HW)
    T = HW // PT
    y, ystats = pl.pallas_call(
        _bn_relu_conv1x1_kernel,
        out_shape=(jax.ShapeDtypeStruct((N, C4, HW), jnp.float32),
                   jax.ShapeDtypeStruct((N, T, C4, 2), jnp.float32)),
        grid=(N, T),
        in_specs=[
            pl.BlockSpec((1, c_in_pad, PT), lambda n, t: (n, 0, t)),
            pl.BlockSpec((c_in_pad, 1), lambda n, t: (0, 0)),
            pl.BlockSpec((c_in_pad, 1), lambda n, t: (0, 0)),
            pl.BlockSpec((C4, c_in_pad), lambda n, t: (0, 0)),
        ],
        out_specs=[
            pl.BlockSpec((1, C4, PT), lambda n, t: (n, 0, t)),
            pl.BlockSpec((1, 1, C4, 2), lambda n, t: (n, t, 0, 0)),
        ],
        compiler_params=pltpu.CompilerParams(
            dimension_semantics=("parallel", "parallel"),
            vmem_limit_bytes=VMEM_LIMIT_BYTES),
    )(feat, scale1p, shift1p, w1p)

    # ---- BN2 scale/shift from the fused y statistics ----
    ys = jnp.sum(ystats, axis=(0, 1))                    # (C4, 2)
    mean2 = ys[:, 0] / count
    var2 = jnp.maximum(ys[:, 1] / count - mean2 * mean2, 0.0)
    scale2 = (p["gamma2"] * jax.lax.rsqrt(var2 + EPS)).reshape(C4, 1)
    shift2 = p["beta2"].reshape(C4, 1) - mean2.reshape(C4, 1) * scale2
    # OIHW -> (9, G, C4), tap index t = (ki*3 + kj) matching the in-kernel loop
    w2taps = jnp.transpose(p["w2"], (2, 3, 0, 1)).reshape(9, G, C4).astype(MXU_DTYPE)

    # ---- fused BN2 + ReLU + 3x3 conv, written straight into the aliased
    #      concat buffer at channel offset c_in (no jnp.concatenate) ----
    co = c_in // G
    kernel2 = functools.partial(_bn_relu_conv3x3_kernel, W=W)
    feat, gstats = pl.pallas_call(
        kernel2,
        out_shape=(jax.ShapeDtypeStruct((N, C_total, HW), jnp.float32),
                   jax.ShapeDtypeStruct((N, G, 2), jnp.float32)),
        grid=(N,),
        in_specs=[
            pl.BlockSpec((1, C4, HW), lambda n: (n, 0, 0)),
            pl.BlockSpec((C4, 1), lambda n: (0, 0)),
            pl.BlockSpec((C4, 1), lambda n: (0, 0)),
            pl.BlockSpec((9, G, C4), lambda n: (0, 0, 0)),
            pl.BlockSpec((9, HW), lambda n: (0, 0)),
            pl.BlockSpec(memory_space=pl.ANY),          # aliased buffer, never read
        ],
        out_specs=[
            pl.BlockSpec((1, G, HW), lambda n: (n, co, 0)),   # aliased slice write
            pl.BlockSpec((1, G, 2), lambda n: (n, 0, 0)),
        ],
        input_output_aliases={5: 0},
        compiler_params=pltpu.CompilerParams(
            dimension_semantics=("parallel",),
            vmem_limit_bytes=VMEM_LIMIT_BYTES),
    )(y, scale2, shift2, w2taps, masks, feat)

    # ---- incremental running stats for later layers' BN1 ----
    gsum = jnp.sum(gstats, axis=0)                        # (G, 2)
    run_sum = run_sum.at[c_in:c_in + G].set(gsum[:, 0])
    run_sumsq = run_sumsq.at[c_in:c_in + G].set(gsum[:, 1])
    return feat, run_sum, run_sumsq


@jax.jit
def dense_block(x_nchw, params):
    """DenseBlock forward: input/output in NCHW (PyTorch layout)."""
    N, C0, H, W = x_nchw.shape
    G = params[0]["w2"].shape[0]
    depth = len(params)
    C_total = C0 + depth * G
    HW = H * W

    # preallocated concat buffer (channel-major, pixels on the lane axis)
    x_flat = x_nchw.reshape(N, C0, HW).astype(jnp.float32)
    feat = jnp.concatenate(
        [x_flat, jnp.zeros((N, C_total - C0, HW), jnp.float32)], axis=1)

    # running per-channel (sum, sumsq), seeded from the input channels
    run_sum = jnp.zeros((C_total,), jnp.float32).at[:C0].set(
        jnp.sum(x_flat, axis=(0, 2)))
    run_sumsq = jnp.zeros((C_total,), jnp.float32).at[:C0].set(
        jnp.sum(x_flat * x_flat, axis=(0, 2)))

    masks = _boundary_masks(H, W)

    c_in = C0
    for p in params:
        feat, run_sum, run_sumsq = _dense_layer(
            feat, run_sum, run_sumsq, masks, p, c_in, H, W)
        c_in += p["w2"].shape[0]
    return feat.reshape(N, C_total, H, W)


# --------------------------- parameters & reference -------------------------

def init_params(key, num_channels, growth, depth):
    """Deterministic synthetic parameters (PyTorch weight layouts: OI / OIHW)."""
    params = []
    c = num_channels
    c4 = 4 * growth
    for _ in range(depth):
        key, k1, k2, k3, k4, k5, k6 = jax.random.split(key, 7)
        params.append(dict(
            gamma1=jax.random.uniform(k1, (c,), jnp.float32, 0.5, 1.5),
            beta1=0.1 * jax.random.normal(k2, (c,), jnp.float32),
            w1=jax.random.normal(k3, (c4, c), jnp.float32) / jnp.sqrt(c),
            gamma2=jax.random.uniform(k4, (c4,), jnp.float32, 0.5, 1.5),
            beta2=0.1 * jax.random.normal(k5, (c4,), jnp.float32),
            w2=jax.random.normal(k6, (growth, c4, 3, 3), jnp.float32)
               / jnp.sqrt(9 * c4),
        ))
        c += growth
    return params


def _dense_layer_ref(x, p):
    """Pure-JAX reference (f32, NCHW), matching the PyTorch module in training mode."""
    def bn_relu(h, gamma, beta):
        mean = jnp.mean(h, axis=(0, 2, 3), keepdims=True)
        var = jnp.var(h, axis=(0, 2, 3), keepdims=True)
        g = gamma.reshape(1, -1, 1, 1)
        b = beta.reshape(1, -1, 1, 1)
        return jnp.maximum((h - mean) * jax.lax.rsqrt(var + EPS) * g + b, 0.0)

    h = bn_relu(x, p["gamma1"], p["beta1"])
    y = jnp.einsum("nchw,oc->nohw", h, p["w1"])
    h2 = bn_relu(y, p["gamma2"], p["beta2"])
    out = jax.lax.conv_general_dilated(
        h2, p["w2"], window_strides=(1, 1), padding="SAME",
        dimension_numbers=("NCHW", "OIHW", "NCHW"))
    return jnp.concatenate([x, out], axis=1)


if __name__ == "__main__":
    key = jax.random.PRNGKey(0)
    kx, kp = jax.random.split(key)

    # small synthetic config (module defaults growth=12, depth=100 are huge)
    N, C0, H, W = 2, 8, 16, 16
    growth, depth = 8, 4

    x = jax.random.normal(kx, (N, C0, H, W), jnp.float32)
    params = init_params(kp, C0, growth, depth)

    out = jax.block_until_ready(dense_block(x, params))

    ref = x
    for p in params:
        ref = _dense_layer_ref(ref, p)

    assert out.shape == (N, C0 + depth * growth, H, W)
    err = float(jnp.max(jnp.abs(out - ref)))
    # bf16 MXU operands (f32 accumulation) across 4 stacked layers -> loose tol
    assert jnp.allclose(out, ref, rtol=5e-2, atol=5e-2), err
    print("KERNEL_OK")
</pallas_src>

<mosaic_0001>
module attributes {stable_mosaic.version = 11 : i64} {
  func.func @_bn_relu_conv1x1_kernel(%arg0: i32, %arg1: i32, %arg2: memref<1x8x256xf32, #tpu.memory_space<vmem>>, %arg3: memref<8x1xf32, #tpu.memory_space<vmem>>, %arg4: memref<8x1xf32, #tpu.memory_space<vmem>>, %arg5: memref<32x8xbf16, #tpu.memory_space<vmem>>, %arg6: memref<1x32x256xf32, #tpu.memory_space<vmem>>, %arg7: memref<1x1x32x2xf32, #tpu.memory_space<vmem>>) attributes {dimension_semantics = [#tpu.dimension_semantics<parallel>, #tpu.dimension_semantics<parallel>], iteration_bounds = array<i64: 2, 1>, scalar_prefetch = 0 : i64, scratch_operands = 0 : i64, tpu.core_type = #tpu.core_type<tc>, window_params = [{transform_indices = @transform_0, window_bounds = array<i64: 1, 8, 256>}, {pipeline_mode = #tpu.pipeline_mode<synchronous>, transform_indices = @transform_1, window_bounds = array<i64: 8, 1>}, {pipeline_mode = #tpu.pipeline_mode<synchronous>, transform_indices = @transform_2, window_bounds = array<i64: 8, 1>}, {pipeline_mode = #tpu.pipeline_mode<synchronous>, transform_indices = @transform_3, window_bounds = array<i64: 32, 8>}, {transform_indices = @transform_4, window_bounds = array<i64: 1, 32, 256>}, {transform_indices = @transform_5, window_bounds = array<i64: 1, 1, 32, 2>}]} {
    %c0 = arith.constant 0 : index
    %c0_0 = arith.constant 0 : index
    %c0_1 = arith.constant 0 : index
    %0 = vector.load %arg2[%c0, %c0_0, %c0_1] : memref<1x8x256xf32, #tpu.memory_space<vmem>>, vector<1x8x256xf32>
    %1 = vector.shape_cast %0 : vector<1x8x256xf32> to vector<8x256xf32>
    %c0_2 = arith.constant 0 : index
    %c0_3 = arith.constant 0 : index
    %2 = vector.load %arg3[%c0_2, %c0_3] : memref<8x1xf32, #tpu.memory_space<vmem>>, vector<8x1xf32>
    %3 = vector.broadcast %2 : vector<8x1xf32> to vector<8x256xf32>
    %4 = arith.mulf %1, %3 : vector<8x256xf32>
    %c0_4 = arith.constant 0 : index
    %c0_5 = arith.constant 0 : index
    %5 = vector.load %arg4[%c0_4, %c0_5] : memref<8x1xf32, #tpu.memory_space<vmem>>, vector<8x1xf32>
    %6 = vector.broadcast %5 : vector<8x1xf32> to vector<8x256xf32>
    %7 = arith.addf %4, %6 : vector<8x256xf32>
    %cst = arith.constant 0.000000e+00 : f32
    %8 = vector.broadcast %cst : f32 to vector<8x256xf32>
    %9 = arith.maximumf %7, %8 : vector<8x256xf32>
    %c0_6 = arith.constant 0 : index
    %c0_7 = arith.constant 0 : index
    %10 = vector.load %arg5[%c0_6, %c0_7] : memref<32x8xbf16, #tpu.memory_space<vmem>>, vector<32x8xbf16>
    %11 = arith.truncf %9 : vector<8x256xf32> to vector<8x256xbf16>
    %cst_8 = arith.constant dense<0.000000e+00> : vector<32x256xf32>
    %12 = tpu.matmul %10, %11, %cst_8 {dimension_numbers = #tpu.dot_dimension_numbers<[1], [0], [0], [1], [0, 0, 1, 1], [], []>} : vector<32x8xbf16>, vector<8x256xbf16>, vector<32x256xf32> -> vector<32x256xf32>
    %c0_9 = arith.constant 0 : index
    %c0_10 = arith.constant 0 : index
    %c0_11 = arith.constant 0 : index
    %13 = vector.load %arg6[%c0_9, %c0_10, %c0_11] : memref<1x32x256xf32, #tpu.memory_space<vmem>>, vector<1x32x256xf32>
    %14 = vector.shape_cast %13 : vector<1x32x256xf32> to vector<32x256xf32>
    %15 = vector.shape_cast %12 : vector<32x256xf32> to vector<1x32x256xf32>
    tpu.vector_store %arg6[%c0_9, %c0_10, %c0_11], %15 {strides = array<i32>} : memref<1x32x256xf32, #tpu.memory_space<vmem>>, vector<1x32x256xf32>,
    %cst_12 = arith.constant dense<0.000000e+00> : vector<32xf32>
    %16 = vector.multi_reduction <add>, %12, %cst_12 [1] : vector<32x256xf32> to vector<32xf32>
    %17 = vector.shape_cast %16 : vector<32xf32> to vector<32x1xf32>
    %18 = arith.mulf %12, %12 : vector<32x256xf32>
    %cst_13 = arith.constant dense<0.000000e+00> : vector<32xf32>
    %19 = vector.multi_reduction <add>, %18, %cst_13 [1] : vector<32x256xf32> to vector<32xf32>
    %20 = vector.shape_cast %19 : vector<32xf32> to vector<32x1xf32>
    %21 = tpu.concatenate %17, %20 in 1 : vector<32x1xf32>, vector<32x1xf32> -> vector<32x2xf32>
    %c0_14 = arith.constant 0 : index
    %c0_15 = arith.constant 0 : index
    %c0_16 = arith.constant 0 : index
    %c0_17 = arith.constant 0 : index
    %22 = vector.load %arg7[%c0_14, %c0_15, %c0_16, %c0_17] : memref<1x1x32x2xf32, #tpu.memory_space<vmem>>, vector<1x1x32x2xf32>
    %23 = vector.shape_cast %22 : vector<1x1x32x2xf32> to vector<32x2xf32>
    %24 = vector.shape_cast %21 : vector<32x2xf32> to vector<1x1x32x2xf32>
    tpu.vector_store %arg7[%c0_14, %c0_15, %c0_16, %c0_17], %24 {strides = array<i32>} : memref<1x1x32x2xf32, #tpu.memory_space<vmem>>, vector<1x1x32x2xf32>,
    return
  }
  func.func @transform_0(%arg0: i32, %arg1: i32) -> (i32, i32, i32) {
    %c0_i32 = arith.constant 0 : i32
    %c0_i32_0 = arith.constant 0 : i32
    return %arg0, %c0_i32, %arg1 : i32, i32, i32
  }
  func.func @transform_1(%arg0: i32, %arg1: i32) -> (i32, i32) {
    %c0_i32 = arith.constant 0 : i32
    %c0_i32_0 = arith.constant 0 : i32
    %c0_i32_1 = arith.constant 0 : i32
    return %c0_i32, %c0_i32_0 : i32, i32
  }
  func.func @transform_2(%arg0: i32, %arg1: i32) -> (i32, i32) {
    %c0_i32 = arith.constant 0 : i32
    %c0_i32_0 = arith.constant 0 : i32
    %c0_i32_1 = arith.constant 0 : i32
    return %c0_i32, %c0_i32_0 : i32, i32
  }
  func.func @transform_3(%arg0: i32, %arg1: i32) -> (i32, i32) {
    %c0_i32 = arith.constant 0 : i32
    %c0_i32_0 = arith.constant 0 : i32
    %c0_i32_1 = arith.constant 0 : i32
    return %c0_i32, %c0_i32_0 : i32, i32
  }
  func.func @transform_4(%arg0: i32, %arg1: i32) -> (i32, i32, i32) {
    %c0_i32 = arith.constant 0 : i32
    %c0_i32_0 = arith.constant 0 : i32
    return %arg0, %c0_i32, %arg1 : i32, i32, i32
  }
  func.func @transform_5(%arg0: i32, %arg1: i32) -> (i32, i32, i32, i32) {
    %c0_i32 = arith.constant 0 : i32
    %c0_i32_0 = arith.constant 0 : i32
    %c0_i32_1 = arith.constant 0 : i32
    return %arg0, %arg1, %c0_i32, %c0_i32_0 : i32, i32, i32, i32
  }
}

module attributes {stable_mosaic.version = 11 : i64} {
  func.func @_bn_relu_conv3x3_kernel(%arg0: i32, %arg1: memref<1x32x256xf32, #tpu.memory_space<vmem>>, %arg2: memref<32x1xf32, #tpu.memory_space<vmem>>, %arg3: memref<32x1xf32, #tpu.memory_space<vmem>>, %arg4: memref<9x8x32xbf16, #tpu.memory_space<vmem>>, %arg5: memref<9x256xf32, #tpu.memory_space<vmem>>, %arg6: memref<2x40x256xf32, #tpu.memory_space<any>>, %arg7: memref<1x8x256xf32, #tpu.memory_space<vmem>>, %arg8: memref<1x8x2xf32, #tpu.memory_space<vmem>>) attributes {dimension_semantics = [#tpu.dimension_semantics<parallel>], iteration_bounds = array<i64: 2>, scalar_prefetch = 0 : i64, scratch_operands = 0 : i64, tpu.core_type = #tpu.core_type<tc>, window_params = [{transform_indices = @transform_0, window_bounds = array<i64: 1, 32, 256>}, {pipeline_mode = #tpu.pipeline_mode<synchronous>, transform_indices = @transform_1, window_bounds = array<i64: 32, 1>}, {pipeline_mode = #tpu.pipeline_mode<synchronous>, transform_indices = @transform_2, window_bounds = array<i64: 32, 1>}, {pipeline_mode = #tpu.pipeline_mode<synchronous>, transform_indices = @transform_3, window_bounds = array<i64: 9, 8, 32>}, {pipeline_mode = #tpu.pipeline_mode<synchronous>, transform_indices = @transform_4, window_bounds = array<i64: 9, 256>}, {}, {transform_indices = @transform_6, window_bounds = array<i64: 1, 8, 256>}, {transform_indices = @transform_7, window_bounds = array<i64: 1, 8, 2>}]} {
    %c0 = arith.constant 0 : index
    %c0_0 = arith.constant 0 : index
    %c0_1 = arith.constant 0 : index
    %0 = vector.load %arg1[%c0, %c0_0, %c0_1] : memref<1x32x256xf32, #tpu.memory_space<vmem>>, vector<1x32x256xf32>
    %1 = vector.shape_cast %0 : vector<1x32x256xf32> to vector<32x256xf32>
    %c0_2 = arith.constant 0 : index
    %c0_3 = arith.constant 0 : index
    %2 = vector.load %arg2[%c0_2, %c0_3] : memref<32x1xf32, #tpu.memory_space<vmem>>, vector<32x1xf32>
    %3 = vector.broadcast %2 : vector<32x1xf32> to vector<32x256xf32>
    %4 = arith.mulf %1, %3 : vector<32x256xf32>
    %c0_4 = arith.constant 0 : index
    %c0_5 = arith.constant 0 : index
    %5 = vector.load %arg3[%c0_4, %c0_5] : memref<32x1xf32, #tpu.memory_space<vmem>>, vector<32x1xf32>
    %6 = vector.broadcast %5 : vector<32x1xf32> to vector<32x256xf32>
    %7 = arith.addf %4, %6 : vector<32x256xf32>
    %cst = arith.constant 0.000000e+00 : f32
    %8 = vector.broadcast %cst : f32 to vector<32x256xf32>
    %9 = arith.maximumf %7, %8 : vector<32x256xf32>
    %10 = arith.truncf %9 : vector<32x256xf32> to vector<32x256xbf16>
    %cst_6 = arith.constant 0.000000e+00 : f32
    %11 = vector.broadcast %cst_6 : f32 to vector<8x256xf32>
    %c0_7 = arith.constant 0 : index
    %c0_8 = arith.constant 0 : index
    %c0_9 = arith.constant 0 : index
    %12 = vector.load %arg4[%c0_7, %c0_8, %c0_9] : memref<9x8x32xbf16, #tpu.memory_space<vmem>>, vector<1x8x32xbf16>
    %13 = vector.shape_cast %12 : vector<1x8x32xbf16> to vector<8x32xbf16>
    %cst_10 = arith.constant dense<0.000000e+00> : vector<8x256xf32>
    %14 = tpu.matmul %13, %10, %cst_10 {dimension_numbers = #tpu.dot_dimension_numbers<[1], [0], [0], [1], [0, 0, 1, 1], [], []>} : vector<8x32xbf16>, vector<32x256xbf16>, vector<8x256xf32> -> vector<8x256xf32>
    %15 = vector.extract_strided_slice %14 {offsets = [0, 239], sizes = [8, 17], strides = [1, 1]} : vector<8x256xf32> to vector<8x17xf32>
    %16 = vector.extract_strided_slice %14 {offsets = [0, 0], sizes = [8, 239], strides = [1, 1]} : vector<8x256xf32> to vector<8x239xf32>
    %17 = tpu.concatenate %15, %16 in 1 : vector<8x17xf32>, vector<8x239xf32> -> vector<8x256xf32>
    %c0_11 = arith.constant 0 : index
    %c0_12 = arith.constant 0 : index
    %18 = vector.load %arg5[%c0_11, %c0_12] : memref<9x256xf32, #tpu.memory_space<vmem>>, vector<1x256xf32>
    %19 = vector.broadcast %18 : vector<1x256xf32> to vector<8x256xf32>
    %20 = arith.mulf %17, %19 : vector<8x256xf32>
    %21 = arith.addf %11, %20 : vector<8x256xf32>
    %c1 = arith.constant 1 : index
    %c0_13 = arith.constant 0 : index
    %c0_14 = arith.constant 0 : index
    %22 = vector.load %arg4[%c1, %c0_13, %c0_14] : memref<9x8x32xbf16, #tpu.memory_space<vmem>>, vector<1x8x32xbf16>
    %23 = vector.shape_cast %22 : vector<1x8x32xbf16> to vector<8x32xbf16>
    %cst_15 = arith.constant dense<0.000000e+00> : vector<8x256xf32>
    %24 = tpu.matmul %23, %10, %cst_15 {dimension_numbers = #tpu.dot_dimension_numbers<[1], [0], [0], [1], [0, 0, 1, 1], [], []>} : vector<8x32xbf16>, vector<32x256xbf16>, vector<8x256xf32> -> vector<8x256xf32>
    %25 = vector.extract_strided_slice %24 {offsets = [0, 240], sizes = [8, 16], strides = [1, 1]} : vector<8x256xf32> to vector<8x16xf32>
    %26 = vector.extract_strided_slice %24 {offsets = [0, 0], sizes = [8, 240], strides = [1, 1]} : vector<8x256xf32> to vector<8x240xf32>
    %27 = tpu.concatenate %25, %26 in 1 : vector<8x16xf32>, vector<8x240xf32> -> vector<8x256xf32>
    %c1_16 = arith.constant 1 : index
    %c0_17 = arith.constant 0 : index
    %28 = vector.load %arg5[%c1_16, %c0_17] : memref<9x256xf32, #tpu.memory_space<vmem>>, vector<1x256xf32>
    %29 = vector.broadcast %28 : vector<1x256xf32> to vector<8x256xf32>
    %30 = arith.mulf %27, %29 : vector<8x256xf32>
    %31 = arith.addf %21, %30 : vector<8x256xf32>
    %c2 = arith.constant 2 : index
    %c0_18 = arith.constant 0 : index
    %c0_19 = arith.constant 0 : index
    %32 = vector.load %arg4[%c2, %c0_18, %c0_19] : memref<9x8x32xbf16, #tpu.memory_space<vmem>>, vector<1x8x32xbf16>
    %33 = vector.shape_cast %32 : vector<1x8x32xbf16> to vector<8x32xbf16>
    %cst_20 = arith.constant dense<0.000000e+00> : vector<8x256xf32>
    %34 = tpu.matmul %33, %10, %cst_20 {dimension_numbers = #tpu.dot_dimension_numbers<[1], [0], [0], [1], [0, 0, 1, 1], [], []>} : vector<8x32xbf16>, vector<32x256xbf16>, vector<8x256xf32> -> vector<8x256xf32>
    %35 = vector.extract_strided_slice %34 {offsets = [0, 241], sizes = [8, 15], strides = [1, 1]} : vector<8x256xf32> to vector<8x15xf32>
    %36 = vector.extract_strided_slice %34 {offsets = [0, 0], sizes = [8, 241], strides = [1, 1]} : vector<8x256xf32> to vector<8x241xf32>
    %37 = tpu.concatenate %35, %36 in 1 : vector<8x15xf32>, vector<8x241xf32> -> vector<8x256xf32>
    %c2_21 = arith.constant 2 : index
    %c0_22 = arith.constant 0 : index
    %38 = vector.load %arg5[%c2_21, %c0_22] : memref<9x256xf32, #tpu.memory_space<vmem>>, vector<1x256xf32>
    %39 = vector.broadcast %38 : vector<1x256xf32> to vector<8x256xf32>
    %40 = arith.mulf %37, %39 : vector<8x256xf32>
    %41 = arith.addf %31, %40 : vector<8x256xf32>
    %c3 = arith.constant 3 : index
    %c0_23 = arith.constant 0 : index
    %c0_24 = arith.constant 0 : index
    %42 = vector.load %arg4[%c3, %c0_23, %c0_24] : memref<9x8x32xbf16, #tpu.memory_space<vmem>>, vector<1x8x32xbf16>
    %43 = vector.shape_cast %42 : vector<1x8x32xbf16> to vector<8x32xbf16>
    %cst_25 = arith.constant dense<0.000000e+00> : vector<8x256xf32>
    %44 = tpu.matmul %43, %10, %cst_25 {dimension_numbers = #tpu.dot_dimension_numbers<[1], [0], [0], [1], [0, 0, 1, 1], [], []>} : vector<8x32xbf16>, vector<32x256xbf16>, vector<8x256xf32> -> vector<8x256xf32>
    %45 = vector.extract_strided_slice %44 {offsets = [0, 255], sizes = [8, 1], strides = [1, 1]} : vector<8x256xf32> to vector<8x1xf32>
    %46 = vector.extract_strided_slice %44 {offsets = [0, 0], sizes = [8, 255], strides = [1, 1]} : vector<8x256xf32> to vector<8x255xf32>
    %47 = tpu.concatenate %45, %46 in 1 : vector<8x1xf32>, vector<8x255xf32> -> vector<8x256xf32>
    %c3_26 = arith.constant 3 : index
    %c0_27 = arith.constant 0 : index
    %48 = vector.load %arg5[%c3_26, %c0_27] : memref<9x256xf32, #tpu.memory_space<vmem>>, vector<1x256xf32>
    %49 = vector.broadcast %48 : vector<1x256xf32> to vector<8x256xf32>
    %50 = arith.mulf %47, %49 : vector<8x256xf32>
    %51 = arith.addf %41, %50 : vector<8x256xf32>
    %c4 = arith.constant 4 : index
    %c0_28 = arith.constant 0 : index
    %c0_29 = arith.constant 0 : index
    %52 = vector.load %arg4[%c4, %c0_28, %c0_29] : memref<9x8x32xbf16, #tpu.memory_space<vmem>>, vector<1x8x32xbf16>
    %53 = vector.shape_cast %52 : vector<1x8x32xbf16> to vector<8x32xbf16>
    %cst_30 = arith.constant dense<0.000000e+00> : vector<8x256xf32>
    %54 = tpu.matmul %53, %10, %cst_30 {dimension_numbers = #tpu.dot_dimension_numbers<[1], [0], [0], [1], [0, 0, 1, 1], [], []>} : vector<8x32xbf16>, vector<32x256xbf16>, vector<8x256xf32> -> vector<8x256xf32>
    %55 = arith.addf %51, %54 : vector<8x256xf32>
    %c5 = arith.constant 5 : index
    %c0_31 = arith.constant 0 : index
    %c0_32 = arith.constant 0 : index
    %56 = vector.load %arg4[%c5, %c0_31, %c0_32] : memref<9x8x32xbf16, #tpu.memory_space<vmem>>, vector<1x8x32xbf16>
    %57 = vector.shape_cast %56 : vector<1x8x32xbf16> to vector<8x32xbf16>
    %cst_33 = arith.constant dense<0.000000e+00> : vector<8x256xf32>
    %58 = tpu.matmul %57, %10, %cst_33 {dimension_numbers = #tpu.dot_dimension_numbers<[1], [0], [0], [1], [0, 0, 1, 1], [], []>} : vector<8x32xbf16>, vector<32x256xbf16>, vector<8x256xf32> -> vector<8x256xf32>
    %59 = vector.extract_strided_slice %58 {offsets = [0, 1], sizes = [8, 255], strides = [1, 1]} : vector<8x256xf32> to vector<8x255xf32>
    %60 = vector.extract_strided_slice %58 {offsets = [0, 0], sizes = [8, 1], strides = [1, 1]} : vector<8x256xf32> to vector<8x1xf32>
    %61 = tpu.concatenate %59, %60 in 1 : vector<8x255xf32>, vector<8x1xf32> -> vector<8x256xf32>
    %c5_34 = arith.constant 5 : index
    %c0_35 = arith.constant 0 : index
    %62 = vector.load %arg5[%c5_34, %c0_35] : memref<9x256xf32, #tpu.memory_space<vmem>>, vector<1x256xf32>
    %63 = vector.broadcast %62 : vector<1x256xf32> to vector<8x256xf32>
    %64 = arith.mulf %61, %63 : vector<8x256xf32>
    %65 = arith.addf %55, %64 : vector<8x256xf32>
    %c6 = arith.constant 6 : index
    %c0_36 = arith.constant 0 : index
    %c0_37 = arith.constant 0 : index
    %66 = vector.load %arg4[%c6, %c0_36, %c0_37] : memref<9x8x32xbf16, #tpu.memory_space<vmem>>, vector<1x8x32xbf16>
    %67 = vector.shape_cast %66 : vector<1x8x32xbf16> to vector<8x32xbf16>
    %cst_38 = arith.constant dense<0.000000e+00> : vector<8x256xf32>
    %68 = tpu.matmul %67, %10, %cst_38 {dimension_numbers = #tpu.dot_dimension_numbers<[1], [0], [0], [1], [0, 0, 1, 1], [], []>} : vector<8x32xbf16>, vector<32x256xbf16>, vector<8x256xf32> -> vector<8x256xf32>
    %69 = vector.extract_strided_slice %68 {offsets = [0, 15], sizes = [8, 241], strides = [1, 1]} : vector<8x256xf32> to vector<8x241xf32>
    %70 = vector.extract_strided_slice %68 {offsets = [0, 0], sizes = [8, 15], strides = [1, 1]} : vector<8x256xf32> to vector<8x15xf32>
    %71 = tpu.concatenate %69, %70 in 1 : vector<8x241xf32>, vector<8x15xf32> -> vector<8x256xf32>
    %c6_39 = arith.constant 6 : index
    %c0_40 = arith.constant 0 : index
    %72 = vector.load %arg5[%c6_39, %c0_40] : memref<9x256xf32, #tpu.memory_space<vmem>>, vector<1x256xf32>
    %73 = vector.broadcast %72 : vector<1x256xf32> to vector<8x256xf32>
    %74 = arith.mulf %71, %73 : vector<8x256xf32>
    %75 = arith.addf %65, %74 : vector<8x256xf32>
    %c7 = arith.constant 7 : index
    %c0_41 = arith.constant 0 : index
    %c0_42 = arith.constant 0 : index
    %76 = vector.load %arg4[%c7, %c0_41, %c0_42] : memref<9x8x32xbf16, #tpu.memory_space<vmem>>, vector<1x8x32xbf16>
    %77 = vector.shape_cast %76 : vector<1x8x32xbf16> to vector<8x32xbf16>
    %cst_43 = arith.constant dense<0.000000e+00> : vector<8x256xf32>
    %78 = tpu.matmul %77, %10, %cst_43 {dimension_numbers = #tpu.dot_dimension_numbers<[1], [0], [0], [1], [0, 0, 1, 1], [], []>} : vector<8x32xbf16>, vector<32x256xbf16>, vector<8x256xf32> -> vector<8x256xf32>
    %79 = vector.extract_strided_slice %78 {offsets = [0, 16], sizes = [8, 240], strides = [1, 1]} : vector<8x256xf32> to vector<8x240xf32>
    %80 = vector.extract_strided_slice %78 {offsets = [0, 0], sizes = [8, 16], strides = [1, 1]} : vector<8x256xf32> to vector<8x16xf32>
    %81 = tpu.concatenate %79, %80 in 1 : vector<8x240xf32>, vector<8x16xf32> -> vector<8x256xf32>
    %c7_44 = arith.constant 7 : index
    %c0_45 = arith.constant 0 : index
    %82 = vector.load %arg5[%c7_44, %c0_45] : memref<9x256xf32, #tpu.memory_space<vmem>>, vector<1x256xf32>
    %83 = vector.broadcast %82 : vector<1x256xf32> to vector<8x256xf32>
    %84 = arith.mulf %81, %83 : vector<8x256xf32>
    %85 = arith.addf %75, %84 : vector<8x256xf32>
    %c8 = arith.constant 8 : index
    %c0_46 = arith.constant 0 : index
    %c0_47 = arith.constant 0 : index
    %86 = vector.load %arg4[%c8, %c0_46, %c0_47] : memref<9x8x32xbf16, #tpu.memory_space<vmem>>, vector<1x8x32xbf16>
    %87 = vector.shape_cast %86 : vector<1x8x32xbf16> to vector<8x32xbf16>
    %cst_48 = arith.constant dense<0.000000e+00> : vector<8x256xf32>
    %88 = tpu.matmul %87, %10, %cst_48 {dimension_numbers = #tpu.dot_dimension_numbers<[1], [0], [0], [1], [0, 0, 1, 1], [], []>} : vector<8x32xbf16>, vector<32x256xbf16>, vector<8x256xf32> -> vector<8x256xf32>
    %89 = vector.extract_strided_slice %88 {offsets = [0, 17], sizes = [8, 239], strides = [1, 1]} : vector<8x256xf32> to vector<8x239xf32>
    %90 = vector.extract_strided_slice %88 {offsets = [0, 0], sizes = [8, 17], strides = [1, 1]} : vector<8x256xf32> to vector<8x17xf32>
    %91 = tpu.concatenate %89, %90 in 1 : vector<8x239xf32>, vector<8x17xf32> -> vector<8x256xf32>
    %c8_49 = arith.constant 8 : index
    %c0_50 = arith.constant 0 : index
    %92 = vector.load %arg5[%c8_49, %c0_50] : memref<9x256xf32, #tpu.memory_space<vmem>>, vector<1x256xf32>
    %93 = vector.broadcast %92 : vector<1x256xf32> to vector<8x256xf32>
    %94 = arith.mulf %91, %93 : vector<8x256xf32>
    %95 = arith.addf %85, %94 : vector<8x256xf32>
    %c0_51 = arith.constant 0 : index
    %c0_52 = arith.constant 0 : index
    %c0_53 = arith.constant 0 : index
    %96 = vector.load %arg7[%c0_51, %c0_52, %c0_53] : memref<1x8x256xf32, #tpu.memory_space<vmem>>, vector<1x8x256xf32>
    %97 = vector.shape_cast %96 : vector<1x8x256xf32> to vector<8x256xf32>
    %98 = vector.shape_cast %95 : vector<8x256xf32> to vector<1x8x256xf32>
    tpu.vector_store %arg7[%c0_51, %c0_52, %c0_53], %98 {strides = array<i32>} : memref<1x8x256xf32, #tpu.memory_space<vmem>>, vector<1x8x256xf32>,
    %cst_54 = arith.constant dense<0.000000e+00> : vector<8xf32>
    %99 = vector.multi_reduction <add>, %95, %cst_54 [1] : vector<8x256xf32> to vector<8xf32>
    %100 = vector.shape_cast %99 : vector<8xf32> to vector<8x1xf32>
    %101 = arith.mulf %95, %95 : vector<8x256xf32>
    %cst_55 = arith.constant dense<0.000000e+00> : vector<8xf32>
    %102 = vector.multi_reduction <add>, %101, %cst_55 [1] : vector<8x256xf32> to vector<8xf32>
    %103 = vector.shape_cast %102 : vector<8xf32> to vector<8x1xf32>
    %104 = tpu.concatenate %100, %103 in 1 : vector<8x1xf32>, vector<8x1xf32> -> vector<8x2xf32>
    %c0_56 = arith.constant 0 : index
    %c0_57 = arith.constant 0 : index
    %c0_58 = arith.constant 0 : index
    %105 = vector.load %arg8[%c0_56, %c0_57, %c0_58] : memref<1x8x2xf32, #tpu.memory_space<vmem>>, vector<1x8x2xf32>
    %106 = vector.shape_cast %105 : vector<1x8x2xf32> to vector<8x2xf32>
    %107 = vector.shape_cast %104 : vector<8x2xf32> to vector<1x8x2xf32>
    tpu.vector_store %arg8[%c0_56, %c0_57, %c0_58], %107 {strides = array<i32>} : memref<1x8x2xf32, #tpu.memory_space<vmem>>, vector<1x8x2xf32>,
    return
  }
  func.func @transform_0(%arg0: i32) -> (i32, i32, i32) {
    %c0_i32 = arith.constant 0 : i32
    %c0_i32_0 = arith.constant 0 : i32
    %c0_i32_1 = arith.constant 0 : i32
    return %arg0, %c0_i32, %c0_i32_0 : i32, i32, i32
  }
  func.func @transform_1(%arg0: i32) -> (i32, i32) {
    %c0_i32 = arith.constant 0 : i32
    %c0_i32_0 = arith.constant 0 : i32
    %c0_i32_1 = arith.constant 0 : i32
    return %c0_i32, %c0_i32_0 : i32, i32
  }
  func.func @transform_2(%arg0: i32) -> (i32, i32) {
    %c0_i32 = arith.constant 0 : i32
    %c0_i32_0 = arith.constant 0 : i32
    %c0_i32_1 = arith.constant 0 : i32
    return %c0_i32, %c0_i32_0 : i32, i32
  }
  func.func @transform_3(%arg0: i32) -> (i32, i32, i32) {
    %c0_i32 = arith.constant 0 : i32
    %c0_i32_0 = arith.constant 0 : i32
    %c0_i32_1 = arith.constant 0 : i32
    %c0_i32_2 = arith.constant 0 : i32
    return %c0_i32, %c0_i32_0, %c0_i32_1 : i32, i32, i32
  }
  func.func @transform_4(%arg0: i32) -> (i32, i32) {
    %c0_i32 = arith.constant 0 : i32
    %c0_i32_0 = arith.constant 0 : i32
    %c0_i32_1 = arith.constant 0 : i32
    return %c0_i32, %c0_i32_0 : i32, i32
  }
  func.func @transform_6(%arg0: i32) -> (i32, i32, i32) {
    %c1_i32 = arith.constant 1 : i32
    %c0_i32 = arith.constant 0 : i32
    %c0_i32_0 = arith.constant 0 : i32
    return %arg0, %c1_i32, %c0_i32 : i32, i32, i32
  }
  func.func @transform_7(%arg0: i32) -> (i32, i32, i32) {
    %c0_i32 = arith.constant 0 : i32
    %c0_i32_0 = arith.constant 0 : i32
    %c0_i32_1 = arith.constant 0 : i32
    return %arg0, %c0_i32, %c0_i32_0 : i32, i32, i32
  }
}

module attributes {stable_mosaic.version = 11 : i64} {
  func.func @_bn_relu_conv1x1_kernel(%arg0: i32, %arg1: i32, %arg2: memref<1x16x256xf32, #tpu.memory_space<vmem>>, %arg3: memref<16x1xf32, #tpu.memory_space<vmem>>, %arg4: memref<16x1xf32, #tpu.memory_space<vmem>>, %arg5: memref<32x16xbf16, #tpu.memory_space<vmem>>, %arg6: memref<1x32x256xf32, #tpu.memory_space<vmem>>, %arg7: memref<1x1x32x2xf32, #tpu.memory_space<vmem>>) attributes {dimension_semantics = [#tpu.dimension_semantics<parallel>, #tpu.dimension_semantics<parallel>], iteration_bounds = array<i64: 2, 1>, scalar_prefetch = 0 : i64, scratch_operands = 0 : i64, tpu.core_type = #tpu.core_type<tc>, window_params = [{transform_indices = @transform_0, window_bounds = array<i64: 1, 16, 256>}, {pipeline_mode = #tpu.pipeline_mode<synchronous>, transform_indices = @transform_1, window_bounds = array<i64: 16, 1>}, {pipeline_mode = #tpu.pipeline_mode<synchronous>, transform_indices = @transform_2, window_bounds = array<i64: 16, 1>}, {pipeline_mode = #tpu.pipeline_mode<synchronous>, transform_indices = @transform_3, window_bounds = array<i64: 32, 16>}, {transform_indices = @transform_4, window_bounds = array<i64: 1, 32, 256>}, {transform_indices = @transform_5, window_bounds = array<i64: 1, 1, 32, 2>}]} {
    %c0 = arith.constant 0 : index
    %c0_0 = arith.constant 0 : index
    %c0_1 = arith.constant 0 : index
    %0 = vector.load %arg2[%c0, %c0_0, %c0_1] : memref<1x16x256xf32, #tpu.memory_space<vmem>>, vector<1x16x256xf32>
    %1 = vector.shape_cast %0 : vector<1x16x256xf32> to vector<16x256xf32>
    %c0_2 = arith.constant 0 : index
    %c0_3 = arith.constant 0 : index
    %2 = vector.load %arg3[%c0_2, %c0_3] : memref<16x1xf32, #tpu.memory_space<vmem>>, vector<16x1xf32>
    %3 = vector.broadcast %2 : vector<16x1xf32> to vector<16x256xf32>
    %4 = arith.mulf %1, %3 : vector<16x256xf32>
    %c0_4 = arith.constant 0 : index
    %c0_5 = arith.constant 0 : index
    %5 = vector.load %arg4[%c0_4, %c0_5] : memref<16x1xf32, #tpu.memory_space<vmem>>, vector<16x1xf32>
    %6 = vector.broadcast %5 : vector<16x1xf32> to vector<16x256xf32>
    %7 = arith.addf %4, %6 : vector<16x256xf32>
    %cst = arith.constant 0.000000e+00 : f32
    %8 = vector.broadcast %cst : f32 to vector<16x256xf32>
    %9 = arith.maximumf %7, %8 : vector<16x256xf32>
    %c0_6 = arith.constant 0 : index
    %c0_7 = arith.constant 0 : index
    %10 = vector.load %arg5[%c0_6, %c0_7] : memref<32x16xbf16, #tpu.memory_space<vmem>>, vector<32x16xbf16>
    %11 = arith.truncf %9 : vector<16x256xf32> to vector<16x256xbf16>
    %cst_8 = arith.constant dense<0.000000e+00> : vector<32x256xf32>
    %12 = tpu.matmul %10, %11, %cst_8 {dimension_numbers = #tpu.dot_dimension_numbers<[1], [0], [0], [1], [0, 0, 1, 1], [], []>} : vector<32x16xbf16>, vector<16x256xbf16>, vector<32x256xf32> -> vector<32x256xf32>
    %c0_9 = arith.constant 0 : index
    %c0_10 = arith.constant 0 : index
    %c0_11 = arith.constant 0 : index
    %13 = vector.load %arg6[%c0_9, %c0_10, %c0_11] : memref<1x32x256xf32, #tpu.memory_space<vmem>>, vector<1x32x256xf32>
    %14 = vector.shape_cast %13 : vector<1x32x256xf32> to vector<32x256xf32>
    %15 = vector.shape_cast %12 : vector<32x256xf32> to vector<1x32x256xf32>
    tpu.vector_store %arg6[%c0_9, %c0_10, %c0_11], %15 {strides = array<i32>} : memref<1x32x256xf32, #tpu.memory_space<vmem>>, vector<1x32x256xf32>,
    %cst_12 = arith.constant dense<0.000000e+00> : vector<32xf32>
    %16 = vector.multi_reduction <add>, %12, %cst_12 [1] : vector<32x256xf32> to vector<32xf32>
    %17 = vector.shape_cast %16 : vector<32xf32> to vector<32x1xf32>
    %18 = arith.mulf %12, %12 : vector<32x256xf32>
    %cst_13 = arith.constant dense<0.000000e+00> : vector<32xf32>
    %19 = vector.multi_reduction <add>, %18, %cst_13 [1] : vector<32x256xf32> to vector<32xf32>
    %20 = vector.shape_cast %19 : vector<32xf32> to vector<32x1xf32>
    %21 = tpu.concatenate %17, %20 in 1 : vector<32x1xf32>, vector<32x1xf32> -> vector<32x2xf32>
    %c0_14 = arith.constant 0 : index
    %c0_15 = arith.constant 0 : index
    %c0_16 = arith.constant 0 : index
    %c0_17 = arith.constant 0 : index
    %22 = vector.load %arg7[%c0_14, %c0_15, %c0_16, %c0_17] : memref<1x1x32x2xf32, #tpu.memory_space<vmem>>, vector<1x1x32x2xf32>
    %23 = vector.shape_cast %22 : vector<1x1x32x2xf32> to vector<32x2xf32>
    %24 = vector.shape_cast %21 : vector<32x2xf32> to vector<1x1x32x2xf32>
    tpu.vector_store %arg7[%c0_14, %c0_15, %c0_16, %c0_17], %24 {strides = array<i32>} : memref<1x1x32x2xf32, #tpu.memory_space<vmem>>, vector<1x1x32x2xf32>,
    return
  }
  func.func @transform_0(%arg0: i32, %arg1: i32) -> (i32, i32, i32) {
    %c0_i32 = arith.constant 0 : i32
    %c0_i32_0 = arith.constant 0 : i32
    return %arg0, %c0_i32, %arg1 : i32, i32, i32
  }
  func.func @transform_1(%arg0: i32, %arg1: i32) -> (i32, i32) {
    %c0_i32 = arith.constant 0 : i32
    %c0_i32_0 = arith.constant 0 : i32
    %c0_i32_1 = arith.constant 0 : i32
    return %c0_i32, %c0_i32_0 : i32, i32
  }
  func.func @transform_2(%arg0: i32, %arg1: i32) -> (i32, i32) {
    %c0_i32 = arith.constant 0 : i32
    %c0_i32_0 = arith.constant 0 : i32
    %c0_i32_1 = arith.constant 0 : i32
    return %c0_i32, %c0_i32_0 : i32, i32
  }
  func.func @transform_3(%arg0: i32, %arg1: i32) -> (i32, i32) {
    %c0_i32 = arith.constant 0 : i32
    %c0_i32_0 = arith.constant 0 : i32
    %c0_i32_1 = arith.constant 0 : i32
    return %c0_i32, %c0_i32_0 : i32, i32
  }
  func.func @transform_4(%arg0: i32, %arg1: i32) -> (i32, i32, i32) {
    %c0_i32 = arith.constant 0 : i32
    %c0_i32_0 = arith.constant 0 : i32
    return %arg0, %c0_i32, %arg1 : i32, i32, i32
  }
  func.func @transform_5(%arg0: i32, %arg1: i32) -> (i32, i32, i32, i32) {
    %c0_i32 = arith.constant 0 : i32
    %c0_i32_0 = arith.constant 0 : i32
    %c0_i32_1 = arith.constant 0 : i32
    return %arg0, %arg1, %c0_i32, %c0_i32_0 : i32, i32, i32, i32
  }
}

module attributes {stable_mosaic.version = 11 : i64} {
  func.func @_bn_relu_conv3x3_kernel(%arg0: i32, %arg1: memref<1x32x256xf32, #tpu.memory_space<vmem>>, %arg2: memref<32x1xf32, #tpu.memory_space<vmem>>, %arg3: memref<32x1xf32, #tpu.memory_space<vmem>>, %arg4: memref<9x8x32xbf16, #tpu.memory_space<vmem>>, %arg5: memref<9x256xf32, #tpu.memory_space<vmem>>, %arg6: memref<2x40x256xf32, #tpu.memory_space<any>>, %arg7: memref<1x8x256xf32, #tpu.memory_space<vmem>>, %arg8: memref<1x8x2xf32, #tpu.memory_space<vmem>>) attributes {dimension_semantics = [#tpu.dimension_semantics<parallel>], iteration_bounds = array<i64: 2>, scalar_prefetch = 0 : i64, scratch_operands = 0 : i64, tpu.core_type = #tpu.core_type<tc>, window_params = [{transform_indices = @transform_0, window_bounds = array<i64: 1, 32, 256>}, {pipeline_mode = #tpu.pipeline_mode<synchronous>, transform_indices = @transform_1, window_bounds = array<i64: 32, 1>}, {pipeline_mode = #tpu.pipeline_mode<synchronous>, transform_indices = @transform_2, window_bounds = array<i64: 32, 1>}, {pipeline_mode = #tpu.pipeline_mode<synchronous>, transform_indices = @transform_3, window_bounds = array<i64: 9, 8, 32>}, {pipeline_mode = #tpu.pipeline_mode<synchronous>, transform_indices = @transform_4, window_bounds = array<i64: 9, 256>}, {}, {transform_indices = @transform_6, window_bounds = array<i64: 1, 8, 256>}, {transform_indices = @transform_7, window_bounds = array<i64: 1, 8, 2>}]} {
    %c0 = arith.constant 0 : index
    %c0_0 = arith.constant 0 : index
    %c0_1 = arith.constant 0 : index
    %0 = vector.load %arg1[%c0, %c0_0, %c0_1] : memref<1x32x256xf32, #tpu.memory_space<vmem>>, vector<1x32x256xf32>
    %1 = vector.shape_cast %0 : vector<1x32x256xf32> to vector<32x256xf32>
    %c0_2 = arith.constant 0 : index
    %c0_3 = arith.constant 0 : index
    %2 = vector.load %arg2[%c0_2, %c0_3] : memref<32x1xf32, #tpu.memory_space<vmem>>, vector<32x1xf32>
    %3 = vector.broadcast %2 : vector<32x1xf32> to vector<32x256xf32>
    %4 = arith.mulf %1, %3 : vector<32x256xf32>
    %c0_4 = arith.constant 0 : index
    %c0_5 = arith.constant 0 : index
    %5 = vector.load %arg3[%c0_4, %c0_5] : memref<32x1xf32, #tpu.memory_space<vmem>>, vector<32x1xf32>
    %6 = vector.broadcast %5 : vector<32x1xf32> to vector<32x256xf32>
    %7 = arith.addf %4, %6 : vector<32x256xf32>
    %cst = arith.constant 0.000000e+00 : f32
    %8 = vector.broadcast %cst : f32 to vector<32x256xf32>
    %9 = arith.maximumf %7, %8 : vector<32x256xf32>
    %10 = arith.truncf %9 : vector<32x256xf32> to vector<32x256xbf16>
    %cst_6 = arith.constant 0.000000e+00 : f32
    %11 = vector.broadcast %cst_6 : f32 to vector<8x256xf32>
    %c0_7 = arith.constant 0 : index
    %c0_8 = arith.constant 0 : index
    %c0_9 = arith.constant 0 : index
    %12 = vector.load %arg4[%c0_7, %c0_8, %c0_9] : memref<9x8x32xbf16, #tpu.memory_space<vmem>>, vector<1x8x32xbf16>
    %13 = vector.shape_cast %12 : vector<1x8x32xbf16> to vector<8x32xbf16>
    %cst_10 = arith.constant dense<0.000000e+00> : vector<8x256xf32>
    %14 = tpu.matmul %13, %10, %cst_10 {dimension_numbers = #tpu.dot_dimension_numbers<[1], [0], [0], [1], [0, 0, 1, 1], [], []>} : vector<8x32xbf16>, vector<32x256xbf16>, vector<8x256xf32> -> vector<8x256xf32>
    %15 = vector.extract_strided_slice %14 {offsets = [0, 239], sizes = [8, 17], strides = [1, 1]} : vector<8x256xf32> to vector<8x17xf32>
    %16 = vector.extract_strided_slice %14 {offsets = [0, 0], sizes = [8, 239], strides = [1, 1]} : vector<8x256xf32> to vector<8x239xf32>
    %17 = tpu.concatenate %15, %16 in 1 : vector<8x17xf32>, vector<8x239xf32> -> vector<8x256xf32>
    %c0_11 = arith.constant 0 : index
    %c0_12 = arith.constant 0 : index
    %18 = vector.load %arg5[%c0_11, %c0_12] : memref<9x256xf32, #tpu.memory_space<vmem>>, vector<1x256xf32>
    %19 = vector.broadcast %18 : vector<1x256xf32> to vector<8x256xf32>
    %20 = arith.mulf %17, %19 : vector<8x256xf32>
    %21 = arith.addf %11, %20 : vector<8x256xf32>
    %c1 = arith.constant 1 : index
    %c0_13 = arith.constant 0 : index
    %c0_14 = arith.constant 0 : index
    %22 = vector.load %arg4[%c1, %c0_13, %c0_14] : memref<9x8x32xbf16, #tpu.memory_space<vmem>>, vector<1x8x32xbf16>
    %23 = vector.shape_cast %22 : vector<1x8x32xbf16> to vector<8x32xbf16>
    %cst_15 = arith.constant dense<0.000000e+00> : vector<8x256xf32>
    %24 = tpu.matmul %23, %10, %cst_15 {dimension_numbers = #tpu.dot_dimension_numbers<[1], [0], [0], [1], [0, 0, 1, 1], [], []>} : vector<8x32xbf16>, vector<32x256xbf16>, vector<8x256xf32> -> vector<8x256xf32>
    %25 = vector.extract_strided_slice %24 {offsets = [0, 240], sizes = [8, 16], strides = [1, 1]} : vector<8x256xf32> to vector<8x16xf32>
    %26 = vector.extract_strided_slice %24 {offsets = [0, 0], sizes = [8, 240], strides = [1, 1]} : vector<8x256xf32> to vector<8x240xf32>
    %27 = tpu.concatenate %25, %26 in 1 : vector<8x16xf32>, vector<8x240xf32> -> vector<8x256xf32>
    %c1_16 = arith.constant 1 : index
    %c0_17 = arith.constant 0 : index
    %28 = vector.load %arg5[%c1_16, %c0_17] : memref<9x256xf32, #tpu.memory_space<vmem>>, vector<1x256xf32>
    %29 = vector.broadcast %28 : vector<1x256xf32> to vector<8x256xf32>
    %30 = arith.mulf %27, %29 : vector<8x256xf32>
    %31 = arith.addf %21, %30 : vector<8x256xf32>
    %c2 = arith.constant 2 : index
    %c0_18 = arith.constant 0 : index
    %c0_19 = arith.constant 0 : index
    %32 = vector.load %arg4[%c2, %c0_18, %c0_19] : memref<9x8x32xbf16, #tpu.memory_space<vmem>>, vector<1x8x32xbf16>
    %33 = vector.shape_cast %32 : vector<1x8x32xbf16> to vector<8x32xbf16>
    %cst_20 = arith.constant dense<0.000000e+00> : vector<8x256xf32>
    %34 = tpu.matmul %33, %10, %cst_20 {dimension_numbers = #tpu.dot_dimension_numbers<[1], [0], [0], [1], [0, 0, 1, 1], [], []>} : vector<8x32xbf16>, vector<32x256xbf16>, vector<8x256xf32> -> vector<8x256xf32>
    %35 = vector.extract_strided_slice %34 {offsets = [0, 241], sizes = [8, 15], strides = [1, 1]} : vector<8x256xf32> to vector<8x15xf32>
    %36 = vector.extract_strided_slice %34 {offsets = [0, 0], sizes = [8, 241], strides = [1, 1]} : vector<8x256xf32> to vector<8x241xf32>
    %37 = tpu.concatenate %35, %36 in 1 : vector<8x15xf32>, vector<8x241xf32> -> vector<8x256xf32>
    %c2_21 = arith.constant 2 : index
    %c0_22 = arith.constant 0 : index
    %38 = vector.load %arg5[%c2_21, %c0_22] : memref<9x256xf32, #tpu.memory_space<vmem>>, vector<1x256xf32>
    %39 = vector.broadcast %38 : vector<1x256xf32> to vector<8x256xf32>
    %40 = arith.mulf %37, %39 : vector<8x256xf32>
    %41 = arith.addf %31, %40 : vector<8x256xf32>
    %c3 = arith.constant 3 : index
    %c0_23 = arith.constant 0 : index
    %c0_24 = arith.constant 0 : index
    %42 = vector.load %arg4[%c3, %c0_23, %c0_24] : memref<9x8x32xbf16, #tpu.memory_space<vmem>>, vector<1x8x32xbf16>
    %43 = vector.shape_cast %42 : vector<1x8x32xbf16> to vector<8x32xbf16>
    %cst_25 = arith.constant dense<0.000000e+00> : vector<8x256xf32>
    %44 = tpu.matmul %43, %10, %cst_25 {dimension_numbers = #tpu.dot_dimension_numbers<[1], [0], [0], [1], [0, 0, 1, 1], [], []>} : vector<8x32xbf16>, vector<32x256xbf16>, vector<8x256xf32> -> vector<8x256xf32>
    %45 = vector.extract_strided_slice %44 {offsets = [0, 255], sizes = [8, 1], strides = [1, 1]} : vector<8x256xf32> to vector<8x1xf32>
    %46 = vector.extract_strided_slice %44 {offsets = [0, 0], sizes = [8, 255], strides = [1, 1]} : vector<8x256xf32> to vector<8x255xf32>
    %47 = tpu.concatenate %45, %46 in 1 : vector<8x1xf32>, vector<8x255xf32> -> vector<8x256xf32>
    %c3_26 = arith.constant 3 : index
    %c0_27 = arith.constant 0 : index
    %48 = vector.load %arg5[%c3_26, %c0_27] : memref<9x256xf32, #tpu.memory_space<vmem>>, vector<1x256xf32>
    %49 = vector.broadcast %48 : vector<1x256xf32> to vector<8x256xf32>
    %50 = arith.mulf %47, %49 : vector<8x256xf32>
    %51 = arith.addf %41, %50 : vector<8x256xf32>
    %c4 = arith.constant 4 : index
    %c0_28 = arith.constant 0 : index
    %c0_29 = arith.constant 0 : index
    %52 = vector.load %arg4[%c4, %c0_28, %c0_29] : memref<9x8x32xbf16, #tpu.memory_space<vmem>>, vector<1x8x32xbf16>
    %53 = vector.shape_cast %52 : vector<1x8x32xbf16> to vector<8x32xbf16>
    %cst_30 = arith.constant dense<0.000000e+00> : vector<8x256xf32>
    %54 = tpu.matmul %53, %10, %cst_30 {dimension_numbers = #tpu.dot_dimension_numbers<[1], [0], [0], [1], [0, 0, 1, 1], [], []>} : vector<8x32xbf16>, vector<32x256xbf16>, vector<8x256xf32> -> vector<8x256xf32>
    %55 = arith.addf %51, %54 : vector<8x256xf32>
    %c5 = arith.constant 5 : index
    %c0_31 = arith.constant 0 : index
    %c0_32 = arith.constant 0 : index
    %56 = vector.load %arg4[%c5, %c0_31, %c0_32] : memref<9x8x32xbf16, #tpu.memory_space<vmem>>, vector<1x8x32xbf16>
    %57 = vector.shape_cast %56 : vector<1x8x32xbf16> to vector<8x32xbf16>
    %cst_33 = arith.constant dense<0.000000e+00> : vector<8x256xf32>
    %58 = tpu.matmul %57, %10, %cst_33 {dimension_numbers = #tpu.dot_dimension_numbers<[1], [0], [0], [1], [0, 0, 1, 1], [], []>} : vector<8x32xbf16>, vector<32x256xbf16>, vector<8x256xf32> -> vector<8x256xf32>
    %59 = vector.extract_strided_slice %58 {offsets = [0, 1], sizes = [8, 255], strides = [1, 1]} : vector<8x256xf32> to vector<8x255xf32>
    %60 = vector.extract_strided_slice %58 {offsets = [0, 0], sizes = [8, 1], strides = [1, 1]} : vector<8x256xf32> to vector<8x1xf32>
    %61 = tpu.concatenate %59, %60 in 1 : vector<8x255xf32>, vector<8x1xf32> -> vector<8x256xf32>
    %c5_34 = arith.constant 5 : index
    %c0_35 = arith.constant 0 : index
    %62 = vector.load %arg5[%c5_34, %c0_35] : memref<9x256xf32, #tpu.memory_space<vmem>>, vector<1x256xf32>
    %63 = vector.broadcast %62 : vector<1x256xf32> to vector<8x256xf32>
    %64 = arith.mulf %61, %63 : vector<8x256xf32>
    %65 = arith.addf %55, %64 : vector<8x256xf32>
    %c6 = arith.constant 6 : index
    %c0_36 = arith.constant 0 : index
    %c0_37 = arith.constant 0 : index
    %66 = vector.load %arg4[%c6, %c0_36, %c0_37] : memref<9x8x32xbf16, #tpu.memory_space<vmem>>, vector<1x8x32xbf16>
    %67 = vector.shape_cast %66 : vector<1x8x32xbf16> to vector<8x32xbf16>
    %cst_38 = arith.constant dense<0.000000e+00> : vector<8x256xf32>
    %68 = tpu.matmul %67, %10, %cst_38 {dimension_numbers = #tpu.dot_dimension_numbers<[1], [0], [0], [1], [0, 0, 1, 1], [], []>} : vector<8x32xbf16>, vector<32x256xbf16>, vector<8x256xf32> -> vector<8x256xf32>
    %69 = vector.extract_strided_slice %68 {offsets = [0, 15], sizes = [8, 241], strides = [1, 1]} : vector<8x256xf32> to vector<8x241xf32>
    %70 = vector.extract_strided_slice %68 {offsets = [0, 0], sizes = [8, 15], strides = [1, 1]} : vector<8x256xf32> to vector<8x15xf32>
    %71 = tpu.concatenate %69, %70 in 1 : vector<8x241xf32>, vector<8x15xf32> -> vector<8x256xf32>
    %c6_39 = arith.constant 6 : index
    %c0_40 = arith.constant 0 : index
    %72 = vector.load %arg5[%c6_39, %c0_40] : memref<9x256xf32, #tpu.memory_space<vmem>>, vector<1x256xf32>
    %73 = vector.broadcast %72 : vector<1x256xf32> to vector<8x256xf32>
    %74 = arith.mulf %71, %73 : vector<8x256xf32>
    %75 = arith.addf %65, %74 : vector<8x256xf32>
    %c7 = arith.constant 7 : index
    %c0_41 = arith.constant 0 : index
    %c0_42 = arith.constant 0 : index
    %76 = vector.load %arg4[%c7, %c0_41, %c0_42] : memref<9x8x32xbf16, #tpu.memory_space<vmem>>, vector<1x8x32xbf16>
    %77 = vector.shape_cast %76 : vector<1x8x32xbf16> to vector<8x32xbf16>
    %cst_43 = arith.constant dense<0.000000e+00> : vector<8x256xf32>
    %78 = tpu.matmul %77, %10, %cst_43 {dimension_numbers = #tpu.dot_dimension_numbers<[1], [0], [0], [1], [0, 0, 1, 1], [], []>} : vector<8x32xbf16>, vector<32x256xbf16>, vector<8x256xf32> -> vector<8x256xf32>
    %79 = vector.extract_strided_slice %78 {offsets = [0, 16], sizes = [8, 240], strides = [1, 1]} : vector<8x256xf32> to vector<8x240xf32>
    %80 = vector.extract_strided_slice %78 {offsets = [0, 0], sizes = [8, 16], strides = [1, 1]} : vector<8x256xf32> to vector<8x16xf32>
    %81 = tpu.concatenate %79, %80 in 1 : vector<8x240xf32>, vector<8x16xf32> -> vector<8x256xf32>
    %c7_44 = arith.constant 7 : index
    %c0_45 = arith.constant 0 : index
    %82 = vector.load %arg5[%c7_44, %c0_45] : memref<9x256xf32, #tpu.memory_space<vmem>>, vector<1x256xf32>
    %83 = vector.broadcast %82 : vector<1x256xf32> to vector<8x256xf32>
    %84 = arith.mulf %81, %83 : vector<8x256xf32>
    %85 = arith.addf %75, %84 : vector<8x256xf32>
    %c8 = arith.constant 8 : index
    %c0_46 = arith.constant 0 : index
    %c0_47 = arith.constant 0 : index
    %86 = vector.load %arg4[%c8, %c0_46, %c0_47] : memref<9x8x32xbf16, #tpu.memory_space<vmem>>, vector<1x8x32xbf16>
    %87 = vector.shape_cast %86 : vector<1x8x32xbf16> to vector<8x32xbf16>
    %cst_48 = arith.constant dense<0.000000e+00> : vector<8x256xf32>
    %88 = tpu.matmul %87, %10, %cst_48 {dimension_numbers = #tpu.dot_dimension_numbers<[1], [0], [0], [1], [0, 0, 1, 1], [], []>} : vector<8x32xbf16>, vector<32x256xbf16>, vector<8x256xf32> -> vector<8x256xf32>
    %89 = vector.extract_strided_slice %88 {offsets = [0, 17], sizes = [8, 239], strides = [1, 1]} : vector<8x256xf32> to vector<8x239xf32>
    %90 = vector.extract_strided_slice %88 {offsets = [0, 0], sizes = [8, 17], strides = [1, 1]} : vector<8x256xf32> to vector<8x17xf32>
    %91 = tpu.concatenate %89, %90 in 1 : vector<8x239xf32>, vector<8x17xf32> -> vector<8x256xf32>
    %c8_49 = arith.constant 8 : index
    %c0_50 = arith.constant 0 : index
    %92 = vector.load %arg5[%c8_49, %c0_50] : memref<9x256xf32, #tpu.memory_space<vmem>>, vector<1x256xf32>
    %93 = vector.broadcast %92 : vector<1x256xf32> to vector<8x256xf32>
    %94 = arith.mulf %91, %93 : vector<8x256xf32>
    %95 = arith.addf %85, %94 : vector<8x256xf32>
    %c0_51 = arith.constant 0 : index
    %c0_52 = arith.constant 0 : index
    %c0_53 = arith.constant 0 : index
    %96 = vector.load %arg7[%c0_51, %c0_52, %c0_53] : memref<1x8x256xf32, #tpu.memory_space<vmem>>, vector<1x8x256xf32>
    %97 = vector.shape_cast %96 : vector<1x8x256xf32> to vector<8x256xf32>
    %98 = vector.shape_cast %95 : vector<8x256xf32> to vector<1x8x256xf32>
    tpu.vector_store %arg7[%c0_51, %c0_52, %c0_53], %98 {strides = array<i32>} : memref<1x8x256xf32, #tpu.memory_space<vmem>>, vector<1x8x256xf32>,
    %cst_54 = arith.constant dense<0.000000e+00> : vector<8xf32>
    %99 = vector.multi_reduction <add>, %95, %cst_54 [1] : vector<8x256xf32> to vector<8xf32>
    %100 = vector.shape_cast %99 : vector<8xf32> to vector<8x1xf32>
    %101 = arith.mulf %95, %95 : vector<8x256xf32>
    %cst_55 = arith.constant dense<0.000000e+00> : vector<8xf32>
    %102 = vector.multi_reduction <add>, %101, %cst_55 [1] : vector<8x256xf32> to vector<8xf32>
    %103 = vector.shape_cast %102 : vector<8xf32> to vector<8x1xf32>
    %104 = tpu.concatenate %100, %103 in 1 : vector<8x1xf32>, vector<8x1xf32> -> vector<8x2xf32>
    %c0_56 = arith.constant 0 : index
    %c0_57 = arith.constant 0 : index
    %c0_58 = arith.constant 0 : index
    %105 = vector.load %arg8[%c0_56, %c0_57, %c0_58] : memref<1x8x2xf32, #tpu.memory_space<vmem>>, vector<1x8x2xf32>
    %106 = vector.shape_cast %105 : vector<1x8x2xf32> to vector<8x2xf32>
    %107 = vector.shape_cast %104 : vector<8x2xf32> to vector<1x8x2xf32>
    tpu.vector_store %arg8[%c0_56, %c0_57, %c0_58], %107 {strides = array<i32>} : memref<1x8x2xf32, #tpu.memory_space<vmem>>, vector<1x8x2xf32>,
    return
  }
  func.func @transform_0(%arg0: i32) -> (i32, i32, i32) {
    %c0_i32 = arith.constant 0 : i32
    %c0_i32_0 = arith.constant 0 : i32
    %c0_i32_1 = arith.constant 0 : i32
    return %arg0, %c0_i32, %c0_i32_0 : i32, i32, i32
  }
  func.func @transform_1(%arg0: i32) -> (i32, i32) {
    %c0_i32 = arith.constant 0 : i32
    %c0_i32_0 = arith.constant 0 : i32
    %c0_i32_1 = arith.constant 0 : i32
    return %c0_i32, %c0_i32_0 : i32, i32
  }
  func.func @transform_2(%arg0: i32) -> (i32, i32) {
    %c0_i32 = arith.constant 0 : i32
    %c0_i32_0 = arith.constant 0 : i32
    %c0_i32_1 = arith.constant 0 : i32
    return %c0_i32, %c0_i32_0 : i32, i32
  }
  func.func @transform_3(%arg0: i32) -> (i32, i32, i32) {
    %c0_i32 = arith.constant 0 : i32
    %c0_i32_0 = arith.constant 0 : i32
    %c0_i32_1 = arith.constant 0 : i32
    %c0_i32_2 = arith.constant 0 : i32
    return %c0_i32, %c0_i32_0, %c0_i32_1 : i32, i32, i32
  }
  func.func @transform_4(%arg0: i32) -> (i32, i32) {
    %c0_i32 = arith.constant 0 : i32
    %c0_i32_0 = arith.constant 0 : i32
    %c0_i32_1 = arith.constant 0 : i32
    return %c0_i32, %c0_i32_0 : i32, i32
  }
  func.func @transform_6(%arg0: i32) -> (i32, i32, i32) {
    %c2_i32 = arith.constant 2 : i32
    %c0_i32 = arith.constant 0 : i32
    %c0_i32_0 = arith.constant 0 : i32
    return %arg0, %c2_i32, %c0_i32 : i32, i32, i32
  }
  func.func @transform_7(%arg0: i32) -> (i32, i32, i32) {
    %c0_i32 = arith.constant 0 : i32
    %c0_i32_0 = arith.constant 0 : i32
    %c0_i32_1 = arith.constant 0 : i32
    return %arg0, %c0_i32, %c0_i32_0 : i32, i32, i32
  }
}

module attributes {stable_mosaic.version = 11 : i64} {
  func.func @_bn_relu_conv3x3_kernel(%arg0: i32, %arg1: memref<1x32x256xf32, #tpu.memory_space<vmem>>, %arg2: memref<32x1xf32, #tpu.memory_space<vmem>>, %arg3: memref<32x1xf32, #tpu.memory_space<vmem>>, %arg4: memref<9x8x32xbf16, #tpu.memory_space<vmem>>, %arg5: memref<9x256xf32, #tpu.memory_space<vmem>>, %arg6: memref<2x40x256xf32, #tpu.memory_space<any>>, %arg7: memref<1x8x256xf32, #tpu.memory_space<vmem>>, %arg8: memref<1x8x2xf32, #tpu.memory_space<vmem>>) attributes {dimension_semantics = [#tpu.dimension_semantics<parallel>], iteration_bounds = array<i64: 2>, scalar_prefetch = 0 : i64, scratch_operands = 0 : i64, tpu.core_type = #tpu.core_type<tc>, window_params = [{transform_indices = @transform_0, window_bounds = array<i64: 1, 32, 256>}, {pipeline_mode = #tpu.pipeline_mode<synchronous>, transform_indices = @transform_1, window_bounds = array<i64: 32, 1>}, {pipeline_mode = #tpu.pipeline_mode<synchronous>, transform_indices = @transform_2, window_bounds = array<i64: 32, 1>}, {pipeline_mode = #tpu.pipeline_mode<synchronous>, transform_indices = @transform_3, window_bounds = array<i64: 9, 8, 32>}, {pipeline_mode = #tpu.pipeline_mode<synchronous>, transform_indices = @transform_4, window_bounds = array<i64: 9, 256>}, {}, {transform_indices = @transform_6, window_bounds = array<i64: 1, 8, 256>}, {transform_indices = @transform_7, window_bounds = array<i64: 1, 8, 2>}]} {
    %c0 = arith.constant 0 : index
    %c0_0 = arith.constant 0 : index
    %c0_1 = arith.constant 0 : index
    %0 = vector.load %arg1[%c0, %c0_0, %c0_1] : memref<1x32x256xf32, #tpu.memory_space<vmem>>, vector<1x32x256xf32>
    %1 = vector.shape_cast %0 : vector<1x32x256xf32> to vector<32x256xf32>
    %c0_2 = arith.constant 0 : index
    %c0_3 = arith.constant 0 : index
    %2 = vector.load %arg2[%c0_2, %c0_3] : memref<32x1xf32, #tpu.memory_space<vmem>>, vector<32x1xf32>
    %3 = vector.broadcast %2 : vector<32x1xf32> to vector<32x256xf32>
    %4 = arith.mulf %1, %3 : vector<32x256xf32>
    %c0_4 = arith.constant 0 : index
    %c0_5 = arith.constant 0 : index
    %5 = vector.load %arg3[%c0_4, %c0_5] : memref<32x1xf32, #tpu.memory_space<vmem>>, vector<32x1xf32>
    %6 = vector.broadcast %5 : vector<32x1xf32> to vector<32x256xf32>
    %7 = arith.addf %4, %6 : vector<32x256xf32>
    %cst = arith.constant 0.000000e+00 : f32
    %8 = vector.broadcast %cst : f32 to vector<32x256xf32>
    %9 = arith.maximumf %7, %8 : vector<32x256xf32>
    %10 = arith.truncf %9 : vector<32x256xf32> to vector<32x256xbf16>
    %cst_6 = arith.constant 0.000000e+00 : f32
    %11 = vector.broadcast %cst_6 : f32 to vector<8x256xf32>
    %c0_7 = arith.constant 0 : index
    %c0_8 = arith.constant 0 : index
    %c0_9 = arith.constant 0 : index
    %12 = vector.load %arg4[%c0_7, %c0_8, %c0_9] : memref<9x8x32xbf16, #tpu.memory_space<vmem>>, vector<1x8x32xbf16>
    %13 = vector.shape_cast %12 : vector<1x8x32xbf16> to vector<8x32xbf16>
    %cst_10 = arith.constant dense<0.000000e+00> : vector<8x256xf32>
    %14 = tpu.matmul %13, %10, %cst_10 {dimension_numbers = #tpu.dot_dimension_numbers<[1], [0], [0], [1], [0, 0, 1, 1], [], []>} : vector<8x32xbf16>, vector<32x256xbf16>, vector<8x256xf32> -> vector<8x256xf32>
    %15 = vector.extract_strided_slice %14 {offsets = [0, 239], sizes = [8, 17], strides = [1, 1]} : vector<8x256xf32> to vector<8x17xf32>
    %16 = vector.extract_strided_slice %14 {offsets = [0, 0], sizes = [8, 239], strides = [1, 1]} : vector<8x256xf32> to vector<8x239xf32>
    %17 = tpu.concatenate %15, %16 in 1 : vector<8x17xf32>, vector<8x239xf32> -> vector<8x256xf32>
    %c0_11 = arith.constant 0 : index
    %c0_12 = arith.constant 0 : index
    %18 = vector.load %arg5[%c0_11, %c0_12] : memref<9x256xf32, #tpu.memory_space<vmem>>, vector<1x256xf32>
    %19 = vector.broadcast %18 : vector<1x256xf32> to vector<8x256xf32>
    %20 = arith.mulf %17, %19 : vector<8x256xf32>
    %21 = arith.addf %11, %20 : vector<8x256xf32>
    %c1 = arith.constant 1 : index
    %c0_13 = arith.constant 0 : index
    %c0_14 = arith.constant 0 : index
    %22 = vector.load %arg4[%c1, %c0_13, %c0_14] : memref<9x8x32xbf16, #tpu.memory_space<vmem>>, vector<1x8x32xbf16>
    %23 = vector.shape_cast %22 : vector<1x8x32xbf16> to vector<8x32xbf16>
    %cst_15 = arith.constant dense<0.000000e+00> : vector<8x256xf32>
    %24 = tpu.matmul %23, %10, %cst_15 {dimension_numbers = #tpu.dot_dimension_numbers<[1], [0], [0], [1], [0, 0, 1, 1], [], []>} : vector<8x32xbf16>, vector<32x256xbf16>, vector<8x256xf32> -> vector<8x256xf32>
    %25 = vector.extract_strided_slice %24 {offsets = [0, 240], sizes = [8, 16], strides = [1, 1]} : vector<8x256xf32> to vector<8x16xf32>
    %26 = vector.extract_strided_slice %24 {offsets = [0, 0], sizes = [8, 240], strides = [1, 1]} : vector<8x256xf32> to vector<8x240xf32>
    %27 = tpu.concatenate %25, %26 in 1 : vector<8x16xf32>, vector<8x240xf32> -> vector<8x256xf32>
    %c1_16 = arith.constant 1 : index
    %c0_17 = arith.constant 0 : index
    %28 = vector.load %arg5[%c1_16, %c0_17] : memref<9x256xf32, #tpu.memory_space<vmem>>, vector<1x256xf32>
    %29 = vector.broadcast %28 : vector<1x256xf32> to vector<8x256xf32>
    %30 = arith.mulf %27, %29 : vector<8x256xf32>
    %31 = arith.addf %21, %30 : vector<8x256xf32>
    %c2 = arith.constant 2 : index
    %c0_18 = arith.constant 0 : index
    %c0_19 = arith.constant 0 : index
    %32 = vector.load %arg4[%c2, %c0_18, %c0_19] : memref<9x8x32xbf16, #tpu.memory_space<vmem>>, vector<1x8x32xbf16>
    %33 = vector.shape_cast %32 : vector<1x8x32xbf16> to vector<8x32xbf16>
    %cst_20 = arith.constant dense<0.000000e+00> : vector<8x256xf32>
    %34 = tpu.matmul %33, %10, %cst_20 {dimension_numbers = #tpu.dot_dimension_numbers<[1], [0], [0], [1], [0, 0, 1, 1], [], []>} : vector<8x32xbf16>, vector<32x256xbf16>, vector<8x256xf32> -> vector<8x256xf32>
    %35 = vector.extract_strided_slice %34 {offsets = [0, 241], sizes = [8, 15], strides = [1, 1]} : vector<8x256xf32> to vector<8x15xf32>
    %36 = vector.extract_strided_slice %34 {offsets = [0, 0], sizes = [8, 241], strides = [1, 1]} : vector<8x256xf32> to vector<8x241xf32>
    %37 = tpu.concatenate %35, %36 in 1 : vector<8x15xf32>, vector<8x241xf32> -> vector<8x256xf32>
    %c2_21 = arith.constant 2 : index
    %c0_22 = arith.constant 0 : index
    %38 = vector.load %arg5[%c2_21, %c0_22] : memref<9x256xf32, #tpu.memory_space<vmem>>, vector<1x256xf32>
    %39 = vector.broadcast %38 : vector<1x256xf32> to vector<8x256xf32>
    %40 = arith.mulf %37, %39 : vector<8x256xf32>
    %41 = arith.addf %31, %40 : vector<8x256xf32>
    %c3 = arith.constant 3 : index
    %c0_23 = arith.constant 0 : index
    %c0_24 = arith.constant 0 : index
    %42 = vector.load %arg4[%c3, %c0_23, %c0_24] : memref<9x8x32xbf16, #tpu.memory_space<vmem>>, vector<1x8x32xbf16>
    %43 = vector.shape_cast %42 : vector<1x8x32xbf16> to vector<8x32xbf16>
    %cst_25 = arith.constant dense<0.000000e+00> : vector<8x256xf32>
    %44 = tpu.matmul %43, %10, %cst_25 {dimension_numbers = #tpu.dot_dimension_numbers<[1], [0], [0], [1], [0, 0, 1, 1], [], []>} : vector<8x32xbf16>, vector<32x256xbf16>, vector<8x256xf32> -> vector<8x256xf32>
    %45 = vector.extract_strided_slice %44 {offsets = [0, 255], sizes = [8, 1], strides = [1, 1]} : vector<8x256xf32> to vector<8x1xf32>
    %46 = vector.extract_strided_slice %44 {offsets = [0, 0], sizes = [8, 255], strides = [1, 1]} : vector<8x256xf32> to vector<8x255xf32>
    %47 = tpu.concatenate %45, %46 in 1 : vector<8x1xf32>, vector<8x255xf32> -> vector<8x256xf32>
    %c3_26 = arith.constant 3 : index
    %c0_27 = arith.constant 0 : index
    %48 = vector.load %arg5[%c3_26, %c0_27] : memref<9x256xf32, #tpu.memory_space<vmem>>, vector<1x256xf32>
    %49 = vector.broadcast %48 : vector<1x256xf32> to vector<8x256xf32>
    %50 = arith.mulf %47, %49 : vector<8x256xf32>
    %51 = arith.addf %41, %50 : vector<8x256xf32>
    %c4 = arith.constant 4 : index
    %c0_28 = arith.constant 0 : index
    %c0_29 = arith.constant 0 : index
    %52 = vector.load %arg4[%c4, %c0_28, %c0_29] : memref<9x8x32xbf16, #tpu.memory_space<vmem>>, vector<1x8x32xbf16>
    %53 = vector.shape_cast %52 : vector<1x8x32xbf16> to vector<8x32xbf16>
    %cst_30 = arith.constant dense<0.000000e+00> : vector<8x256xf32>
    %54 = tpu.matmul %53, %10, %cst_30 {dimension_numbers = #tpu.dot_dimension_numbers<[1], [0], [0], [1], [0, 0, 1, 1], [], []>} : vector<8x32xbf16>, vector<32x256xbf16>, vector<8x256xf32> -> vector<8x256xf32>
    %55 = arith.addf %51, %54 : vector<8x256xf32>
    %c5 = arith.constant 5 : index
    %c0_31 = arith.constant 0 : index
    %c0_32 = arith.constant 0 : index
    %56 = vector.load %arg4[%c5, %c0_31, %c0_32] : memref<9x8x32xbf16, #tpu.memory_space<vmem>>, vector<1x8x32xbf16>
    %57 = vector.shape_cast %56 : vector<1x8x32xbf16> to vector<8x32xbf16>
    %cst_33 = arith.constant dense<0.000000e+00> : vector<8x256xf32>
    %58 = tpu.matmul %57, %10, %cst_33 {dimension_numbers = #tpu.dot_dimension_numbers<[1], [0], [0], [1], [0, 0, 1, 1], [], []>} : vector<8x32xbf16>, vector<32x256xbf16>, vector<8x256xf32> -> vector<8x256xf32>
    %59 = vector.extract_strided_slice %58 {offsets = [0, 1], sizes = [8, 255], strides = [1, 1]} : vector<8x256xf32> to vector<8x255xf32>
    %60 = vector.extract_strided_slice %58 {offsets = [0, 0], sizes = [8, 1], strides = [1, 1]} : vector<8x256xf32> to vector<8x1xf32>
    %61 = tpu.concatenate %59, %60 in 1 : vector<8x255xf32>, vector<8x1xf32> -> vector<8x256xf32>
    %c5_34 = arith.constant 5 : index
    %c0_35 = arith.constant 0 : index
    %62 = vector.load %arg5[%c5_34, %c0_35] : memref<9x256xf32, #tpu.memory_space<vmem>>, vector<1x256xf32>
    %63 = vector.broadcast %62 : vector<1x256xf32> to vector<8x256xf32>
    %64 = arith.mulf %61, %63 : vector<8x256xf32>
    %65 = arith.addf %55, %64 : vector<8x256xf32>
    %c6 = arith.constant 6 : index
    %c0_36 = arith.constant 0 : index
    %c0_37 = arith.constant 0 : index
    %66 = vector.load %arg4[%c6, %c0_36, %c0_37] : memref<9x8x32xbf16, #tpu.memory_space<vmem>>, vector<1x8x32xbf16>
    %67 = vector.shape_cast %66 : vector<1x8x32xbf16> to vector<8x32xbf16>
    %cst_38 = arith.constant dense<0.000000e+00> : vector<8x256xf32>
    %68 = tpu.matmul %67, %10, %cst_38 {dimension_numbers = #tpu.dot_dimension_numbers<[1], [0], [0], [1], [0, 0, 1, 1], [], []>} : vector<8x32xbf16>, vector<32x256xbf16>, vector<8x256xf32> -> vector<8x256xf32>
    %69 = vector.extract_strided_slice %68 {offsets = [0, 15], sizes = [8, 241], strides = [1, 1]} : vector<8x256xf32> to vector<8x241xf32>
    %70 = vector.extract_strided_slice %68 {offsets = [0, 0], sizes = [8, 15], strides = [1, 1]} : vector<8x256xf32> to vector<8x15xf32>
    %71 = tpu.concatenate %69, %70 in 1 : vector<8x241xf32>, vector<8x15xf32> -> vector<8x256xf32>
    %c6_39 = arith.constant 6 : index
    %c0_40 = arith.constant 0 : index
    %72 = vector.load %arg5[%c6_39, %c0_40] : memref<9x256xf32, #tpu.memory_space<vmem>>, vector<1x256xf32>
    %73 = vector.broadcast %72 : vector<1x256xf32> to vector<8x256xf32>
    %74 = arith.mulf %71, %73 : vector<8x256xf32>
    %75 = arith.addf %65, %74 : vector<8x256xf32>
    %c7 = arith.constant 7 : index
    %c0_41 = arith.constant 0 : index
    %c0_42 = arith.constant 0 : index
    %76 = vector.load %arg4[%c7, %c0_41, %c0_42] : memref<9x8x32xbf16, #tpu.memory_space<vmem>>, vector<1x8x32xbf16>
    %77 = vector.shape_cast %76 : vector<1x8x32xbf16> to vector<8x32xbf16>
    %cst_43 = arith.constant dense<0.000000e+00> : vector<8x256xf32>
    %78 = tpu.matmul %77, %10, %cst_43 {dimension_numbers = #tpu.dot_dimension_numbers<[1], [0], [0], [1], [0, 0, 1, 1], [], []>} : vector<8x32xbf16>, vector<32x256xbf16>, vector<8x256xf32> -> vector<8x256xf32>
    %79 = vector.extract_strided_slice %78 {offsets = [0, 16], sizes = [8, 240], strides = [1, 1]} : vector<8x256xf32> to vector<8x240xf32>
    %80 = vector.extract_strided_slice %78 {offsets = [0, 0], sizes = [8, 16], strides = [1, 1]} : vector<8x256xf32> to vector<8x16xf32>
    %81 = tpu.concatenate %79, %80 in 1 : vector<8x240xf32>, vector<8x16xf32> -> vector<8x256xf32>
    %c7_44 = arith.constant 7 : index
    %c0_45 = arith.constant 0 : index
    %82 = vector.load %arg5[%c7_44, %c0_45] : memref<9x256xf32, #tpu.memory_space<vmem>>, vector<1x256xf32>
    %83 = vector.broadcast %82 : vector<1x256xf32> to vector<8x256xf32>
    %84 = arith.mulf %81, %83 : vector<8x256xf32>
    %85 = arith.addf %75, %84 : vector<8x256xf32>
    %c8 = arith.constant 8 : index
    %c0_46 = arith.constant 0 : index
    %c0_47 = arith.constant 0 : index
    %86 = vector.load %arg4[%c8, %c0_46, %c0_47] : memref<9x8x32xbf16, #tpu.memory_space<vmem>>, vector<1x8x32xbf16>
    %87 = vector.shape_cast %86 : vector<1x8x32xbf16> to vector<8x32xbf16>
    %cst_48 = arith.constant dense<0.000000e+00> : vector<8x256xf32>
    %88 = tpu.matmul %87, %10, %cst_48 {dimension_numbers = #tpu.dot_dimension_numbers<[1], [0], [0], [1], [0, 0, 1, 1], [], []>} : vector<8x32xbf16>, vector<32x256xbf16>, vector<8x256xf32> -> vector<8x256xf32>
    %89 = vector.extract_strided_slice %88 {offsets = [0, 17], sizes = [8, 239], strides = [1, 1]} : vector<8x256xf32> to vector<8x239xf32>
    %90 = vector.extract_strided_slice %88 {offsets = [0, 0], sizes = [8, 17], strides = [1, 1]} : vector<8x256xf32> to vector<8x17xf32>
    %91 = tpu.concatenate %89, %90 in 1 : vector<8x239xf32>, vector<8x17xf32> -> vector<8x256xf32>
    %c8_49 = arith.constant 8 : index
    %c0_50 = arith.constant 0 : index
    %92 = vector.load %arg5[%c8_49, %c0_50] : memref<9x256xf32, #tpu.memory_space<vmem>>, vector<1x256xf32>
    %93 = vector.broadcast %92 : vector<1x256xf32> to vector<8x256xf32>
    %94 = arith.mulf %91, %93 : vector<8x256xf32>
    %95 = arith.addf %85, %94 : vector<8x256xf32>
    %c0_51 = arith.constant 0 : index
    %c0_52 = arith.constant 0 : index
    %c0_53 = arith.constant 0 : index
    %96 = vector.load %arg7[%c0_51, %c0_52, %c0_53] : memref<1x8x256xf32, #tpu.memory_space<vmem>>, vector<1x8x256xf32>
    %97 = vector.shape_cast %96 : vector<1x8x256xf32> to vector<8x256xf32>
    %98 = vector.shape_cast %95 : vector<8x256xf32> to vector<1x8x256xf32>
    tpu.vector_store %arg7[%c0_51, %c0_52, %c0_53], %98 {strides = array<i32>} : memref<1x8x256xf32, #tpu.memory_space<vmem>>, vector<1x8x256xf32>,
    %cst_54 = arith.constant dense<0.000000e+00> : vector<8xf32>
    %99 = vector.multi_reduction <add>, %95, %cst_54 [1] : vector<8x256xf32> to vector<8xf32>
    %100 = vector.shape_cast %99 : vector<8xf32> to vector<8x1xf32>
    %101 = arith.mulf %95, %95 : vector<8x256xf32>
    %cst_55 = arith.constant dense<0.000000e+00> : vector<8xf32>
    %102 = vector.multi_reduction <add>, %101, %cst_55 [1] : vector<8x256xf32> to vector<8xf32>
    %103 = vector.shape_cast %102 : vector<8xf32> to vector<8x1xf32>
    %104 = tpu.concatenate %100, %103 in 1 : vector<8x1xf32>, vector<8x1xf32> -> vector<8x2xf32>
    %c0_56 = arith.constant 0 : index
    %c0_57 = arith.constant 0 : index
    %c0_58 = arith.constant 0 : index
    %105 = vector.load %arg8[%c0_56, %c0_57, %c0_58] : memref<1x8x2xf32, #tpu.memory_space<vmem>>, vector<1x8x2xf32>
    %106 = vector.shape_cast %105 : vector<1x8x2xf32> to vector<8x2xf32>
    %107 = vector.shape_cast %104 : vector<8x2xf32> to vector<1x8x2xf32>
    tpu.vector_store %arg8[%c0_56, %c0_57, %c0_58], %107 {strides = array<i32>} : memref<1x8x2xf32, #tpu.memory_space<vmem>>, vector<1x8x2xf32>,
    return
  }
  func.func @transform_0(%arg0: i32) -> (i32, i32, i32) {
    %c0_i32 = arith.constant 0 : i32
    %c0_i32_0 = arith.constant 0 : i32
    %c0_i32_1 = arith.constant 0 : i32
    return %arg0, %c0_i32, %c0_i32_0 : i32, i32, i32
  }
  func.func @transform_1(%arg0: i32) -> (i32, i32) {
    %c0_i32 = arith.constant 0 : i32
    %c0_i32_0 = arith.constant 0 : i32
    %c0_i32_1 = arith.constant 0 : i32
    return %c0_i32, %c0_i32_0 : i32, i32
  }
  func.func @transform_2(%arg0: i32) -> (i32, i32) {
    %c0_i32 = arith.constant 0 : i32
    %c0_i32_0 = arith.constant 0 : i32
    %c0_i32_1 = arith.constant 0 : i32
    return %c0_i32, %c0_i32_0 : i32, i32
  }
  func.func @transform_3(%arg0: i32) -> (i32, i32, i32) {
    %c0_i32 = arith.constant 0 : i32
    %c0_i32_0 = arith.constant 0 : i32
    %c0_i32_1 = arith.constant 0 : i32
    %c0_i32_2 = arith.constant 0 : i32
    return %c0_i32, %c0_i32_0, %c0_i32_1 : i32, i32, i32
  }
  func.func @transform_4(%arg0: i32) -> (i32, i32) {
    %c0_i32 = arith.constant 0 : i32
    %c0_i32_0 = arith.constant 0 : i32
    %c0_i32_1 = arith.constant 0 : i32
    return %c0_i32, %c0_i32_0 : i32, i32
  }
  func.func @transform_6(%arg0: i32) -> (i32, i32, i32) {
    %c3_i32 = arith.constant 3 : i32
    %c0_i32 = arith.constant 0 : i32
    %c0_i32_0 = arith.constant 0 : i32
    return %arg0, %c3_i32, %c0_i32 : i32, i32, i32
  }
  func.func @transform_7(%arg0: i32) -> (i32, i32, i32) {
    %c0_i32 = arith.constant 0 : i32
    %c0_i32_0 = arith.constant 0 : i32
    %c0_i32_1 = arith.constant 0 : i32
    return %arg0, %c0_i32, %c0_i32_0 : i32, i32, i32
  }
}

module attributes {stable_mosaic.version = 11 : i64} {
  func.func @_bn_relu_conv1x1_kernel(%arg0: i32, %arg1: i32, %arg2: memref<1x24x256xf32, #tpu.memory_space<vmem>>, %arg3: memref<24x1xf32, #tpu.memory_space<vmem>>, %arg4: memref<24x1xf32, #tpu.memory_space<vmem>>, %arg5: memref<32x24xbf16, #tpu.memory_space<vmem>>, %arg6: memref<1x32x256xf32, #tpu.memory_space<vmem>>, %arg7: memref<1x1x32x2xf32, #tpu.memory_space<vmem>>) attributes {dimension_semantics = [#tpu.dimension_semantics<parallel>, #tpu.dimension_semantics<parallel>], iteration_bounds = array<i64: 2, 1>, scalar_prefetch = 0 : i64, scratch_operands = 0 : i64, tpu.core_type = #tpu.core_type<tc>, window_params = [{transform_indices = @transform_0, window_bounds = array<i64: 1, 24, 256>}, {pipeline_mode = #tpu.pipeline_mode<synchronous>, transform_indices = @transform_1, window_bounds = array<i64: 24, 1>}, {pipeline_mode = #tpu.pipeline_mode<synchronous>, transform_indices = @transform_2, window_bounds = array<i64: 24, 1>}, {pipeline_mode = #tpu.pipeline_mode<synchronous>, transform_indices = @transform_3, window_bounds = array<i64: 32, 24>}, {transform_indices = @transform_4, window_bounds = array<i64: 1, 32, 256>}, {transform_indices = @transform_5, window_bounds = array<i64: 1, 1, 32, 2>}]} {
    %c0 = arith.constant 0 : index
    %c0_0 = arith.constant 0 : index
    %c0_1 = arith.constant 0 : index
    %0 = vector.load %arg2[%c0, %c0_0, %c0_1] : memref<1x24x256xf32, #tpu.memory_space<vmem>>, vector<1x24x256xf32>
    %1 = vector.shape_cast %0 : vector<1x24x256xf32> to vector<24x256xf32>
    %c0_2 = arith.constant 0 : index
    %c0_3 = arith.constant 0 : index
    %2 = vector.load %arg3[%c0_2, %c0_3] : memref<24x1xf32, #tpu.memory_space<vmem>>, vector<24x1xf32>
    %3 = vector.broadcast %2 : vector<24x1xf32> to vector<24x256xf32>
    %4 = arith.mulf %1, %3 : vector<24x256xf32>
    %c0_4 = arith.constant 0 : index
    %c0_5 = arith.constant 0 : index
    %5 = vector.load %arg4[%c0_4, %c0_5] : memref<24x1xf32, #tpu.memory_space<vmem>>, vector<24x1xf32>
    %6 = vector.broadcast %5 : vector<24x1xf32> to vector<24x256xf32>
    %7 = arith.addf %4, %6 : vector<24x256xf32>
    %cst = arith.constant 0.000000e+00 : f32
    %8 = vector.broadcast %cst : f32 to vector<24x256xf32>
    %9 = arith.maximumf %7, %8 : vector<24x256xf32>
    %c0_6 = arith.constant 0 : index
    %c0_7 = arith.constant 0 : index
    %10 = vector.load %arg5[%c0_6, %c0_7] : memref<32x24xbf16, #tpu.memory_space<vmem>>, vector<32x24xbf16>
    %11 = arith.truncf %9 : vector<24x256xf32> to vector<24x256xbf16>
    %cst_8 = arith.constant dense<0.000000e+00> : vector<32x256xf32>
    %12 = tpu.matmul %10, %11, %cst_8 {dimension_numbers = #tpu.dot_dimension_numbers<[1], [0], [0], [1], [0, 0, 1, 1], [], []>} : vector<32x24xbf16>, vector<24x256xbf16>, vector<32x256xf32> -> vector<32x256xf32>
    %c0_9 = arith.constant 0 : index
    %c0_10 = arith.constant 0 : index
    %c0_11 = arith.constant 0 : index
    %13 = vector.load %arg6[%c0_9, %c0_10, %c0_11] : memref<1x32x256xf32, #tpu.memory_space<vmem>>, vector<1x32x256xf32>
    %14 = vector.shape_cast %13 : vector<1x32x256xf32> to vector<32x256xf32>
    %15 = vector.shape_cast %12 : vector<32x256xf32> to vector<1x32x256xf32>
    tpu.vector_store %arg6[%c0_9, %c0_10, %c0_11], %15 {strides = array<i32>} : memref<1x32x256xf32, #tpu.memory_space<vmem>>, vector<1x32x256xf32>,
    %cst_12 = arith.constant dense<0.000000e+00> : vector<32xf32>
    %16 = vector.multi_reduction <add>, %12, %cst_12 [1] : vector<32x256xf32> to vector<32xf32>
    %17 = vector.shape_cast %16 : vector<32xf32> to vector<32x1xf32>
    %18 = arith.mulf %12, %12 : vector<32x256xf32>
    %cst_13 = arith.constant dense<0.000000e+00> : vector<32xf32>
    %19 = vector.multi_reduction <add>, %18, %cst_13 [1] : vector<32x256xf32> to vector<32xf32>
    %20 = vector.shape_cast %19 : vector<32xf32> to vector<32x1xf32>
    %21 = tpu.concatenate %17, %20 in 1 : vector<32x1xf32>, vector<32x1xf32> -> vector<32x2xf32>
    %c0_14 = arith.constant 0 : index
    %c0_15 = arith.constant 0 : index
    %c0_16 = arith.constant 0 : index
    %c0_17 = arith.constant 0 : index
    %22 = vector.load %arg7[%c0_14, %c0_15, %c0_16, %c0_17] : memref<1x1x32x2xf32, #tpu.memory_space<vmem>>, vector<1x1x32x2xf32>
    %23 = vector.shape_cast %22 : vector<1x1x32x2xf32> to vector<32x2xf32>
    %24 = vector.shape_cast %21 : vector<32x2xf32> to vector<1x1x32x2xf32>
    tpu.vector_store %arg7[%c0_14, %c0_15, %c0_16, %c0_17], %24 {strides = array<i32>} : memref<1x1x32x2xf32, #tpu.memory_space<vmem>>, vector<1x1x32x2xf32>,
    return
  }
  func.func @transform_0(%arg0: i32, %arg1: i32) -> (i32, i32, i32) {
    %c0_i32 = arith.constant 0 : i32
    %c0_i32_0 = arith.constant 0 : i32
    return %arg0, %c0_i32, %arg1 : i32, i32, i32
  }
  func.func @transform_1(%arg0: i32, %arg1: i32) -> (i32, i32) {
    %c0_i32 = arith.constant 0 : i32
    %c0_i32_0 = arith.constant 0 : i32
    %c0_i32_1 = arith.constant 0 : i32
    return %c0_i32, %c0_i32_0 : i32, i32
  }
  func.func @transform_2(%arg0: i32, %arg1: i32) -> (i32, i32) {
    %c0_i32 = arith.constant 0 : i32
    %c0_i32_0 = arith.constant 0 : i32
    %c0_i32_1 = arith.constant 0 : i32
    return %c0_i32, %c0_i32_0 : i32, i32
  }
  func.func @transform_3(%arg0: i32, %arg1: i32) -> (i32, i32) {
    %c0_i32 = arith.constant 0 : i32
    %c0_i32_0 = arith.constant 0 : i32
    %c0_i32_1 = arith.constant 0 : i32
    return %c0_i32, %c0_i32_0 : i32, i32
  }
  func.func @transform_4(%arg0: i32, %arg1: i32) -> (i32, i32, i32) {
    %c0_i32 = arith.constant 0 : i32
    %c0_i32_0 = arith.constant 0 : i32
    return %arg0, %c0_i32, %arg1 : i32, i32, i32
  }
  func.func @transform_5(%arg0: i32, %arg1: i32) -> (i32, i32, i32, i32) {
    %c0_i32 = arith.constant 0 : i32
    %c0_i32_0 = arith.constant 0 : i32
    %c0_i32_1 = arith.constant 0 : i32
    return %arg0, %arg1, %c0_i32, %c0_i32_0 : i32, i32, i32, i32
  }
}

module attributes {stable_mosaic.version = 11 : i64} {
  func.func @_bn_relu_conv1x1_kernel(%arg0: i32, %arg1: i32, %arg2: memref<1x32x256xf32, #tpu.memory_space<vmem>>, %arg3: memref<32x1xf32, #tpu.memory_space<vmem>>, %arg4: memref<32x1xf32, #tpu.memory_space<vmem>>, %arg5: memref<32x32xbf16, #tpu.memory_space<vmem>>, %arg6: memref<1x32x256xf32, #tpu.memory_space<vmem>>, %arg7: memref<1x1x32x2xf32, #tpu.memory_space<vmem>>) attributes {dimension_semantics = [#tpu.dimension_semantics<parallel>, #tpu.dimension_semantics<parallel>], iteration_bounds = array<i64: 2, 1>, scalar_prefetch = 0 : i64, scratch_operands = 0 : i64, tpu.core_type = #tpu.core_type<tc>, window_params = [{transform_indices = @transform_0, window_bounds = array<i64: 1, 32, 256>}, {pipeline_mode = #tpu.pipeline_mode<synchronous>, transform_indices = @transform_1, window_bounds = array<i64: 32, 1>}, {pipeline_mode = #tpu.pipeline_mode<synchronous>, transform_indices = @transform_2, window_bounds = array<i64: 32, 1>}, {pipeline_mode = #tpu.pipeline_mode<synchronous>, transform_indices = @transform_3, window_bounds = array<i64: 32, 32>}, {transform_indices = @transform_4, window_bounds = array<i64: 1, 32, 256>}, {transform_indices = @transform_5, window_bounds = array<i64: 1, 1, 32, 2>}]} {
    %c0 = arith.constant 0 : index
    %c0_0 = arith.constant 0 : index
    %c0_1 = arith.constant 0 : index
    %0 = vector.load %arg2[%c0, %c0_0, %c0_1] : memref<1x32x256xf32, #tpu.memory_space<vmem>>, vector<1x32x256xf32>
    %1 = vector.shape_cast %0 : vector<1x32x256xf32> to vector<32x256xf32>
    %c0_2 = arith.constant 0 : index
    %c0_3 = arith.constant 0 : index
    %2 = vector.load %arg3[%c0_2, %c0_3] : memref<32x1xf32, #tpu.memory_space<vmem>>, vector<32x1xf32>
    %3 = vector.broadcast %2 : vector<32x1xf32> to vector<32x256xf32>
    %4 = arith.mulf %1, %3 : vector<32x256xf32>
    %c0_4 = arith.constant 0 : index
    %c0_5 = arith.constant 0 : index
    %5 = vector.load %arg4[%c0_4, %c0_5] : memref<32x1xf32, #tpu.memory_space<vmem>>, vector<32x1xf32>
    %6 = vector.broadcast %5 : vector<32x1xf32> to vector<32x256xf32>
    %7 = arith.addf %4, %6 : vector<32x256xf32>
    %cst = arith.constant 0.000000e+00 : f32
    %8 = vector.broadcast %cst : f32 to vector<32x256xf32>
    %9 = arith.maximumf %7, %8 : vector<32x256xf32>
    %c0_6 = arith.constant 0 : index
    %c0_7 = arith.constant 0 : index
    %10 = vector.load %arg5[%c0_6, %c0_7] : memref<32x32xbf16, #tpu.memory_space<vmem>>, vector<32x32xbf16>
    %11 = arith.truncf %9 : vector<32x256xf32> to vector<32x256xbf16>
    %cst_8 = arith.constant dense<0.000000e+00> : vector<32x256xf32>
    %12 = tpu.matmul %10, %11, %cst_8 {dimension_numbers = #tpu.dot_dimension_numbers<[1], [0], [0], [1], [0, 0, 1, 1], [], []>} : vector<32x32xbf16>, vector<32x256xbf16>, vector<32x256xf32> -> vector<32x256xf32>
    %c0_9 = arith.constant 0 : index
    %c0_10 = arith.constant 0 : index
    %c0_11 = arith.constant 0 : index
    %13 = vector.load %arg6[%c0_9, %c0_10, %c0_11] : memref<1x32x256xf32, #tpu.memory_space<vmem>>, vector<1x32x256xf32>
    %14 = vector.shape_cast %13 : vector<1x32x256xf32> to vector<32x256xf32>
    %15 = vector.shape_cast %12 : vector<32x256xf32> to vector<1x32x256xf32>
    tpu.vector_store %arg6[%c0_9, %c0_10, %c0_11], %15 {strides = array<i32>} : memref<1x32x256xf32, #tpu.memory_space<vmem>>, vector<1x32x256xf32>,
    %cst_12 = arith.constant dense<0.000000e+00> : vector<32xf32>
    %16 = vector.multi_reduction <add>, %12, %cst_12 [1] : vector<32x256xf32> to vector<32xf32>
    %17 = vector.shape_cast %16 : vector<32xf32> to vector<32x1xf32>
    %18 = arith.mulf %12, %12 : vector<32x256xf32>
    %cst_13 = arith.constant dense<0.000000e+00> : vector<32xf32>
    %19 = vector.multi_reduction <add>, %18, %cst_13 [1] : vector<32x256xf32> to vector<32xf32>
    %20 = vector.shape_cast %19 : vector<32xf32> to vector<32x1xf32>
    %21 = tpu.concatenate %17, %20 in 1 : vector<32x1xf32>, vector<32x1xf32> -> vector<32x2xf32>
    %c0_14 = arith.constant 0 : index
    %c0_15 = arith.constant 0 : index
    %c0_16 = arith.constant 0 : index
    %c0_17 = arith.constant 0 : index
    %22 = vector.load %arg7[%c0_14, %c0_15, %c0_16, %c0_17] : memref<1x1x32x2xf32, #tpu.memory_space<vmem>>, vector<1x1x32x2xf32>
    %23 = vector.shape_cast %22 : vector<1x1x32x2xf32> to vector<32x2xf32>
    %24 = vector.shape_cast %21 : vector<32x2xf32> to vector<1x1x32x2xf32>
    tpu.vector_store %arg7[%c0_14, %c0_15, %c0_16, %c0_17], %24 {strides = array<i32>} : memref<1x1x32x2xf32, #tpu.memory_space<vmem>>, vector<1x1x32x2xf32>,
    return
  }
  func.func @transform_0(%arg0: i32, %arg1: i32) -> (i32, i32, i32) {
    %c0_i32 = arith.constant 0 : i32
    %c0_i32_0 = arith.constant 0 : i32
    return %arg0, %c0_i32, %arg1 : i32, i32, i32
  }
  func.func @transform_1(%arg0: i32, %arg1: i32) -> (i32, i32) {
    %c0_i32 = arith.constant 0 : i32
    %c0_i32_0 = arith.constant 0 : i32
    %c0_i32_1 = arith.constant 0 : i32
    return %c0_i32, %c0_i32_0 : i32, i32
  }
  func.func @transform_2(%arg0: i32, %arg1: i32) -> (i32, i32) {
    %c0_i32 = arith.constant 0 : i32
    %c0_i32_0 = arith.constant 0 : i32
    %c0_i32_1 = arith.constant 0 : i32
    return %c0_i32, %c0_i32_0 : i32, i32
  }
  func.func @transform_3(%arg0: i32, %arg1: i32) -> (i32, i32) {
    %c0_i32 = arith.constant 0 : i32
    %c0_i32_0 = arith.constant 0 : i32
    %c0_i32_1 = arith.constant 0 : i32
    return %c0_i32, %c0_i32_0 : i32, i32
  }
  func.func @transform_4(%arg0: i32, %arg1: i32) -> (i32, i32, i32) {
    %c0_i32 = arith.constant 0 : i32
    %c0_i32_0 = arith.constant 0 : i32
    return %arg0, %c0_i32, %arg1 : i32, i32, i32
  }
  func.func @transform_5(%arg0: i32, %arg1: i32) -> (i32, i32, i32, i32) {
    %c0_i32 = arith.constant 0 : i32
    %c0_i32_0 = arith.constant 0 : i32
    %c0_i32_1 = arith.constant 0 : i32
    return %arg0, %arg1, %c0_i32, %c0_i32_0 : i32, i32, i32, i32
  }
}

module attributes {stable_mosaic.version = 11 : i64} {
  func.func @_bn_relu_conv3x3_kernel(%arg0: i32, %arg1: memref<1x32x256xf32, #tpu.memory_space<vmem>>, %arg2: memref<32x1xf32, #tpu.memory_space<vmem>>, %arg3: memref<32x1xf32, #tpu.memory_space<vmem>>, %arg4: memref<9x8x32xbf16, #tpu.memory_space<vmem>>, %arg5: memref<9x256xf32, #tpu.memory_space<vmem>>, %arg6: memref<2x40x256xf32, #tpu.memory_space<any>>, %arg7: memref<1x8x256xf32, #tpu.memory_space<vmem>>, %arg8: memref<1x8x2xf32, #tpu.memory_space<vmem>>) attributes {dimension_semantics = [#tpu.dimension_semantics<parallel>], iteration_bounds = array<i64: 2>, scalar_prefetch = 0 : i64, scratch_operands = 0 : i64, tpu.core_type = #tpu.core_type<tc>, window_params = [{transform_indices = @transform_0, window_bounds = array<i64: 1, 32, 256>}, {pipeline_mode = #tpu.pipeline_mode<synchronous>, transform_indices = @transform_1, window_bounds = array<i64: 32, 1>}, {pipeline_mode = #tpu.pipeline_mode<synchronous>, transform_indices = @transform_2, window_bounds = array<i64: 32, 1>}, {pipeline_mode = #tpu.pipeline_mode<synchronous>, transform_indices = @transform_3, window_bounds = array<i64: 9, 8, 32>}, {pipeline_mode = #tpu.pipeline_mode<synchronous>, transform_indices = @transform_4, window_bounds = array<i64: 9, 256>}, {}, {transform_indices = @transform_6, window_bounds = array<i64: 1, 8, 256>}, {transform_indices = @transform_7, window_bounds = array<i64: 1, 8, 2>}]} {
    %c0 = arith.constant 0 : index
    %c0_0 = arith.constant 0 : index
    %c0_1 = arith.constant 0 : index
    %0 = vector.load %arg1[%c0, %c0_0, %c0_1] : memref<1x32x256xf32, #tpu.memory_space<vmem>>, vector<1x32x256xf32>
    %1 = vector.shape_cast %0 : vector<1x32x256xf32> to vector<32x256xf32>
    %c0_2 = arith.constant 0 : index
    %c0_3 = arith.constant 0 : index
    %2 = vector.load %arg2[%c0_2, %c0_3] : memref<32x1xf32, #tpu.memory_space<vmem>>, vector<32x1xf32>
    %3 = vector.broadcast %2 : vector<32x1xf32> to vector<32x256xf32>
    %4 = arith.mulf %1, %3 : vector<32x256xf32>
    %c0_4 = arith.constant 0 : index
    %c0_5 = arith.constant 0 : index
    %5 = vector.load %arg3[%c0_4, %c0_5] : memref<32x1xf32, #tpu.memory_space<vmem>>, vector<32x1xf32>
    %6 = vector.broadcast %5 : vector<32x1xf32> to vector<32x256xf32>
    %7 = arith.addf %4, %6 : vector<32x256xf32>
    %cst = arith.constant 0.000000e+00 : f32
    %8 = vector.broadcast %cst : f32 to vector<32x256xf32>
    %9 = arith.maximumf %7, %8 : vector<32x256xf32>
    %10 = arith.truncf %9 : vector<32x256xf32> to vector<32x256xbf16>
    %cst_6 = arith.constant 0.000000e+00 : f32
    %11 = vector.broadcast %cst_6 : f32 to vector<8x256xf32>
    %c0_7 = arith.constant 0 : index
    %c0_8 = arith.constant 0 : index
    %c0_9 = arith.constant 0 : index
    %12 = vector.load %arg4[%c0_7, %c0_8, %c0_9] : memref<9x8x32xbf16, #tpu.memory_space<vmem>>, vector<1x8x32xbf16>
    %13 = vector.shape_cast %12 : vector<1x8x32xbf16> to vector<8x32xbf16>
    %cst_10 = arith.constant dense<0.000000e+00> : vector<8x256xf32>
    %14 = tpu.matmul %13, %10, %cst_10 {dimension_numbers = #tpu.dot_dimension_numbers<[1], [0], [0], [1], [0, 0, 1, 1], [], []>} : vector<8x32xbf16>, vector<32x256xbf16>, vector<8x256xf32> -> vector<8x256xf32>
    %15 = vector.extract_strided_slice %14 {offsets = [0, 239], sizes = [8, 17], strides = [1, 1]} : vector<8x256xf32> to vector<8x17xf32>
    %16 = vector.extract_strided_slice %14 {offsets = [0, 0], sizes = [8, 239], strides = [1, 1]} : vector<8x256xf32> to vector<8x239xf32>
    %17 = tpu.concatenate %15, %16 in 1 : vector<8x17xf32>, vector<8x239xf32> -> vector<8x256xf32>
    %c0_11 = arith.constant 0 : index
    %c0_12 = arith.constant 0 : index
    %18 = vector.load %arg5[%c0_11, %c0_12] : memref<9x256xf32, #tpu.memory_space<vmem>>, vector<1x256xf32>
    %19 = vector.broadcast %18 : vector<1x256xf32> to vector<8x256xf32>
    %20 = arith.mulf %17, %19 : vector<8x256xf32>
    %21 = arith.addf %11, %20 : vector<8x256xf32>
    %c1 = arith.constant 1 : index
    %c0_13 = arith.constant 0 : index
    %c0_14 = arith.constant 0 : index
    %22 = vector.load %arg4[%c1, %c0_13, %c0_14] : memref<9x8x32xbf16, #tpu.memory_space<vmem>>, vector<1x8x32xbf16>
    %23 = vector.shape_cast %22 : vector<1x8x32xbf16> to vector<8x32xbf16>
    %cst_15 = arith.constant dense<0.000000e+00> : vector<8x256xf32>
    %24 = tpu.matmul %23, %10, %cst_15 {dimension_numbers = #tpu.dot_dimension_numbers<[1], [0], [0], [1], [0, 0, 1, 1], [], []>} : vector<8x32xbf16>, vector<32x256xbf16>, vector<8x256xf32> -> vector<8x256xf32>
    %25 = vector.extract_strided_slice %24 {offsets = [0, 240], sizes = [8, 16], strides = [1, 1]} : vector<8x256xf32> to vector<8x16xf32>
    %26 = vector.extract_strided_slice %24 {offsets = [0, 0], sizes = [8, 240], strides = [1, 1]} : vector<8x256xf32> to vector<8x240xf32>
    %27 = tpu.concatenate %25, %26 in 1 : vector<8x16xf32>, vector<8x240xf32> -> vector<8x256xf32>
    %c1_16 = arith.constant 1 : index
    %c0_17 = arith.constant 0 : index
    %28 = vector.load %arg5[%c1_16, %c0_17] : memref<9x256xf32, #tpu.memory_space<vmem>>, vector<1x256xf32>
    %29 = vector.broadcast %28 : vector<1x256xf32> to vector<8x256xf32>
    %30 = arith.mulf %27, %29 : vector<8x256xf32>
    %31 = arith.addf %21, %30 : vector<8x256xf32>
    %c2 = arith.constant 2 : index
    %c0_18 = arith.constant 0 : index
    %c0_19 = arith.constant 0 : index
    %32 = vector.load %arg4[%c2, %c0_18, %c0_19] : memref<9x8x32xbf16, #tpu.memory_space<vmem>>, vector<1x8x32xbf16>
    %33 = vector.shape_cast %32 : vector<1x8x32xbf16> to vector<8x32xbf16>
    %cst_20 = arith.constant dense<0.000000e+00> : vector<8x256xf32>
    %34 = tpu.matmul %33, %10, %cst_20 {dimension_numbers = #tpu.dot_dimension_numbers<[1], [0], [0], [1], [0, 0, 1, 1], [], []>} : vector<8x32xbf16>, vector<32x256xbf16>, vector<8x256xf32> -> vector<8x256xf32>
    %35 = vector.extract_strided_slice %34 {offsets = [0, 241], sizes = [8, 15], strides = [1, 1]} : vector<8x256xf32> to vector<8x15xf32>
    %36 = vector.extract_strided_slice %34 {offsets = [0, 0], sizes = [8, 241], strides = [1, 1]} : vector<8x256xf32> to vector<8x241xf32>
    %37 = tpu.concatenate %35, %36 in 1 : vector<8x15xf32>, vector<8x241xf32> -> vector<8x256xf32>
    %c2_21 = arith.constant 2 : index
    %c0_22 = arith.constant 0 : index
    %38 = vector.load %arg5[%c2_21, %c0_22] : memref<9x256xf32, #tpu.memory_space<vmem>>, vector<1x256xf32>
    %39 = vector.broadcast %38 : vector<1x256xf32> to vector<8x256xf32>
    %40 = arith.mulf %37, %39 : vector<8x256xf32>
    %41 = arith.addf %31, %40 : vector<8x256xf32>
    %c3 = arith.constant 3 : index
    %c0_23 = arith.constant 0 : index
    %c0_24 = arith.constant 0 : index
    %42 = vector.load %arg4[%c3, %c0_23, %c0_24] : memref<9x8x32xbf16, #tpu.memory_space<vmem>>, vector<1x8x32xbf16>
    %43 = vector.shape_cast %42 : vector<1x8x32xbf16> to vector<8x32xbf16>
    %cst_25 = arith.constant dense<0.000000e+00> : vector<8x256xf32>
    %44 = tpu.matmul %43, %10, %cst_25 {dimension_numbers = #tpu.dot_dimension_numbers<[1], [0], [0], [1], [0, 0, 1, 1], [], []>} : vector<8x32xbf16>, vector<32x256xbf16>, vector<8x256xf32> -> vector<8x256xf32>
    %45 = vector.extract_strided_slice %44 {offsets = [0, 255], sizes = [8, 1], strides = [1, 1]} : vector<8x256xf32> to vector<8x1xf32>
    %46 = vector.extract_strided_slice %44 {offsets = [0, 0], sizes = [8, 255], strides = [1, 1]} : vector<8x256xf32> to vector<8x255xf32>
    %47 = tpu.concatenate %45, %46 in 1 : vector<8x1xf32>, vector<8x255xf32> -> vector<8x256xf32>
    %c3_26 = arith.constant 3 : index
    %c0_27 = arith.constant 0 : index
    %48 = vector.load %arg5[%c3_26, %c0_27] : memref<9x256xf32, #tpu.memory_space<vmem>>, vector<1x256xf32>
    %49 = vector.broadcast %48 : vector<1x256xf32> to vector<8x256xf32>
    %50 = arith.mulf %47, %49 : vector<8x256xf32>
    %51 = arith.addf %41, %50 : vector<8x256xf32>
    %c4 = arith.constant 4 : index
    %c0_28 = arith.constant 0 : index
    %c0_29 = arith.constant 0 : index
    %52 = vector.load %arg4[%c4, %c0_28, %c0_29] : memref<9x8x32xbf16, #tpu.memory_space<vmem>>, vector<1x8x32xbf16>
    %53 = vector.shape_cast %52 : vector<1x8x32xbf16> to vector<8x32xbf16>
    %cst_30 = arith.constant dense<0.000000e+00> : vector<8x256xf32>
    %54 = tpu.matmul %53, %10, %cst_30 {dimension_numbers = #tpu.dot_dimension_numbers<[1], [0], [0], [1], [0, 0, 1, 1], [], []>} : vector<8x32xbf16>, vector<32x256xbf16>, vector<8x256xf32> -> vector<8x256xf32>
    %55 = arith.addf %51, %54 : vector<8x256xf32>
    %c5 = arith.constant 5 : index
    %c0_31 = arith.constant 0 : index
    %c0_32 = arith.constant 0 : index
    %56 = vector.load %arg4[%c5, %c0_31, %c0_32] : memref<9x8x32xbf16, #tpu.memory_space<vmem>>, vector<1x8x32xbf16>
    %57 = vector.shape_cast %56 : vector<1x8x32xbf16> to vector<8x32xbf16>
    %cst_33 = arith.constant dense<0.000000e+00> : vector<8x256xf32>
    %58 = tpu.matmul %57, %10, %cst_33 {dimension_numbers = #tpu.dot_dimension_numbers<[1], [0], [0], [1], [0, 0, 1, 1], [], []>} : vector<8x32xbf16>, vector<32x256xbf16>, vector<8x256xf32> -> vector<8x256xf32>
    %59 = vector.extract_strided_slice %58 {offsets = [0, 1], sizes = [8, 255], strides = [1, 1]} : vector<8x256xf32> to vector<8x255xf32>
    %60 = vector.extract_strided_slice %58 {offsets = [0, 0], sizes = [8, 1], strides = [1, 1]} : vector<8x256xf32> to vector<8x1xf32>
    %61 = tpu.concatenate %59, %60 in 1 : vector<8x255xf32>, vector<8x1xf32> -> vector<8x256xf32>
    %c5_34 = arith.constant 5 : index
    %c0_35 = arith.constant 0 : index
    %62 = vector.load %arg5[%c5_34, %c0_35] : memref<9x256xf32, #tpu.memory_space<vmem>>, vector<1x256xf32>
    %63 = vector.broadcast %62 : vector<1x256xf32> to vector<8x256xf32>
    %64 = arith.mulf %61, %63 : vector<8x256xf32>
    %65 = arith.addf %55, %64 : vector<8x256xf32>
    %c6 = arith.constant 6 : index
    %c0_36 = arith.constant 0 : index
    %c0_37 = arith.constant 0 : index
    %66 = vector.load %arg4[%c6, %c0_36, %c0_37] : memref<9x8x32xbf16, #tpu.memory_space<vmem>>, vector<1x8x32xbf16>
    %67 = vector.shape_cast %66 : vector<1x8x32xbf16> to vector<8x32xbf16>
    %cst_38 = arith.constant dense<0.000000e+00> : vector<8x256xf32>
    %68 = tpu.matmul %67, %10, %cst_38 {dimension_numbers = #tpu.dot_dimension_numbers<[1], [0], [0], [1], [0, 0, 1, 1], [], []>} : vector<8x32xbf16>, vector<32x256xbf16>, vector<8x256xf32> -> vector<8x256xf32>
    %69 = vector.extract_strided_slice %68 {offsets = [0, 15], sizes = [8, 241], strides = [1, 1]} : vector<8x256xf32> to vector<8x241xf32>
    %70 = vector.extract_strided_slice %68 {offsets = [0, 0], sizes = [8, 15], strides = [1, 1]} : vector<8x256xf32> to vector<8x15xf32>
    %71 = tpu.concatenate %69, %70 in 1 : vector<8x241xf32>, vector<8x15xf32> -> vector<8x256xf32>
    %c6_39 = arith.constant 6 : index
    %c0_40 = arith.constant 0 : index
    %72 = vector.load %arg5[%c6_39, %c0_40] : memref<9x256xf32, #tpu.memory_space<vmem>>, vector<1x256xf32>
    %73 = vector.broadcast %72 : vector<1x256xf32> to vector<8x256xf32>
    %74 = arith.mulf %71, %73 : vector<8x256xf32>
    %75 = arith.addf %65, %74 : vector<8x256xf32>
    %c7 = arith.constant 7 : index
    %c0_41 = arith.constant 0 : index
    %c0_42 = arith.constant 0 : index
    %76 = vector.load %arg4[%c7, %c0_41, %c0_42] : memref<9x8x32xbf16, #tpu.memory_space<vmem>>, vector<1x8x32xbf16>
    %77 = vector.shape_cast %76 : vector<1x8x32xbf16> to vector<8x32xbf16>
    %cst_43 = arith.constant dense<0.000000e+00> : vector<8x256xf32>
    %78 = tpu.matmul %77, %10, %cst_43 {dimension_numbers = #tpu.dot_dimension_numbers<[1], [0], [0], [1], [0, 0, 1, 1], [], []>} : vector<8x32xbf16>, vector<32x256xbf16>, vector<8x256xf32> -> vector<8x256xf32>
    %79 = vector.extract_strided_slice %78 {offsets = [0, 16], sizes = [8, 240], strides = [1, 1]} : vector<8x256xf32> to vector<8x240xf32>
    %80 = vector.extract_strided_slice %78 {offsets = [0, 0], sizes = [8, 16], strides = [1, 1]} : vector<8x256xf32> to vector<8x16xf32>
    %81 = tpu.concatenate %79, %80 in 1 : vector<8x240xf32>, vector<8x16xf32> -> vector<8x256xf32>
    %c7_44 = arith.constant 7 : index
    %c0_45 = arith.constant 0 : index
    %82 = vector.load %arg5[%c7_44, %c0_45] : memref<9x256xf32, #tpu.memory_space<vmem>>, vector<1x256xf32>
    %83 = vector.broadcast %82 : vector<1x256xf32> to vector<8x256xf32>
    %84 = arith.mulf %81, %83 : vector<8x256xf32>
    %85 = arith.addf %75, %84 : vector<8x256xf32>
    %c8 = arith.constant 8 : index
    %c0_46 = arith.constant 0 : index
    %c0_47 = arith.constant 0 : index
    %86 = vector.load %arg4[%c8, %c0_46, %c0_47] : memref<9x8x32xbf16, #tpu.memory_space<vmem>>, vector<1x8x32xbf16>
    %87 = vector.shape_cast %86 : vector<1x8x32xbf16> to vector<8x32xbf16>
    %cst_48 = arith.constant dense<0.000000e+00> : vector<8x256xf32>
    %88 = tpu.matmul %87, %10, %cst_48 {dimension_numbers = #tpu.dot_dimension_numbers<[1], [0], [0], [1], [0, 0, 1, 1], [], []>} : vector<8x32xbf16>, vector<32x256xbf16>, vector<8x256xf32> -> vector<8x256xf32>
    %89 = vector.extract_strided_slice %88 {offsets = [0, 17], sizes = [8, 239], strides = [1, 1]} : vector<8x256xf32> to vector<8x239xf32>
    %90 = vector.extract_strided_slice %88 {offsets = [0, 0], sizes = [8, 17], strides = [1, 1]} : vector<8x256xf32> to vector<8x17xf32>
    %91 = tpu.concatenate %89, %90 in 1 : vector<8x239xf32>, vector<8x17xf32> -> vector<8x256xf32>
    %c8_49 = arith.constant 8 : index
    %c0_50 = arith.constant 0 : index
    %92 = vector.load %arg5[%c8_49, %c0_50] : memref<9x256xf32, #tpu.memory_space<vmem>>, vector<1x256xf32>
    %93 = vector.broadcast %92 : vector<1x256xf32> to vector<8x256xf32>
    %94 = arith.mulf %91, %93 : vector<8x256xf32>
    %95 = arith.addf %85, %94 : vector<8x256xf32>
    %c0_51 = arith.constant 0 : index
    %c0_52 = arith.constant 0 : index
    %c0_53 = arith.constant 0 : index
    %96 = vector.load %arg7[%c0_51, %c0_52, %c0_53] : memref<1x8x256xf32, #tpu.memory_space<vmem>>, vector<1x8x256xf32>
    %97 = vector.shape_cast %96 : vector<1x8x256xf32> to vector<8x256xf32>
    %98 = vector.shape_cast %95 : vector<8x256xf32> to vector<1x8x256xf32>
    tpu.vector_store %arg7[%c0_51, %c0_52, %c0_53], %98 {strides = array<i32>} : memref<1x8x256xf32, #tpu.memory_space<vmem>>, vector<1x8x256xf32>,
    %cst_54 = arith.constant dense<0.000000e+00> : vector<8xf32>
    %99 = vector.multi_reduction <add>, %95, %cst_54 [1] : vector<8x256xf32> to vector<8xf32>
    %100 = vector.shape_cast %99 : vector<8xf32> to vector<8x1xf32>
    %101 = arith.mulf %95, %95 : vector<8x256xf32>
    %cst_55 = arith.constant dense<0.000000e+00> : vector<8xf32>
    %102 = vector.multi_reduction <add>, %101, %cst_55 [1] : vector<8x256xf32> to vector<8xf32>
    %103 = vector.shape_cast %102 : vector<8xf32> to vector<8x1xf32>
    %104 = tpu.concatenate %100, %103 in 1 : vector<8x1xf32>, vector<8x1xf32> -> vector<8x2xf32>
    %c0_56 = arith.constant 0 : index
    %c0_57 = arith.constant 0 : index
    %c0_58 = arith.constant 0 : index
    %105 = vector.load %arg8[%c0_56, %c0_57, %c0_58] : memref<1x8x2xf32, #tpu.memory_space<vmem>>, vector<1x8x2xf32>
    %106 = vector.shape_cast %105 : vector<1x8x2xf32> to vector<8x2xf32>
    %107 = vector.shape_cast %104 : vector<8x2xf32> to vector<1x8x2xf32>
    tpu.vector_store %arg8[%c0_56, %c0_57, %c0_58], %107 {strides = array<i32>} : memref<1x8x2xf32, #tpu.memory_space<vmem>>, vector<1x8x2xf32>,
    return
  }
  func.func @transform_0(%arg0: i32) -> (i32, i32, i32) {
    %c0_i32 = arith.constant 0 : i32
    %c0_i32_0 = arith.constant 0 : i32
    %c0_i32_1 = arith.constant 0 : i32
    return %arg0, %c0_i32, %c0_i32_0 : i32, i32, i32
  }
  func.func @transform_1(%arg0: i32) -> (i32, i32) {
    %c0_i32 = arith.constant 0 : i32
    %c0_i32_0 = arith.constant 0 : i32
    %c0_i32_1 = arith.constant 0 : i32
    return %c0_i32, %c0_i32_0 : i32, i32
  }
  func.func @transform_2(%arg0: i32) -> (i32, i32) {
    %c0_i32 = arith.constant 0 : i32
    %c0_i32_0 = arith.constant 0 : i32
    %c0_i32_1 = arith.constant 0 : i32
    return %c0_i32, %c0_i32_0 : i32, i32
  }
  func.func @transform_3(%arg0: i32) -> (i32, i32, i32) {
    %c0_i32 = arith.constant 0 : i32
    %c0_i32_0 = arith.constant 0 : i32
    %c0_i32_1 = arith.constant 0 : i32
    %c0_i32_2 = arith.constant 0 : i32
    return %c0_i32, %c0_i32_0, %c0_i32_1 : i32, i32, i32
  }
  func.func @transform_4(%arg0: i32) -> (i32, i32) {
    %c0_i32 = arith.constant 0 : i32
    %c0_i32_0 = arith.constant 0 : i32
    %c0_i32_1 = arith.constant 0 : i32
    return %c0_i32, %c0_i32_0 : i32, i32
  }
  func.func @transform_6(%arg0: i32) -> (i32, i32, i32) {
    %c4_i32 = arith.constant 4 : i32
    %c0_i32 = arith.constant 0 : i32
    %c0_i32_0 = arith.constant 0 : i32
    return %arg0, %c4_i32, %c0_i32 : i32, i32, i32
  }
  func.func @transform_7(%arg0: i32) -> (i32, i32, i32) {
    %c0_i32 = arith.constant 0 : i32
    %c0_i32_0 = arith.constant 0 : i32
    %c0_i32_1 = arith.constant 0 : i32
    return %arg0, %c0_i32, %c0_i32_0 : i32, i32, i32
  }
}

</mosaic_0001>

<bundles_post_ra>
// kernel: dense_block.8
= control target key start
LH: loop header
LB: loop body
LE: loop exit
PB: predicated region body
PF: predicated region fallthrough
CT: control target
= control target key end

     0   :  { %s686_s18 = smov 0   ;;  %s688_s19 = smov 0   ;;  %s739_s0 = inlined_call_operand.vmem [shape: f32[2,40,256], index: 0, kind: input, shape index: {}]   ;;  %s740_s1 = inlined_call_operand.vmem [shape: f32[8,1], index: 1, kind: input, shape index: {}]   ;;  %s741_s2 = inlined_call_operand.vmem [shape: f32[8,1], index: 2, kind: input, shape index: {}]   ;;  %s742_s3 = inlined_call_operand.vmem [shape: bf16[32,8], index: 3, kind: input, shape index: {}]   ;;  %s743_s4 = inlined_call_operand.vmem [shape: f32[2,32,256], index: 4, kind: output, shape index: {0}]   ;;  %s744_s5 = inlined_call_operand.vmem [shape: f32[2,1,32,2], index: 5, kind: output, shape index: {1}]  }
   0x1   :  { %s690_s20 = smov 0  }
   0x2 LB: > { %s28_s21 = sadd.s32 1, %s649_s19  ;;  %p585_p0 = scmp.ge.s32.totalorder %s653_s20, 1  ;;  %s653_s20 = sphi %s690_s20, %s16_s20   ;;  %s649_s19 = sphi %s688_s19, %s746_s19   ;;  %s645_s18 = sphi %s686_s18, %s745_s18  }
   0x3   : > { %p30_p1 = scmp.ge.s32.totalorder %s28_s21, 2  ;;  %p213_p2 = scmp.lt.s32.totalorder %s653_s20, 3 }
   0x5   : > { %s748_s21 = smov (%p30_p1, %s28_s21), 0  ;;  %p214_p3 = pnand %p585_p0, %p213_p2 }
   0x6   : > { %v290_v0 = vld [vmem:[%s740_s1] sm:$0xff] (!%p214_p3)  ;;  %v655_v1 = vmov (!%p214_p3), 0   ;;  %p259_p4 = scmp.lt.s32.totalorder (!%p214_p3), %s645_s18, 1  ;;  %vm331_vm0 = vcmask (!%p214_p3), 1043456   ;;  %v630_v17 = vld [vmem:[%s742_s3 + $0x8] sm:$0xff] (!%p214_p3)   ;;  %vm324_vm1 = vcmask (!%p214_p3), 64512  }
   0x7   : > { %217 = sbr.rel (%p214_p3) target bundleno = 533 (0x215), region = 36  ;;  %628 = vset.pattern.permute.xlu0 (!%p214_p3), %v655_v1  ;;  %370 = vmatprep.mubr.bf16.mxu0 (!%p214_p3), %v655_v1  ;;  %v298_v2 = vld [vmem:[%s741_s2] sm:$0xff] (!%p214_p3)  ;;  %vm431_vm2 = vcmask (!%p214_p3), 7168   ;;  %vm436_vm3 = vcmask (!%p214_p3), 15360  }
   0x8   : > { %293 = vperm.xlu0 (!%p214_p3), %628, %v290_v0   ;;  %380 = vmatprep.mubr.bf16.mxu1 (!%p214_p3), %v655_v1  ;;  %v629_v16 = vld [vmem:[%s742_s3] sm:$0xff] (!%p214_p3)  }
   0xc   : > { %301 = vperm.xlu0 (!%p214_p3), %628, %v298_v2  }
   0xe   : > { %s750_s18 = smov (!%p259_p4, %s645_s18), 1 }
   0xf   : > { %s602_s26 = smul.u32 80, %s750_s18  ;;  %s598_s9 = sshll.u32 %s750_s18, 6 }
  0x10   : > { %s276_s12 = scalar_lea.vmem %s743_s4, %s598_s9  ;;  %s599_s13 = sshll.u32 %s750_s18, 5 }
  0x11   : > { %s266_s29 = scalar_lea.vmem %s739_s0, %s602_s26  ;;  %s286_s16 = scalar_lea.vmem %s744_s5, %s599_s13 }
  0x12   : > { %v288_v4 = vld [vmem:[%s266_s29] sm:$0xff]  ;;  %v289_v5 = vld [vmem:[%s266_s29 + $0x8] sm:$0xff] }
  0x87   : > { %v294_v3 = vpop.permute.xlu0 %293 }
  0x88   : > { %v296_v6 = vmul.f32 %v294_v3, %v288_v4  ;;  %v297_v7 = vmul.f32 %v294_v3, %v289_v5 }
  0x8b   : > { %v302_v8 = vpop.permute.xlu0 %301 }
  0x8c   : > { %v304_v9 = vadd.f32 %v302_v8, %v296_v6  ;;  %v305_v10 = vadd.f32 %v302_v8, %v297_v7 }
  0x8e   : > { %v306_v11 = vmax.f32 %v304_v9, 0.0  ;;  %v307_v12 = vmax.f32 %v305_v10, 0.0 }
  0x90   : > { %v313_v13 = vpack.c.bf16 %v307_v12, %v307_v12  ;;  %v312_v14 = vpack.c.bf16 %v306_v11, %v306_v11 }
  0x92   : > { %593 = vmatprep.subr.msk.bf16.mxu0 %vm331_vm0, %v313_v13  ;;  %600 = vmatprep.subr.msk.bf16.mxu1 %vm331_vm0, %v313_v13  ;;  %v333_v15 = vsel %vm331_vm0, %v312_v14, 0 }
  0x93   : > { %339 = vmatpush1.bf16.msra.mxu0 %v333_v15  ;;  %601 = vmatpush1.bf16.msra.mxu1 %v333_v15 }
  0x96   : > { %594 = vmatmul.mubr.msk.bf16.vlgmr.msra.gmra.mrb[0].mxu0 %vm324_vm1, %v629_v16  ;;  %595 = vmatmul.mubr.msk.bf16.vlgmr.msra.gmra.mrb[0].mxu1 %vm324_vm1, %v630_v17 }
 0x169   : > { %v372_v18 = vpop.f32.mrb[0].mxu0  ;;  %v382_v19 = vpop.f32.mrb[0].mxu1 }
 0x16a   : > { %391 = vst [vmem:[%s276_s12] sm:$0xff] %v372_v18  ;;  %v374_v20 = vpop.f32.mrb[1].mxu0  ;;  %395 = vst [vmem:[%s276_s12 + $0x20] sm:$0xff] %v382_v19  ;;  %v384_v21 = vpop.f32.mrb[1].mxu1  ;;  %v411_v22 = vmul.f32 %v372_v18, %v372_v18  ;;  %v415_v23 = vmul.f32 %v382_v19, %v382_v19 }
 0x16b   : > { %392 = vst [vmem:[%s276_s12 + $0x8] sm:$0xff] %v374_v20  ;;  %v376_v24 = vpop.f32.mrb[2].mxu0  ;;  %396 = vst [vmem:[%s276_s12 + $0x28] sm:$0xff] %v384_v21  ;;  %v399_v25 = vadd.f32 %v374_v20, %v372_v18  ;;  %v386_v26 = vpop.f32.mrb[2].mxu1  ;;  %v405_v27 = vadd.f32 %v384_v21, %v382_v19  ;;  %v412_v28 = vmul.f32 %v374_v20, %v374_v20 }
 0x16c   : > { %v416_v29 = vmul.f32 %v384_v21, %v384_v21  ;;  %393 = vst [vmem:[%s276_s12 + $0x10] sm:$0xff] %v376_v24  ;;  %v378_v30 = vpop.f32.mrb[3].mxu0  ;;  %397 = vst [vmem:[%s276_s12 + $0x30] sm:$0xff] %v386_v26  ;;  %v388_v31 = vpop.f32.mrb[3].mxu1  ;;  %v413_v32 = vmul.f32 %v376_v24, %v376_v24  ;;  %v417_v33 = vmul.f32 %v386_v26, %v386_v26 }
 0x16d   : > { %394 = vst [vmem:[%s276_s12 + $0x18] sm:$0xff] %v378_v30  ;;  %v414_v34 = vmul.f32 %v378_v30, %v378_v30  ;;  %400 = vadd.xlane.f32.xlu1 %v399_v25  ;;  %398 = vst [vmem:[%s276_s12 + $0x38] sm:$0xff] %v388_v31  ;;  %v418_v35 = vmul.f32 %v388_v31, %v388_v31  ;;  %v402_v36 = vadd.f32 %v378_v30, %v376_v24 }
 0x16e   : > { %406 = vadd.xlane.f32.xlu0 %v405_v27  ;;  %v408_v37 = vadd.f32 %v388_v31, %v386_v26  ;;  %v419_v38 = vadd.f32 %v412_v28, %v411_v22  ;;  %v425_v39 = vadd.f32 %v416_v29, %v415_v23 }
 0x16f   : > { %v422_v40 = vadd.f32 %v414_v34, %v413_v32  ;;  %v428_v41 = vadd.f32 %v418_v35, %v417_v33 }
 0x171   : > { %403 = vadd.xlane.f32.xlu1 %v402_v36 }
 0x175   : > { %409 = vadd.xlane.f32.xlu1 %v408_v37 }
 0x179   : > { %420 = vadd.xlane.f32.xlu1 %v419_v38 }
 0x17d   : > { %426 = vadd.xlane.f32.xlu1 %v425_v39 }
 0x181   : > { %423 = vadd.xlane.f32.xlu1 %v422_v40 }
 0x185   : > { %429 = vadd.xlane.f32.xlu1 %v428_v41 }
 0x1fa   : > { %v401_v42 = vpop.xlane.xlu1 %400 }
 0x1fb   : > { %v407_v47 = vpop.xlane.xlu0 %406 }
 0x1fe   : > { %v404_v43 = vpop.xlane.xlu1 %403 }
 0x202   : > { %v410_v44 = vpop.xlane.xlu1 %409 }
 0x206   : > { %v421_v45 = vpop.xlane.xlu1 %420 }
 0x207   : > { %v432_v46 = vsel %vm431_vm2, %v401_v42, %v421_v45 }
 0x208   : > { %437 = vst.msk [vmem:[%s286_s16] sm:$0xff] %vm436_vm3, %v432_v46 }
 0x20a   : > { %v427_v48 = vpop.xlane.xlu1 %426 }
 0x20b   : > { %v434_v49 = vsel %vm431_vm2, %v407_v47, %v427_v48 }
 0x20c   : > { %439 = vst.msk [vmem:[%s286_s16 + $0x10] sm:$0xff] %vm436_vm3, %v434_v49 }
 0x20e   : > { %v424_v50 = vpop.xlane.xlu1 %423 }
 0x20f   : > { %v433_v51 = vsel %vm431_vm2, %v404_v43, %v424_v50 }
 0x210   : > { %438 = vst.msk [vmem:[%s286_s16 + $0x8] sm:$0xff] %vm436_vm3, %v433_v51 }
 0x212   : > { %v430_v52 = vpop.xlane.xlu1 %429 }
 0x213   : > { %v435_v53 = vsel %vm431_vm2, %v410_v44, %v430_v52 }
 0x214   : > { %440 = vst.msk [vmem:[%s286_s16 + $0x18] sm:$0xff] %vm436_vm3, %v435_v53 }
 0x215 PF: > { %s16_s20 = sadd.s32 1, %s653_s20   ;;  %s745_s18 = smov %s649_s19 }
 0x216   : > { %p13_p5 = scmp.ge.s32.totalorder %s16_s20, 4   ;;  %s746_s19 = smov %s748_s21 }
 0x218   :  { %15 = sbr.rel (!%p13_p5) target bundleno = 2 (0x2), region = 78 }

// kernel: dense_block.9
= control target key start
LH: loop header
LB: loop body
LE: loop exit
PB: predicated region body
PF: predicated region fallthrough
CT: control target
= control target key end

     0   :  { %s1221_s24 = smov 0   ;;  %s1394_s0 = inlined_call_operand.vmem [shape: f32[2,32,256], index: 0, kind: input, shape index: {}]   ;;  %s1395_s1 = inlined_call_operand.vmem [shape: f32[32,1], index: 1, kind: input, shape index: {}]   ;;  %s1396_s2 = inlined_call_operand.vmem [shape: f32[32,1], index: 2, kind: input, shape index: {}]   ;;  %s1397_s3 = inlined_call_operand.vmem [shape: bf16[9,8,32], index: 3, kind: input, shape index: {}]   ;;  %s1398_s4 = inlined_call_operand.vmem [shape: f32[9,256], index: 4, kind: input, shape index: {}]   ;;  %s1399_s5 = inlined_call_operand.vmem [shape: f32[2,40,256], index: 5, kind: input, shape index: {}, may-alias: {5,6}]   ;;  %s1400_s6 = inlined_call_operand.vmem [shape: f32[2,40,256], index: 6, kind: output, shape index: {0}, may-alias: {5,6}]   ;;  %s1401_s7 = inlined_call_operand.vmem [shape: f32[2,8,2], index: 7, kind: output, shape index: {1}]  }
   0x1 LB: > { %s1107_s25 = sadd.s32 4294967295, %s1170_s24   ;;  %p1111_p0 = scmp.ge.s32.totalorder %s1170_s24, 1  ;;  %s1170_s24 = sphi %s1221_s24, %s18_s24  }
   0x2   : > { %p216_p1 = scmp.lt.s32.totalorder %s1170_s24, 3 }
   0x4   : > { %p217_p2 = pnand %p1111_p0, %p216_p1 }
   0x5   : > { %v307_v0 = vld [vmem:[%s1396_s2] sm:$0xff] (!%p217_p2)  ;;  %v1172_v2 = vmov (!%p217_p2), 0   ;;  %v308_v3 = vld [vmem:[%s1396_s2 + $0x8] sm:$0xff] (!%p217_p2)  ;;  %v278_v5 = vld [vmem:[%s1395_s1 + $0x18] sm:$0xff] (!%p217_p2)  ;;  %p251_p3 = scmp.lt.s32.totalorder (!%p217_p2), %s1107_s25, 1  ;;  %vm352_vm0 = vcmask (!%p217_p2), 261120  }
   0x6   : > { %220 = sbr.rel (%p217_p2) target bundleno = 670 (0x29e), region = 40  ;;  %v275_v1 = vld [vmem:[%s1395_s1] sm:$0xff] (!%p217_p2)  ;;  %1163 = vset.pattern.permute.xlu1 (!%p217_p2), %v1172_v2  ;;  %1162 = vset.pattern.permute.xlu0 (!%p217_p2), %v1172_v2  ;;  %v276_v4 = vld [vmem:[%s1395_s1 + $0x8] sm:$0xff] (!%p217_p2)  ;;  %v277_v6 = vld [vmem:[%s1395_s1 + $0x10] sm:$0xff] (!%p217_p2)  ;;  %s1174_s19 = smov (!%p217_p2), 16   ;;  %vm478_vm1 = vcmask (!%p217_p2), 130048  }
   0x7   : > { %313 = vperm.xlu1 (!%p217_p2), %1163, %v307_v0   ;;  %281 = vperm.xlu0 (!%p217_p2), %1162, %v275_v1   ;;  %v310_v7 = vld [vmem:[%s1396_s2 + $0x18] sm:$0xff] (!%p217_p2)  ;;  %v309_v8 = vld [vmem:[%s1396_s2 + $0x10] sm:$0xff] (!%p217_p2)  ;;  %v351_v53 = vld [vmem:[%s1397_s3] sm:$0xf] (!%p217_p2)  ;;  %s1175_s20 = smov (!%p217_p2), 15   ;;  %s1177_s22 = smov (!%p217_p2), 127  }
   0x8   : > { %388 = vmatprep.mubr.bf16.mxu0 (!%p217_p2), %v1172_v2  ;;  %462 = vmatprep.mubr.bf16.mxu1 (!%p217_p2), %v1172_v2  ;;  %v1117_v54 = vld [vmem:[%s1397_s3 + $0x4] sm:$0xf] (!%p217_p2)  ;;  %v1120_v55 = vld [vmem:[%s1397_s3 + $0x8] sm:$0xf] (!%p217_p2)  ;;  %v1123_v56 = vld [vmem:[%s1397_s3 + $0xc] sm:$0xf] (!%p217_p2) }
   0x9   : > { %v1126_v57 = vld [vmem:[%s1397_s3 + $0x10] sm:$0xf] (!%p217_p2)  ;;  %v1128_v58 = vld [vmem:[%s1397_s3 + $0x14] sm:$0xf] (!%p217_p2)  ;;  %v1131_v59 = vld [vmem:[%s1397_s3 + $0x18] sm:$0xf] (!%p217_p2) }
   0xa   : > { %v1134_v60 = vld [vmem:[%s1397_s3 + $0x1c] sm:$0xf] (!%p217_p2)  ;;  %v1137_v61 = vld [vmem:[%s1397_s3 + $0x20] sm:$0xf] (!%p217_p2)  ;;  %s1178_s23 = smov (!%p217_p2), 113   ;;  %s1179_s5 = smov (!%p217_p2), 112  }
   0xb   : > { %318 = vperm.xlu1 (!%p217_p2), %1163, %v308_v3   ;;  %286 = vperm.xlu0 (!%p217_p2), %1162, %v276_v4   ;;  %s1180_s26 = smov (!%p217_p2), 111   ;;  %vm404_vm2 = vcmask (!%p217_p2), 138240   ;;  %vm553_vm3 = vcmask (!%p217_p2), 121856   ;;  %vm628_vm4 = vcmask (!%p217_p2), 7168   ;;  %vm750_vm5 = vcmask (!%p217_p2), 1039360  }
   0xc   : > { %vm825_vm6 = vcmask (!%p217_p2), 924672   ;;  %vm900_vm7 = vcmask (!%p217_p2), 916480   ;;  %vm975_vm8 = vcmask (!%p217_p2), 908288   ;;  %vm1009_vm9 = vcmask (!%p217_p2), 15360  }
   0xd   : > { %s1403_s25 = smov (!%p251_p3, %s1107_s25), 1 }
   0xe   : > { %s1144_s18 = sshll.u32 %s1403_s25, 6 }
   0xf   : > { %296 = vperm.xlu1 %1163, %v278_v5   ;;  %291 = vperm.xlu0 %1162, %v277_v6   ;;  %s255_s21 = scalar_lea.vmem %s1394_s0, %s1144_s18  ;;  %s1173_s18 = smov 17  }
  0x10   : > { %v267_v9 = vld [vmem:[%s255_s21] sm:$0xff]  ;;  %v268_v10 = vld [vmem:[%s255_s21 + $0x8] sm:$0xff]  ;;  %v269_v15 = vld [vmem:[%s255_s21 + $0x10] sm:$0xff] }
  0x11   : > { %v270_v16 = vld [vmem:[%s255_s21 + $0x18] sm:$0xff]  ;;  %v273_v25 = vld [vmem:[%s255_s21 + $0x30] sm:$0xff]  ;;  %v271_v29 = vld [vmem:[%s255_s21 + $0x20] sm:$0xff] }
  0x12   : > { %v274_v26 = vld [vmem:[%s255_s21 + $0x38] sm:$0xff]  ;;  %v272_v30 = vld [vmem:[%s255_s21 + $0x28] sm:$0xff]  ;;  %s1176_s21 = smov 1  }
  0x13   : > { %328 = vperm.xlu1 %1163, %v310_v7   ;;  %323 = vperm.xlu0 %1162, %v309_v8  }
  0x86   : > { %v314_v11 = vpop.permute.xlu1 %313  ;;  %v282_v12 = vpop.permute.xlu0 %281 }
  0x87   : > { %v299_v13 = vmul.f32 %v282_v12, %v267_v9  ;;  %v300_v14 = vmul.f32 %v282_v12, %v268_v10 }
  0x89   : > { %v331_v19 = vadd.f32 %v314_v11, %v299_v13  ;;  %v332_v20 = vadd.f32 %v314_v11, %v300_v14 }
  0x8a   : > { %v319_v17 = vpop.permute.xlu1 %318  ;;  %v287_v18 = vpop.permute.xlu0 %286 }
  0x8b   : > { %v301_v21 = vmul.f32 %v287_v18, %v269_v15  ;;  %v302_v22 = vmul.f32 %v287_v18, %v270_v16  ;;  %v339_v31 = vmax.f32 %v331_v19, 0.0  ;;  %v340_v32 = vmax.f32 %v332_v20, 0.0 }
  0x8d   : > { %v333_v23 = vadd.f32 %v319_v17, %v301_v21  ;;  %v334_v24 = vadd.f32 %v319_v17, %v302_v22 }
  0x8e   : > { %v297_v27 = vpop.permute.xlu1 %296  ;;  %v292_v28 = vpop.permute.xlu0 %291 }
  0x8f   : > { %v341_v33 = vmax.f32 %v333_v23, 0.0  ;;  %v342_v34 = vmax.f32 %v334_v24, 0.0  ;;  %v305_v35 = vmul.f32 %v297_v27, %v273_v25  ;;  %v306_v36 = vmul.f32 %v297_v27, %v274_v26 }
  0x90   : > { %v303_v39 = vmul.f32 %v292_v28, %v271_v29  ;;  %v304_v40 = vmul.f32 %v292_v28, %v272_v30 }
  0x91   : > { %v1263_v37 = vpack.c.bf16 %v341_v33, %v339_v31  ;;  %v1265_v38 = vpack.c.bf16 %v342_v34, %v340_v32 }
  0x92   : > { %v329_v41 = vpop.permute.xlu1 %328  ;;  %v324_v42 = vpop.permute.xlu0 %323 }
  0x93   : > { %v337_v43 = vadd.f32 %v329_v41, %v305_v35  ;;  %v338_v44 = vadd.f32 %v329_v41, %v306_v36  ;;  %v335_v45 = vadd.f32 %v324_v42, %v303_v39  ;;  %v336_v46 = vadd.f32 %v324_v42, %v304_v40  ;;  %356 = vmatprep.subr.bf16.mxu0 %v1265_v38  ;;  %v1119_v41 = vld [vmem:[%s1398_s4 + $0x1] ss:$8 sm:$0x3] }
  0x94   : > { %430 = vmatprep.subr.bf16.mxu1 %v1265_v38  ;;  %357 = vmatpush1.bf16.msra.mxu0 %v1263_v37  ;;  %v411_v35 = vlaneseq }
  0x95   : > { %v345_v47 = vmax.f32 %v337_v43, 0.0  ;;  %v346_v48 = vmax.f32 %v338_v44, 0.0  ;;  %v343_v49 = vmax.f32 %v335_v45, 0.0  ;;  %v344_v50 = vmax.f32 %v336_v46, 0.0  ;;  %431 = vmatpush1.bf16.msra.mxu1 %v1263_v37 }
  0x96   : > { %v409_v43 = vld [vmem:[%s1398_s4] ss:$8 sm:$0x3]  ;;  %v1122_v46 = vld [vmem:[%s1398_s4 + $0x2] ss:$8 sm:$0x3] }
  0x97   : > { %v349_v51 = vpack.c.bf16 %v345_v47, %v343_v49  ;;  %v350_v52 = vpack.c.bf16 %v346_v48, %v344_v50 }
  0x99   : > { %358 = vmatprep.subr.bf16.mxu0 %v350_v52  ;;  %432 = vmatprep.subr.bf16.mxu1 %v350_v52 }
  0x9a   : > { %359 = vmatpush1.bf16.msra.mxu0 %v349_v51  ;;  %433 = vmatpush1.bf16.msra.mxu1 %v349_v51 }
  0x9b   : > { %505 = vmatprep.subr.bf16.mxu0 %v1265_v38  ;;  %580 = vmatprep.subr.bf16.mxu1 %v1265_v38 }
  0x9d   : > { %1116 = vmatmul.mubr.msk.bf16.vlgmr.msra.gmra.mrb[0].mxu0 %vm352_vm0, %v351_v53  ;;  %1118 = vmatmul.mubr.msk.bf16.vlgmr.msra.gmra.mrb[0].mxu1 %vm352_vm0, %v1117_v54 }
  0x9e   : > { %506 = vmatpush1.bf16.msra.mxu0 %v1263_v37  ;;  %581 = vmatpush1.bf16.msra.mxu1 %v1263_v37 }
  0x9f   : > { %507 = vmatprep.subr.bf16.mxu0 %v350_v52  ;;  %582 = vmatprep.subr.bf16.mxu1 %v350_v52 }
  0xa0   : > { %537 = vmatprep.mubr.bf16.mxu0 %v1172_v2  ;;  %612 = vmatprep.mubr.bf16.mxu1 %v1172_v2 }
  0xa2   : > { %508 = vmatpush1.bf16.msra.mxu0 %v349_v51  ;;  %583 = vmatpush1.bf16.msra.mxu1 %v349_v51 }
  0xa3   : > { %655 = vmatprep.subr.bf16.mxu0 %v1265_v38  ;;  %703 = vmatprep.subr.bf16.mxu1 %v1265_v38 }
  0xa5   : > { %1121 = vmatmul.mubr.msk.bf16.vlgmr.msra.gmra.mrb[4].mxu0 %vm352_vm0, %v1120_v55  ;;  %1124 = vmatmul.mubr.msk.bf16.vlgmr.msra.gmra.mrb[4].mxu1 %vm352_vm0, %v1123_v56 }
  0xa6   : > { %656 = vmatpush1.bf16.msra.mxu0 %v1263_v37  ;;  %704 = vmatpush1.bf16.msra.mxu1 %v1263_v37 }
  0xa7   : > { %657 = vmatprep.subr.bf16.mxu0 %v350_v52  ;;  %705 = vmatprep.subr.bf16.mxu1 %v350_v52 }
  0xa8   : > { %687 = vmatprep.mubr.bf16.mxu0 %v1172_v2  ;;  %735 = vmatprep.mubr.bf16.mxu1 %v1172_v2 }
  0xaa   : > { %658 = vmatpush1.bf16.msra.mxu0 %v349_v51  ;;  %706 = vmatpush1.bf16.msra.mxu1 %v349_v51 }
  0xab   : > { %778 = vmatprep.subr.bf16.mxu0 %v1265_v38  ;;  %853 = vmatprep.subr.bf16.mxu1 %v1265_v38 }
  0xad   : > { %1127 = vmatmul.mubr.msk.bf16.vlgmr.msra.gmra.mrb[8].mxu0 %vm352_vm0, %v1126_v57  ;;  %1129 = vmatmul.mubr.msk.bf16.vlgmr.msra.gmra.mrb[8].mxu1 %vm352_vm0, %v1128_v58 }
  0xae   : > { %779 = vmatpush1.bf16.msra.mxu0 %v1263_v37  ;;  %854 = vmatpush1.bf16.msra.mxu1 %v1263_v37 }
  0xaf   : > { %780 = vmatprep.subr.bf16.mxu0 %v350_v52  ;;  %855 = vmatprep.subr.bf16.mxu1 %v350_v52 }
  0xb0   : > { %810 = vmatprep.mubr.bf16.mxu0 %v1172_v2  ;;  %885 = vmatprep.mubr.bf16.mxu1 %v1172_v2 }
  0xb2   : > { %781 = vmatpush1.bf16.msra.mxu0 %v349_v51  ;;  %856 = vmatpush1.bf16.msra.mxu1 %v349_v51 }
  0xb3   : > { %928 = vmatprep.subr.bf16.mxu0 %v1265_v38 }
  0xb5   : > { %1132 = vmatmul.mubr.msk.bf16.vlgmr.msra.gmra.mrb[12].mxu0 %vm352_vm0, %v1131_v59  ;;  %1135 = vmatmul.mubr.msk.bf16.vlgmr.msra.gmra.mrb[12].mxu1 %vm352_vm0, %v1134_v60 }
  0xb6   : > { %929 = vmatpush1.bf16.msra.mxu0 %v1263_v37  ;;  %960 = vmatprep.mubr.bf16.mxu0 %v1172_v2  ;;  %v412_v37 = vshrl.u32 %v411_v35, 7 }
  0xb7   : > { %930 = vmatprep.subr.bf16.mxu0 %v350_v52  ;;  %v1125_v52 = vld [vmem:[%s1398_s4 + $0x3] ss:$8 sm:$0x3] }
  0xb8   : > { %v1332_v40 = vsub.s32 0, %v412_v37  ;;  %v1340_v44 = vsub.s32 1, %v412_v37 }
  0xba   : > { %931 = vmatpush1.bf16.msra.mxu0 %v349_v51  ;;  %v489_v47 = vrot.slane %v1119_v41, %v1332_v40  ;;  %v493_v48 = vrot.slane %v1119_v41, %v1340_v44  ;;  %v414_v49 = vrot.slane %v409_v43, %v1332_v40  ;;  %v418_v53 = vrot.slane %v409_v43, %v1340_v44 }
  0xbb   : > { %v564_v54 = vrot.slane %v1122_v46, %v1332_v40  ;;  %v568_v55 = vrot.slane %v1122_v46, %v1340_v44 }
  0xbd   : > { %1138 = vmatmul.mubr.msk.bf16.vlgmr.msra.gmra.mrb[16].mxu0 %vm352_vm0, %v1137_v61 }
 0x170   : > { %v390_v62 = vpop.f32.mrb[0].mxu0  ;;  %v464_v63 = vpop.f32.mrb[0].mxu1 }
 0x171   : > { %v392_v0 = vpop.f32.mrb[1].mxu0  ;;  %402 = vrot.lane.b32.xlu1 %v390_v62, %s1173_s18  ;;  %v466_v1 = vpop.f32.mrb[1].mxu1 }
 0x172   : > { %398 = vrot.lane.b32.xlu0 %v392_v0, %s1173_s18  ;;  %v394_v3 = vpop.f32.mrb[2].mxu0  ;;  %v468_v4 = vpop.f32.mrb[2].mxu1  ;;  %v639_v0 = vrot.slane %v1125_v52, %v1332_v40 }
 0x173   : > { %v395_v5 = vpop.f32.mrb[3].mxu0  ;;  %v469_v6 = vpop.f32.mrb[3].mxu1 }
 0x175   : > { %476 = vrot.lane.b32.xlu1 %v464_v63, %s1174_s19 }
 0x176   : > { %472 = vrot.lane.b32.xlu0 %v466_v1, %s1174_s19  ;;  %v643_v1 = vrot.slane %v1125_v52, %v1340_v44 }
 0x178   : > { %v539_v2 = vpop.f32.mrb[4].mxu0  ;;  %v614_v7 = vpop.f32.mrb[4].mxu1 }
 0x179   : > { %v541_v8 = vpop.f32.mrb[5].mxu0  ;;  %551 = vrot.lane.b32.xlu1 %v539_v2, %s1175_s20  ;;  %v616_v9 = vpop.f32.mrb[5].mxu1 }
 0x17a   : > { %547 = vrot.lane.b32.xlu0 %v541_v8, %s1175_s20  ;;  %v543_v10 = vpop.f32.mrb[6].mxu0  ;;  %v618_v11 = vpop.f32.mrb[6].mxu1  ;;  %s1114_s20 = smul.u32 80, %s1403_s25 }
 0x17b   : > { %v544_v12 = vpop.f32.mrb[7].mxu0  ;;  %v619_v13 = vpop.f32.mrb[7].mxu1 }
 0x17c   : > { %v1130_v12 = vld [vmem:[%s1398_s4 + $0x5] ss:$8 sm:$0x3] }
 0x17d   : > { %626 = vrot.lane.b32.xlu1 %v614_v7, %s1176_s21 }
 0x17e   : > { %622 = vrot.lane.b32.xlu0 %v616_v9, %s1176_s21 }
 0x180   : > { %v1328_v14 = vpop.f32.mrb[8].mxu0  ;;  %v737_v15 = vpop.f32.mrb[8].mxu1 }
 0x181   : > { %v1330_v16 = vpop.f32.mrb[9].mxu0  ;;  %v739_v17 = vpop.f32.mrb[9].mxu1 }
 0x182   : > { %748 = vrot.lane.b32.xlu1 %v739_v17, %s1177_s22  ;;  %746 = vrot.lane.b32.xlu0 %v737_v15, %s1177_s22  ;;  %v693_v18 = vpop.f32.mrb[10].mxu0  ;;  %v741_v19 = vpop.f32.mrb[10].mxu1 }
 0x183   : > { %v694_v20 = vpop.f32.mrb[11].mxu0  ;;  %v742_v21 = vpop.f32.mrb[11].mxu1  ;;  %v762_v19 = vrot.slane %v1130_v12, %v1332_v40 }
 0x184   : > { %v1133_v20 = vld [vmem:[%s1398_s4 + $0x6] ss:$8 sm:$0x3] }
 0x188   : > { %v812_v22 = vpop.f32.mrb[12].mxu0  ;;  %v887_v23 = vpop.f32.mrb[12].mxu1 }
 0x189   : > { %v814_v24 = vpop.f32.mrb[13].mxu0  ;;  %821 = vrot.lane.b32.xlu0 %v812_v22, %s1178_s23  ;;  %v889_v25 = vpop.f32.mrb[13].mxu1 }
 0x18a   : > { %823 = vrot.lane.b32.xlu1 %v814_v24, %s1178_s23  ;;  %v816_v26 = vpop.f32.mrb[14].mxu0  ;;  %v891_v27 = vpop.f32.mrb[14].mxu1  ;;  %v1136_v24 = vld [vmem:[%s1398_s4 + $0x7] ss:$8 sm:$0x3]  ;;  %s1062_s23 = scalar_lea.vmem %s1400_s6, %s1114_s20 }
 0x18b   : > { %v817_v28 = vpop.f32.mrb[15].mxu0  ;;  %v892_v29 = vpop.f32.mrb[15].mxu1 }
 0x18c   : > { %v837_v28 = vrot.slane %v1133_v20, %v1332_v40  ;;  %v841_v29 = vrot.slane %v1133_v20, %v1340_v44 }
 0x18d   : > { %896 = vrot.lane.b32.xlu0 %v887_v23, %s1179_s5  ;;  %v766_v23 = vrot.slane %v1130_v12, %v1340_v44 }
 0x18e   : > { %898 = vrot.lane.b32.xlu1 %v889_v25, %s1179_s5  ;;  %s1115_s5 = sshll.u32 %s1403_s25, 3 }
 0x18f   : > { %s265_s28 = scalar_lea.vmem %s1401_s7, %s1115_s5 }
 0x190   : > { %v962_v30 = vpop.f32.mrb[16].mxu0 }
 0x191   : > { %v964_v31 = vpop.f32.mrb[17].mxu0  ;;  %971 = vrot.lane.b32.xlu0 %v962_v30, %s1180_s26 }
 0x192   : > { %973 = vrot.lane.b32.xlu1 %v964_v31, %s1180_s26  ;;  %v966_v32 = vpop.f32.mrb[18].mxu0 }
 0x193   : > { %v967_v33 = vpop.f32.mrb[19].mxu0 }
 0x194   : > { %v912_v33 = vrot.slane %v1136_v24, %v1332_v40 }
 0x1e3   : > { %v403_v34 = vpop.permute.xlu1 %402 }
 0x1e4   : > { %v399_v36 = vpop.permute.xlu0 %398 }
 0x1e5   : > { %v405_v58 = vsel %vm404_vm2, %v403_v34, %v399_v36  ;;  %v408_v59 = vsel %vm404_vm2, %v399_v36, %v403_v34  ;;  %v916_v34 = vrot.slane %v1136_v24, %v1340_v44 }
 0x1e6   : > { %v421_v5 = vmul.f32 %v414_v49, %v408_v59  ;;  %v422_v6 = vmul.f32 %v418_v53, %v405_v58 }
 0x1e7   : > { %v477_v38 = vpop.permute.xlu1 %476 }
 0x1e8   : > { %v473_v39 = vpop.permute.xlu0 %472 }
 0x1e9   : > { %v479_v50 = vsel %vm478_vm1, %v477_v38, %v473_v39  ;;  %v482_v51 = vsel %vm478_vm1, %v473_v39, %v477_v38  ;;  %v1139_v39 = vld [vmem:[%s1398_s4 + $0x10] ss:$8 sm:$0x3] }
 0x1ea   : > { %v496_v62 = vmul.f32 %v489_v47, %v482_v51  ;;  %v497_v63 = vmul.f32 %v493_v48, %v479_v50 }
 0x1eb   : > { %v552_v42 = vpop.permute.xlu1 %551 }
 0x1ec   : > { %v548_v45 = vpop.permute.xlu0 %547  ;;  %v498_v8 = vadd.f32 %v496_v62, %v421_v5  ;;  %v499_v9 = vadd.f32 %v497_v63, %v422_v6 }
 0x1ed   : > { %v554_v60 = vsel %vm553_vm3, %v552_v42, %v548_v45  ;;  %v557_v61 = vsel %vm553_vm3, %v548_v45, %v552_v42 }
 0x1ee   : > { %v571_v2 = vmul.f32 %v564_v54, %v557_v61  ;;  %v572_v7 = vmul.f32 %v568_v55, %v554_v60 }
 0x1ef   : > { %v627_v56 = vpop.permute.xlu1 %626 }
 0x1f0   : > { %v623_v57 = vpop.permute.xlu0 %622  ;;  %v573_v15 = vadd.f32 %v571_v2, %v498_v8  ;;  %v574_v17 = vadd.f32 %v572_v7, %v499_v9 }
 0x1f1   : > { %v629_v3 = vsel %vm628_vm4, %v627_v56, %v623_v57  ;;  %v632_v4 = vsel %vm628_vm4, %v623_v57, %v627_v56 }
 0x1f2   : > { %v646_v10 = vmul.f32 %v639_v0, %v632_v4  ;;  %v647_v11 = vmul.f32 %v643_v1, %v629_v3 }
 0x1f4   : > { %v747_v13 = vpop.permute.xlu0 %746  ;;  %v749_v18 = vpop.permute.xlu1 %748  ;;  %v648_v21 = vadd.f32 %v646_v10, %v573_v15  ;;  %v649_v22 = vadd.f32 %v647_v11, %v574_v17 }
 0x1f5   : > { %v751_v25 = vsel %vm750_vm5, %v747_v13, %v749_v18  ;;  %v755_v26 = vsel %vm750_vm5, %v749_v18, %v747_v13 }
 0x1f6   : > { %v696_v35 = vadd.f32 %v1328_v14, %v648_v21  ;;  %v697_v36 = vadd.f32 %v1330_v16, %v649_v22  ;;  %v769_v37 = vmul.f32 %v762_v19, %v751_v25  ;;  %v770_v38 = vmul.f32 %v766_v23, %v755_v26 }
 0x1f7   : > { %v987_v14 = vrot.slane %v1139_v39, %v1332_v40  ;;  %v991_v16 = vrot.slane %v1139_v39, %v1340_v44 }
 0x1f8   : > { %v771_v48 = vadd.f32 %v769_v37, %v696_v35  ;;  %v772_v49 = vadd.f32 %v770_v38, %v697_v36 }
 0x1fb   : > { %v822_v27 = vpop.permute.xlu0 %821 }
 0x1fc   : > { %v824_v30 = vpop.permute.xlu1 %823 }
 0x1fd   : > { %v826_v31 = vsel %vm825_vm6, %v822_v27, %v824_v30  ;;  %v830_v32 = vsel %vm825_vm6, %v824_v30, %v822_v27 }
 0x1fe   : > { %v844_v42 = vmul.f32 %v837_v28, %v826_v31  ;;  %v845_v43 = vmul.f32 %v841_v29, %v830_v32 }
 0x1ff   : > { %v897_v41 = vpop.permute.xlu0 %896 }
 0x200   : > { %v899_v45 = vpop.permute.xlu1 %898  ;;  %v846_v53 = vadd.f32 %v844_v42, %v771_v48  ;;  %v847_v54 = vadd.f32 %v845_v43, %v772_v49 }
 0x201   : > { %v901_v46 = vsel %vm900_vm7, %v897_v41, %v899_v45  ;;  %v905_v47 = vsel %vm900_vm7, %v899_v45, %v897_v41 }
 0x202   : > { %v919_v50 = vmul.f32 %v912_v33, %v901_v46  ;;  %v920_v51 = vmul.f32 %v916_v34, %v905_v47 }
 0x203   : > { %v972_v52 = vpop.permute.xlu0 %971 }
 0x204   : > { %v974_v55 = vpop.permute.xlu1 %973  ;;  %v921_v58 = vadd.f32 %v919_v50, %v846_v53  ;;  %v922_v59 = vadd.f32 %v920_v51, %v847_v54 }
 0x205   : > { %v976_v56 = vsel %vm975_vm8, %v972_v52, %v974_v55  ;;  %v980_v57 = vsel %vm975_vm8, %v974_v55, %v972_v52 }
 0x206   : > { %v994_v60 = vmul.f32 %v987_v14, %v976_v56  ;;  %v995_v61 = vmul.f32 %v991_v16, %v980_v57 }
 0x208   : > { %v996_v40 = vadd.f32 %v994_v60, %v921_v58  ;;  %v997_v44 = vadd.f32 %v995_v61, %v922_v59 }
 0x20a   : > { %1140 = vst [vmem:[%s1062_s23 + $0x10] sm:$0xff] %v996_v40  ;;  %1141 = vst [vmem:[%s1062_s23 + $0x18] sm:$0xff] %v997_v44  ;;  %v1000_v62 = vadd.f32 %v997_v44, %v996_v40  ;;  %v1003_v63 = vmul.f32 %v996_v40, %v996_v40  ;;  %v1004_v0 = vmul.f32 %v997_v44, %v997_v44 }
 0x20c   : > { %1001 = vadd.xlane.f32.xlu0 %v1000_v62  ;;  %v1005_v1 = vadd.f32 %v1004_v0, %v1003_v63 }
 0x20e   : > { %1006 = vadd.xlane.f32.xlu1 %v1005_v1 }
 0x299   : > { %v1002_v3 = vpop.xlane.xlu0 %1001 }
 0x29b   : > { %v1007_v4 = vpop.xlane.xlu1 %1006 }
 0x29c   : > { %v1008_v5 = vsel %vm628_vm4, %v1002_v3, %v1007_v4 }
 0x29d   : > { %1010 = vst.msk [vmem:[%s265_s28] sm:$0xff] %vm1009_vm9, %v1008_v5 }
 0x29e PF: > { %s18_s24 = sadd.s32 1, %s1170_s24  }
 0x29f   : > { %p15_p4 = scmp.ge.s32.totalorder %s18_s24, 4  }
 0x2a1   :  { %17 = sbr.rel (!%p15_p4) target bundleno = 1 (0x1), region = 97 }

// kernel: dense_block.10
= control target key start
LH: loop header
LB: loop body
LE: loop exit
PB: predicated region body
PF: predicated region fallthrough
CT: control target
= control target key end

     0   :  { %s699_s18 = smov 0   ;;  %s701_s19 = smov 0   ;;  %s758_s0 = inlined_call_operand.vmem [shape: f32[2,40,256], index: 0, kind: input, shape index: {}]   ;;  %s759_s1 = inlined_call_operand.vmem [shape: f32[16,1], index: 1, kind: input, shape index: {}]   ;;  %s760_s2 = inlined_call_operand.vmem [shape: f32[16,1], index: 2, kind: input, shape index: {}]   ;;  %s761_s3 = inlined_call_operand.vmem [shape: bf16[32,16], index: 3, kind: input, shape index: {}]   ;;  %s762_s4 = inlined_call_operand.vmem [shape: f32[2,32,256], index: 4, kind: output, shape index: {0}]   ;;  %s763_s5 = inlined_call_operand.vmem [shape: f32[2,1,32,2], index: 5, kind: output, shape index: {1}]  }
   0x1   :  { %s703_s20 = smov 0  }
   0x2 LB: > { %s28_s21 = sadd.s32 1, %s662_s19  ;;  %p598_p0 = scmp.ge.s32.totalorder %s666_s20, 1  ;;  %s666_s20 = sphi %s703_s20, %s16_s20   ;;  %s662_s19 = sphi %s701_s19, %s765_s19   ;;  %s658_s18 = sphi %s699_s18, %s764_s18  }
   0x3   : > { %p30_p1 = scmp.ge.s32.totalorder %s28_s21, 2  ;;  %p213_p2 = scmp.lt.s32.totalorder %s666_s20, 3 }
   0x5   : > { %s767_s21 = smov (%p30_p1, %s28_s21), 0  ;;  %p214_p3 = pnand %p598_p0, %p213_p2 }
   0x6   : > { %v308_v0 = vld [vmem:[%s760_s2] sm:$0xff] (!%p214_p3)  ;;  %v668_v2 = vmov (!%p214_p3), 0   ;;  %v309_v3 = vld [vmem:[%s760_s2 + $0x8] sm:$0xff] (!%p214_p3)  ;;  %p259_p4 = scmp.lt.s32.totalorder (!%p214_p3), %s658_s18, 1  ;;  %vm344_vm0 = vcmask (!%p214_p3), 130048   ;;  %vm444_vm1 = vcmask (!%p214_p3), 7168  }
   0x7   : > { %217 = sbr.rel (%p214_p3) target bundleno = 527 (0x20f), region = 36  ;;  %v292_v1 = vld [vmem:[%s759_s1] sm:$0xff] (!%p214_p3)  ;;  %641 = vset.pattern.permute.xlu1 (!%p214_p3), %v668_v2  ;;  %640 = vset.pattern.permute.xlu0 (!%p214_p3), %v668_v2  ;;  %v293_v4 = vld [vmem:[%s759_s1 + $0x8] sm:$0xff] (!%p214_p3)  ;;  %vm449_vm2 = vcmask (!%p214_p3), 15360  }
   0x8   : > { %312 = vperm.xlu1 (!%p214_p3), %641, %v308_v0   ;;  %296 = vperm.xlu0 (!%p214_p3), %640, %v292_v1   ;;  %v642_v27 = vld [vmem:[%s761_s3] sm:$0xff] (!%p214_p3)   ;;  %v643_v28 = vld [vmem:[%s761_s3 + $0x8] sm:$0xff] (!%p214_p3)  }
   0x9   : > { %383 = vmatprep.mubr.bf16.mxu0 (!%p214_p3), %v668_v2  ;;  %393 = vmatprep.mubr.bf16.mxu1 (!%p214_p3), %v668_v2 }
   0xc   : > { %317 = vperm.xlu1 (!%p214_p3), %641, %v309_v3   ;;  %301 = vperm.xlu0 (!%p214_p3), %640, %v293_v4  }
   0xe   : > { %s769_s18 = smov (!%p259_p4, %s658_s18), 1 }
   0xf   : > { %s614_s30 = smul.u32 80, %s769_s18  ;;  %s610_s13 = sshll.u32 %s769_s18, 6 }
  0x10   : > { %s276_s16 = scalar_lea.vmem %s762_s4, %s610_s13  ;;  %s611_s17 = sshll.u32 %s769_s18, 5 }
  0x11   : > { %s266_s8 = scalar_lea.vmem %s758_s0, %s614_s30  ;;  %s286_s24 = scalar_lea.vmem %s763_s5, %s611_s17 }
  0x12   : > { %v288_v5 = vld [vmem:[%s266_s8] sm:$0xff]  ;;  %v289_v6 = vld [vmem:[%s266_s8 + $0x8] sm:$0xff]  ;;  %v290_v11 = vld [vmem:[%s266_s8 + $0x10] sm:$0xff] }
  0x13   : > { %v291_v12 = vld [vmem:[%s266_s8 + $0x18] sm:$0xff] }
  0x87   : > { %v313_v7 = vpop.permute.xlu1 %312  ;;  %v297_v8 = vpop.permute.xlu0 %296 }
  0x88   : > { %v304_v9 = vmul.f32 %v297_v8, %v288_v5  ;;  %v305_v10 = vmul.f32 %v297_v8, %v289_v6 }
  0x8a   : > { %v320_v14 = vadd.f32 %v313_v7, %v304_v9  ;;  %v321_v15 = vadd.f32 %v313_v7, %v305_v10 }
  0x8b   : > { %v302_v13 = vpop.permute.xlu0 %301  ;;  %v318_v18 = vpop.permute.xlu1 %317 }
  0x8c   : > { %v306_v16 = vmul.f32 %v302_v13, %v290_v11  ;;  %v307_v17 = vmul.f32 %v302_v13, %v291_v12  ;;  %v325_v21 = vmax.f32 %v321_v15, 0.0  ;;  %v324_v23 = vmax.f32 %v320_v14, 0.0 }
  0x8e   : > { %v322_v19 = vadd.f32 %v318_v18, %v306_v16  ;;  %v323_v20 = vadd.f32 %v318_v18, %v307_v17 }
  0x90   : > { %v327_v22 = vmax.f32 %v323_v20, 0.0  ;;  %v326_v24 = vmax.f32 %v322_v19, 0.0 }
  0x92   : > { %v333_v25 = vpack.c.bf16 %v327_v22, %v325_v21  ;;  %v332_v26 = vpack.c.bf16 %v326_v24, %v324_v23 }
  0x94   : > { %351 = vmatprep.subr.bf16.mxu0 %v333_v25  ;;  %612 = vmatprep.subr.bf16.mxu1 %v333_v25 }
  0x95   : > { %352 = vmatpush1.bf16.msra.mxu0 %v332_v26  ;;  %613 = vmatpush1.bf16.msra.mxu1 %v332_v26 }
  0x98   : > { %606 = vmatmul.mubr.msk.bf16.vlgmr.msra.gmra.mrb[0].mxu0 %vm344_vm0, %v642_v27  ;;  %607 = vmatmul.mubr.msk.bf16.vlgmr.msra.gmra.mrb[0].mxu1 %vm344_vm0, %v643_v28 }
 0x16b   : > { %v385_v29 = vpop.f32.mrb[0].mxu0  ;;  %v395_v30 = vpop.f32.mrb[0].mxu1 }
 0x16c   : > { %404 = vst [vmem:[%s276_s16] sm:$0xff] %v385_v29  ;;  %v387_v31 = vpop.f32.mrb[1].mxu0  ;;  %408 = vst [vmem:[%s276_s16 + $0x20] sm:$0xff] %v395_v30  ;;  %v397_v32 = vpop.f32.mrb[1].mxu1  ;;  %v424_v33 = vmul.f32 %v385_v29, %v385_v29  ;;  %v428_v34 = vmul.f32 %v395_v30, %v395_v30 }
 0x16d   : > { %405 = vst [vmem:[%s276_s16 + $0x8] sm:$0xff] %v387_v31  ;;  %v389_v35 = vpop.f32.mrb[2].mxu0  ;;  %409 = vst [vmem:[%s276_s16 + $0x28] sm:$0xff] %v397_v32  ;;  %v399_v36 = vpop.f32.mrb[2].mxu1  ;;  %v412_v37 = vadd.f32 %v387_v31, %v385_v29  ;;  %v418_v38 = vadd.f32 %v397_v32, %v395_v30  ;;  %v425_v39 = vmul.f32 %v387_v31, %v387_v31 }
 0x16e   : > { %v429_v40 = vmul.f32 %v397_v32, %v397_v32  ;;  %406 = vst [vmem:[%s276_s16 + $0x10] sm:$0xff] %v389_v35  ;;  %v391_v41 = vpop.f32.mrb[3].mxu0  ;;  %410 = vst [vmem:[%s276_s16 + $0x30] sm:$0xff] %v399_v36  ;;  %v401_v42 = vpop.f32.mrb[3].mxu1  ;;  %v426_v43 = vmul.f32 %v389_v35, %v389_v35  ;;  %v430_v44 = vmul.f32 %v399_v36, %v399_v36 }
 0x16f   : > { %407 = vst [vmem:[%s276_s16 + $0x18] sm:$0xff] %v391_v41  ;;  %v427_v45 = vmul.f32 %v391_v41, %v391_v41  ;;  %411 = vst [vmem:[%s276_s16 + $0x38] sm:$0xff] %v401_v42  ;;  %v431_v46 = vmul.f32 %v401_v42, %v401_v42  ;;  %413 = vadd.xlane.f32.xlu0 %v412_v37  ;;  %v415_v47 = vadd.f32 %v391_v41, %v389_v35 }
 0x170   : > { %v432_v48 = vadd.f32 %v425_v39, %v424_v33  ;;  %v421_v49 = vadd.f32 %v401_v42, %v399_v36  ;;  %v438_v50 = vadd.f32 %v429_v40, %v428_v34 }
 0x171   : > { %416 = vadd.xlane.f32.xlu1 %v415_v47  ;;  %v435_v51 = vadd.f32 %v427_v45, %v426_v43  ;;  %v441_v52 = vadd.f32 %v431_v46, %v430_v44 }
 0x173   : > { %419 = vadd.xlane.f32.xlu0 %v418_v38 }
 0x175   : > { %433 = vadd.xlane.f32.xlu1 %v432_v48 }
 0x177   : > { %422 = vadd.xlane.f32.xlu0 %v421_v49 }
 0x179   : > { %439 = vadd.xlane.f32.xlu1 %v438_v50 }
 0x17b   : > { %436 = vadd.xlane.f32.xlu0 %v435_v51 }
 0x17f   : > { %442 = vadd.xlane.f32.xlu0 %v441_v52 }
 0x1fc   : > { %v414_v53 = vpop.xlane.xlu0 %413 }
 0x1fe   : > { %v417_v54 = vpop.xlane.xlu1 %416 }
 0x200   : > { %v420_v55 = vpop.xlane.xlu0 %419 }
 0x202   : > { %v434_v56 = vpop.xlane.xlu1 %433 }
 0x203   : > { %v445_v57 = vsel %vm444_vm1, %v414_v53, %v434_v56 }
 0x204   : > { %450 = vst.msk [vmem:[%s286_s24] sm:$0xff] %vm449_vm2, %v445_v57  ;;  %v423_v58 = vpop.xlane.xlu0 %422 }
 0x206   : > { %v440_v59 = vpop.xlane.xlu1 %439 }
 0x207   : > { %v447_v60 = vsel %vm444_vm1, %v420_v55, %v440_v59 }
 0x208   : > { %452 = vst.msk [vmem:[%s286_s24 + $0x10] sm:$0xff] %vm449_vm2, %v447_v60  ;;  %v437_v61 = vpop.xlane.xlu0 %436 }
 0x209   : > { %v446_v62 = vsel %vm444_vm1, %v417_v54, %v437_v61 }
 0x20a   : > { %451 = vst.msk [vmem:[%s286_s24 + $0x8] sm:$0xff] %vm449_vm2, %v446_v62 }
 0x20c   : > { %v443_v63 = vpop.xlane.xlu0 %442 }
 0x20d   : > { %v448_v0 = vsel %vm444_vm1, %v423_v58, %v443_v63 }
 0x20e   : > { %453 = vst.msk [vmem:[%s286_s24 + $0x18] sm:$0xff] %vm449_vm2, %v448_v0 }
 0x20f PF: > { %s16_s20 = sadd.s32 1, %s666_s20   ;;  %s764_s18 = smov %s662_s19 }
 0x210   : > { %p13_p5 = scmp.ge.s32.totalorder %s16_s20, 4   ;;  %s765_s19 = smov %s767_s21 }
 0x212   :  { %15 = sbr.rel (!%p13_p5) target bundleno = 2 (0x2), region = 78 }

// kernel: dense_block.11
= control target key start
LH: loop header
LB: loop body
LE: loop exit
PB: predicated region body
PF: predicated region fallthrough
CT: control target
= control target key end

     0   :  { %s1221_s24 = smov 0   ;;  %s1394_s0 = inlined_call_operand.vmem [shape: f32[2,32,256], index: 0, kind: input, shape index: {}]   ;;  %s1395_s1 = inlined_call_operand.vmem [shape: f32[32,1], index: 1, kind: input, shape index: {}]   ;;  %s1396_s2 = inlined_call_operand.vmem [shape: f32[32,1], index: 2, kind: input, shape index: {}]   ;;  %s1397_s3 = inlined_call_operand.vmem [shape: bf16[9,8,32], index: 3, kind: input, shape index: {}]   ;;  %s1398_s4 = inlined_call_operand.vmem [shape: f32[9,256], index: 4, kind: input, shape index: {}]   ;;  %s1399_s5 = inlined_call_operand.vmem [shape: f32[2,40,256], index: 5, kind: input, shape index: {}, may-alias: {5,6}]   ;;  %s1400_s6 = inlined_call_operand.vmem [shape: f32[2,40,256], index: 6, kind: output, shape index: {0}, may-alias: {5,6}]   ;;  %s1401_s7 = inlined_call_operand.vmem [shape: f32[2,8,2], index: 7, kind: output, shape index: {1}]  }
   0x1 LB: > { %s1107_s25 = sadd.s32 4294967295, %s1170_s24   ;;  %p1111_p0 = scmp.ge.s32.totalorder %s1170_s24, 1  ;;  %s1170_s24 = sphi %s1221_s24, %s18_s24  }
   0x2   : > { %p216_p1 = scmp.lt.s32.totalorder %s1170_s24, 3 }
   0x4   : > { %p217_p2 = pnand %p1111_p0, %p216_p1 }
   0x5   : > { %v307_v0 = vld [vmem:[%s1396_s2] sm:$0xff] (!%p217_p2)  ;;  %v1172_v2 = vmov (!%p217_p2), 0   ;;  %v308_v3 = vld [vmem:[%s1396_s2 + $0x8] sm:$0xff] (!%p217_p2)  ;;  %v278_v5 = vld [vmem:[%s1395_s1 + $0x18] sm:$0xff] (!%p217_p2)  ;;  %p251_p3 = scmp.lt.s32.totalorder (!%p217_p2), %s1107_s25, 1  ;;  %vm352_vm0 = vcmask (!%p217_p2), 261120  }
   0x6   : > { %220 = sbr.rel (%p217_p2) target bundleno = 670 (0x29e), region = 40  ;;  %v275_v1 = vld [vmem:[%s1395_s1] sm:$0xff] (!%p217_p2)  ;;  %1163 = vset.pattern.permute.xlu1 (!%p217_p2), %v1172_v2  ;;  %1162 = vset.pattern.permute.xlu0 (!%p217_p2), %v1172_v2  ;;  %v276_v4 = vld [vmem:[%s1395_s1 + $0x8] sm:$0xff] (!%p217_p2)  ;;  %v277_v6 = vld [vmem:[%s1395_s1 + $0x10] sm:$0xff] (!%p217_p2)  ;;  %s1174_s19 = smov (!%p217_p2), 16   ;;  %vm478_vm1 = vcmask (!%p217_p2), 130048  }
   0x7   : > { %313 = vperm.xlu1 (!%p217_p2), %1163, %v307_v0   ;;  %281 = vperm.xlu0 (!%p217_p2), %1162, %v275_v1   ;;  %v310_v7 = vld [vmem:[%s1396_s2 + $0x18] sm:$0xff] (!%p217_p2)  ;;  %v309_v8 = vld [vmem:[%s1396_s2 + $0x10] sm:$0xff] (!%p217_p2)  ;;  %v351_v53 = vld [vmem:[%s1397_s3] sm:$0xf] (!%p217_p2)  ;;  %s1175_s20 = smov (!%p217_p2), 15   ;;  %s1177_s22 = smov (!%p217_p2), 127  }
   0x8   : > { %388 = vmatprep.mubr.bf16.mxu0 (!%p217_p2), %v1172_v2  ;;  %462 = vmatprep.mubr.bf16.mxu1 (!%p217_p2), %v1172_v2  ;;  %v1117_v54 = vld [vmem:[%s1397_s3 + $0x4] sm:$0xf] (!%p217_p2)  ;;  %v1120_v55 = vld [vmem:[%s1397_s3 + $0x8] sm:$0xf] (!%p217_p2)  ;;  %v1123_v56 = vld [vmem:[%s1397_s3 + $0xc] sm:$0xf] (!%p217_p2) }
   0x9   : > { %v1126_v57 = vld [vmem:[%s1397_s3 + $0x10] sm:$0xf] (!%p217_p2)  ;;  %v1128_v58 = vld [vmem:[%s1397_s3 + $0x14] sm:$0xf] (!%p217_p2)  ;;  %v1131_v59 = vld [vmem:[%s1397_s3 + $0x18] sm:$0xf] (!%p217_p2) }
   0xa   : > { %v1134_v60 = vld [vmem:[%s1397_s3 + $0x1c] sm:$0xf] (!%p217_p2)  ;;  %v1137_v61 = vld [vmem:[%s1397_s3 + $0x20] sm:$0xf] (!%p217_p2)  ;;  %s1178_s23 = smov (!%p217_p2), 113   ;;  %s1179_s5 = smov (!%p217_p2), 112  }
   0xb   : > { %318 = vperm.xlu1 (!%p217_p2), %1163, %v308_v3   ;;  %286 = vperm.xlu0 (!%p217_p2), %1162, %v276_v4   ;;  %s1180_s26 = smov (!%p217_p2), 111   ;;  %vm404_vm2 = vcmask (!%p217_p2), 138240   ;;  %vm553_vm3 = vcmask (!%p217_p2), 121856   ;;  %vm628_vm4 = vcmask (!%p217_p2), 7168   ;;  %vm750_vm5 = vcmask (!%p217_p2), 1039360  }
   0xc   : > { %vm825_vm6 = vcmask (!%p217_p2), 924672   ;;  %vm900_vm7 = vcmask (!%p217_p2), 916480   ;;  %vm975_vm8 = vcmask (!%p217_p2), 908288   ;;  %vm1009_vm9 = vcmask (!%p217_p2), 15360  }
   0xd   : > { %s1403_s25 = smov (!%p251_p3, %s1107_s25), 1 }
   0xe   : > { %s1144_s18 = sshll.u32 %s1403_s25, 6 }
   0xf   : > { %296 = vperm.xlu1 %1163, %v278_v5   ;;  %291 = vperm.xlu0 %1162, %v277_v6   ;;  %s255_s21 = scalar_lea.vmem %s1394_s0, %s1144_s18  ;;  %s1173_s18 = smov 17  }
  0x10   : > { %v267_v9 = vld [vmem:[%s255_s21] sm:$0xff]  ;;  %v268_v10 = vld [vmem:[%s255_s21 + $0x8] sm:$0xff]  ;;  %v269_v15 = vld [vmem:[%s255_s21 + $0x10] sm:$0xff] }
  0x11   : > { %v270_v16 = vld [vmem:[%s255_s21 + $0x18] sm:$0xff]  ;;  %v273_v25 = vld [vmem:[%s255_s21 + $0x30] sm:$0xff]  ;;  %v271_v29 = vld [vmem:[%s255_s21 + $0x20] sm:$0xff] }
  0x12   : > { %v274_v26 = vld [vmem:[%s255_s21 + $0x38] sm:$0xff]  ;;  %v272_v30 = vld [vmem:[%s255_s21 + $0x28] sm:$0xff]  ;;  %s1176_s21 = smov 1  }
  0x13   : > { %328 = vperm.xlu1 %1163, %v310_v7   ;;  %323 = vperm.xlu0 %1162, %v309_v8  }
  0x86   : > { %v314_v11 = vpop.permute.xlu1 %313  ;;  %v282_v12 = vpop.permute.xlu0 %281 }
  0x87   : > { %v299_v13 = vmul.f32 %v282_v12, %v267_v9  ;;  %v300_v14 = vmul.f32 %v282_v12, %v268_v10 }
  0x89   : > { %v331_v19 = vadd.f32 %v314_v11, %v299_v13  ;;  %v332_v20 = vadd.f32 %v314_v11, %v300_v14 }
  0x8a   : > { %v319_v17 = vpop.permute.xlu1 %318  ;;  %v287_v18 = vpop.permute.xlu0 %286 }
  0x8b   : > { %v301_v21 = vmul.f32 %v287_v18, %v269_v15  ;;  %v302_v22 = vmul.f32 %v287_v18, %v270_v16  ;;  %v339_v31 = vmax.f32 %v331_v19, 0.0  ;;  %v340_v32 = vmax.f32 %v332_v20, 0.0 }
  0x8d   : > { %v333_v23 = vadd.f32 %v319_v17, %v301_v21  ;;  %v334_v24 = vadd.f32 %v319_v17, %v302_v22 }
  0x8e   : > { %v297_v27 = vpop.permute.xlu1 %296  ;;  %v292_v28 = vpop.permute.xlu0 %291 }
  0x8f   : > { %v341_v33 = vmax.f32 %v333_v23, 0.0  ;;  %v342_v34 = vmax.f32 %v334_v24, 0.0  ;;  %v305_v35 = vmul.f32 %v297_v27, %v273_v25  ;;  %v306_v36 = vmul.f32 %v297_v27, %v274_v26 }
  0x90   : > { %v303_v39 = vmul.f32 %v292_v28, %v271_v29  ;;  %v304_v40 = vmul.f32 %v292_v28, %v272_v30 }
  0x91   : > { %v1263_v37 = vpack.c.bf16 %v341_v33, %v339_v31  ;;  %v1265_v38 = vpack.c.bf16 %v342_v34, %v340_v32 }
  0x92   : > { %v329_v41 = vpop.permute.xlu1 %328  ;;  %v324_v42 = vpop.permute.xlu0 %323 }
  0x93   : > { %v337_v43 = vadd.f32 %v329_v41, %v305_v35  ;;  %v338_v44 = vadd.f32 %v329_v41, %v306_v36  ;;  %v335_v45 = vadd.f32 %v324_v42, %v303_v39  ;;  %v336_v46 = vadd.f32 %v324_v42, %v304_v40  ;;  %356 = vmatprep.subr.bf16.mxu0 %v1265_v38  ;;  %v1119_v41 = vld [vmem:[%s1398_s4 + $0x1] ss:$8 sm:$0x3] }
  0x94   : > { %430 = vmatprep.subr.bf16.mxu1 %v1265_v38  ;;  %357 = vmatpush1.bf16.msra.mxu0 %v1263_v37  ;;  %v411_v35 = vlaneseq }
  0x95   : > { %v345_v47 = vmax.f32 %v337_v43, 0.0  ;;  %v346_v48 = vmax.f32 %v338_v44, 0.0  ;;  %v343_v49 = vmax.f32 %v335_v45, 0.0  ;;  %v344_v50 = vmax.f32 %v336_v46, 0.0  ;;  %431 = vmatpush1.bf16.msra.mxu1 %v1263_v37 }
  0x96   : > { %v409_v43 = vld [vmem:[%s1398_s4] ss:$8 sm:$0x3]  ;;  %v1122_v46 = vld [vmem:[%s1398_s4 + $0x2] ss:$8 sm:$0x3] }
  0x97   : > { %v349_v51 = vpack.c.bf16 %v345_v47, %v343_v49  ;;  %v350_v52 = vpack.c.bf16 %v346_v48, %v344_v50 }
  0x99   : > { %358 = vmatprep.subr.bf16.mxu0 %v350_v52  ;;  %432 = vmatprep.subr.bf16.mxu1 %v350_v52 }
  0x9a   : > { %359 = vmatpush1.bf16.msra.mxu0 %v349_v51  ;;  %433 = vmatpush1.bf16.msra.mxu1 %v349_v51 }
  0x9b   : > { %505 = vmatprep.subr.bf16.mxu0 %v1265_v38  ;;  %580 = vmatprep.subr.bf16.mxu1 %v1265_v38 }
  0x9d   : > { %1116 = vmatmul.mubr.msk.bf16.vlgmr.msra.gmra.mrb[0].mxu0 %vm352_vm0, %v351_v53  ;;  %1118 = vmatmul.mubr.msk.bf16.vlgmr.msra.gmra.mrb[0].mxu1 %vm352_vm0, %v1117_v54 }
  0x9e   : > { %506 = vmatpush1.bf16.msra.mxu0 %v1263_v37  ;;  %581 = vmatpush1.bf16.msra.mxu1 %v1263_v37 }
  0x9f   : > { %507 = vmatprep.subr.bf16.mxu0 %v350_v52  ;;  %582 = vmatprep.subr.bf16.mxu1 %v350_v52 }
  0xa0   : > { %537 = vmatprep.mubr.bf16.mxu0 %v1172_v2  ;;  %612 = vmatprep.mubr.bf16.mxu1 %v1172_v2 }
  0xa2   : > { %508 = vmatpush1.bf16.msra.mxu0 %v349_v51  ;;  %583 = vmatpush1.bf16.msra.mxu1 %v349_v51 }
  0xa3   : > { %655 = vmatprep.subr.bf16.mxu0 %v1265_v38  ;;  %703 = vmatprep.subr.bf16.mxu1 %v1265_v38 }
  0xa5   : > { %1121 = vmatmul.mubr.msk.bf16.vlgmr.msra.gmra.mrb[4].mxu0 %vm352_vm0, %v1120_v55  ;;  %1124 = vmatmul.mubr.msk.bf16.vlgmr.msra.gmra.mrb[4].mxu1 %vm352_vm0, %v1123_v56 }
  0xa6   : > { %656 = vmatpush1.bf16.msra.mxu0 %v1263_v37  ;;  %704 = vmatpush1.bf16.msra.mxu1 %v1263_v37 }
  0xa7   : > { %657 = vmatprep.subr.bf16.mxu0 %v350_v52  ;;  %705 = vmatprep.subr.bf16.mxu1 %v350_v52 }
  0xa8   : > { %687 = vmatprep.mubr.bf16.mxu0 %v1172_v2  ;;  %735 = vmatprep.mubr.bf16.mxu1 %v1172_v2 }
  0xaa   : > { %658 = vmatpush1.bf16.msra.mxu0 %v349_v51  ;;  %706 = vmatpush1.bf16.msra.mxu1 %v349_v51 }
  0xab   : > { %778 = vmatprep.subr.bf16.mxu0 %v1265_v38  ;;  %853 = vmatprep.subr.bf16.mxu1 %v1265_v38 }
  0xad   : > { %1127 = vmatmul.mubr.msk.bf16.vlgmr.msra.gmra.mrb[8].mxu0 %vm352_vm0, %v1126_v57  ;;  %1129 = vmatmul.mubr.msk.bf16.vlgmr.msra.gmra.mrb[8].mxu1 %vm352_vm0, %v1128_v58 }
  0xae   : > { %779 = vmatpush1.bf16.msra.mxu0 %v1263_v37  ;;  %854 = vmatpush1.bf16.msra.mxu1 %v1263_v37 }
  0xaf   : > { %780 = vmatprep.subr.bf16.mxu0 %v350_v52  ;;  %855 = vmatprep.subr.bf16.mxu1 %v350_v52 }
  0xb0   : > { %810 = vmatprep.mubr.bf16.mxu0 %v1172_v2  ;;  %885 = vmatprep.mubr.bf16.mxu1 %v1172_v2 }
  0xb2   : > { %781 = vmatpush1.bf16.msra.mxu0 %v349_v51  ;;  %856 = vmatpush1.bf16.msra.mxu1 %v349_v51 }
  0xb3   : > { %928 = vmatprep.subr.bf16.mxu0 %v1265_v38 }
  0xb5   : > { %1132 = vmatmul.mubr.msk.bf16.vlgmr.msra.gmra.mrb[12].mxu0 %vm352_vm0, %v1131_v59  ;;  %1135 = vmatmul.mubr.msk.bf16.vlgmr.msra.gmra.mrb[12].mxu1 %vm352_vm0, %v1134_v60 }
  0xb6   : > { %929 = vmatpush1.bf16.msra.mxu0 %v1263_v37  ;;  %960 = vmatprep.mubr.bf16.mxu0 %v1172_v2  ;;  %v412_v37 = vshrl.u32 %v411_v35, 7 }
  0xb7   : > { %930 = vmatprep.subr.bf16.mxu0 %v350_v52  ;;  %v1125_v52 = vld [vmem:[%s1398_s4 + $0x3] ss:$8 sm:$0x3] }
  0xb8   : > { %v1332_v40 = vsub.s32 0, %v412_v37  ;;  %v1340_v44 = vsub.s32 1, %v412_v37 }
  0xba   : > { %931 = vmatpush1.bf16.msra.mxu0 %v349_v51  ;;  %v489_v47 = vrot.slane %v1119_v41, %v1332_v40  ;;  %v493_v48 = vrot.slane %v1119_v41, %v1340_v44  ;;  %v414_v49 = vrot.slane %v409_v43, %v1332_v40  ;;  %v418_v53 = vrot.slane %v409_v43, %v1340_v44 }
  0xbb   : > { %v564_v54 = vrot.slane %v1122_v46, %v1332_v40  ;;  %v568_v55 = vrot.slane %v1122_v46, %v1340_v44 }
  0xbd   : > { %1138 = vmatmul.mubr.msk.bf16.vlgmr.msra.gmra.mrb[16].mxu0 %vm352_vm0, %v1137_v61 }
 0x170   : > { %v390_v62 = vpop.f32.mrb[0].mxu0  ;;  %v464_v63 = vpop.f32.mrb[0].mxu1 }
 0x171   : > { %v392_v0 = vpop.f32.mrb[1].mxu0  ;;  %402 = vrot.lane.b32.xlu1 %v390_v62, %s1173_s18  ;;  %v466_v1 = vpop.f32.mrb[1].mxu1 }
 0x172   : > { %398 = vrot.lane.b32.xlu0 %v392_v0, %s1173_s18  ;;  %v394_v3 = vpop.f32.mrb[2].mxu0  ;;  %v468_v4 = vpop.f32.mrb[2].mxu1  ;;  %v639_v0 = vrot.slane %v1125_v52, %v1332_v40 }
 0x173   : > { %v395_v5 = vpop.f32.mrb[3].mxu0  ;;  %v469_v6 = vpop.f32.mrb[3].mxu1 }
 0x175   : > { %476 = vrot.lane.b32.xlu1 %v464_v63, %s1174_s19 }
 0x176   : > { %472 = vrot.lane.b32.xlu0 %v466_v1, %s1174_s19  ;;  %v643_v1 = vrot.slane %v1125_v52, %v1340_v44 }
 0x178   : > { %v539_v2 = vpop.f32.mrb[4].mxu0  ;;  %v614_v7 = vpop.f32.mrb[4].mxu1 }
 0x179   : > { %v541_v8 = vpop.f32.mrb[5].mxu0  ;;  %551 = vrot.lane.b32.xlu1 %v539_v2, %s1175_s20  ;;  %v616_v9 = vpop.f32.mrb[5].mxu1 }
 0x17a   : > { %547 = vrot.lane.b32.xlu0 %v541_v8, %s1175_s20  ;;  %v543_v10 = vpop.f32.mrb[6].mxu0  ;;  %v618_v11 = vpop.f32.mrb[6].mxu1  ;;  %s1114_s20 = smul.u32 80, %s1403_s25 }
 0x17b   : > { %v544_v12 = vpop.f32.mrb[7].mxu0  ;;  %v619_v13 = vpop.f32.mrb[7].mxu1 }
 0x17c   : > { %v1130_v12 = vld [vmem:[%s1398_s4 + $0x5] ss:$8 sm:$0x3] }
 0x17d   : > { %626 = vrot.lane.b32.xlu1 %v614_v7, %s1176_s21 }
 0x17e   : > { %622 = vrot.lane.b32.xlu0 %v616_v9, %s1176_s21 }
 0x180   : > { %v1328_v14 = vpop.f32.mrb[8].mxu0  ;;  %v737_v15 = vpop.f32.mrb[8].mxu1 }
 0x181   : > { %v1330_v16 = vpop.f32.mrb[9].mxu0  ;;  %v739_v17 = vpop.f32.mrb[9].mxu1 }
 0x182   : > { %748 = vrot.lane.b32.xlu1 %v739_v17, %s1177_s22  ;;  %746 = vrot.lane.b32.xlu0 %v737_v15, %s1177_s22  ;;  %v693_v18 = vpop.f32.mrb[10].mxu0  ;;  %v741_v19 = vpop.f32.mrb[10].mxu1 }
 0x183   : > { %v694_v20 = vpop.f32.mrb[11].mxu0  ;;  %v742_v21 = vpop.f32.mrb[11].mxu1  ;;  %v762_v19 = vrot.slane %v1130_v12, %v1332_v40 }
 0x184   : > { %v1133_v20 = vld [vmem:[%s1398_s4 + $0x6] ss:$8 sm:$0x3] }
 0x188   : > { %v812_v22 = vpop.f32.mrb[12].mxu0  ;;  %v887_v23 = vpop.f32.mrb[12].mxu1 }
 0x189   : > { %v814_v24 = vpop.f32.mrb[13].mxu0  ;;  %821 = vrot.lane.b32.xlu0 %v812_v22, %s1178_s23  ;;  %v889_v25 = vpop.f32.mrb[13].mxu1 }
 0x18a   : > { %823 = vrot.lane.b32.xlu1 %v814_v24, %s1178_s23  ;;  %v816_v26 = vpop.f32.mrb[14].mxu0  ;;  %v891_v27 = vpop.f32.mrb[14].mxu1  ;;  %v1136_v24 = vld [vmem:[%s1398_s4 + $0x7] ss:$8 sm:$0x3]  ;;  %s1062_s23 = scalar_lea.vmem %s1400_s6, %s1114_s20 }
 0x18b   : > { %v817_v28 = vpop.f32.mrb[15].mxu0  ;;  %v892_v29 = vpop.f32.mrb[15].mxu1 }
 0x18c   : > { %v837_v28 = vrot.slane %v1133_v20, %v1332_v40  ;;  %v841_v29 = vrot.slane %v1133_v20, %v1340_v44 }
 0x18d   : > { %896 = vrot.lane.b32.xlu0 %v887_v23, %s1179_s5  ;;  %v766_v23 = vrot.slane %v1130_v12, %v1340_v44 }
 0x18e   : > { %898 = vrot.lane.b32.xlu1 %v889_v25, %s1179_s5  ;;  %s1115_s5 = sshll.u32 %s1403_s25, 3 }
 0x18f   : > { %s265_s28 = scalar_lea.vmem %s1401_s7, %s1115_s5 }
 0x190   : > { %v962_v30 = vpop.f32.mrb[16].mxu0 }
 0x191   : > { %v964_v31 = vpop.f32.mrb[17].mxu0  ;;  %971 = vrot.lane.b32.xlu0 %v962_v30, %s1180_s26 }
 0x192   : > { %973 = vrot.lane.b32.xlu1 %v964_v31, %s1180_s26  ;;  %v966_v32 = vpop.f32.mrb[18].mxu0 }
 0x193   : > { %v967_v33 = vpop.f32.mrb[19].mxu0 }
 0x194   : > { %v912_v33 = vrot.slane %v1136_v24, %v1332_v40 }
 0x1e3   : > { %v403_v34 = vpop.permute.xlu1 %402 }
 0x1e4   : > { %v399_v36 = vpop.permute.xlu0 %398 }
 0x1e5   : > { %v405_v58 = vsel %vm404_vm2, %v403_v34, %v399_v36  ;;  %v408_v59 = vsel %vm404_vm2, %v399_v36, %v403_v34  ;;  %v916_v34 = vrot.slane %v1136_v24, %v1340_v44 }
 0x1e6   : > { %v421_v5 = vmul.f32 %v414_v49, %v408_v59  ;;  %v422_v6 = vmul.f32 %v418_v53, %v405_v58 }
 0x1e7   : > { %v477_v38 = vpop.permute.xlu1 %476 }
 0x1e8   : > { %v473_v39 = vpop.permute.xlu0 %472 }
 0x1e9   : > { %v479_v50 = vsel %vm478_vm1, %v477_v38, %v473_v39  ;;  %v482_v51 = vsel %vm478_vm1, %v473_v39, %v477_v38  ;;  %v1139_v39 = vld [vmem:[%s1398_s4 + $0x10] ss:$8 sm:$0x3] }
 0x1ea   : > { %v496_v62 = vmul.f32 %v489_v47, %v482_v51  ;;  %v497_v63 = vmul.f32 %v493_v48, %v479_v50 }
 0x1eb   : > { %v552_v42 = vpop.permute.xlu1 %551 }
 0x1ec   : > { %v548_v45 = vpop.permute.xlu0 %547  ;;  %v498_v8 = vadd.f32 %v496_v62, %v421_v5  ;;  %v499_v9 = vadd.f32 %v497_v63, %v422_v6 }
 0x1ed   : > { %v554_v60 = vsel %vm553_vm3, %v552_v42, %v548_v45  ;;  %v557_v61 = vsel %vm553_vm3, %v548_v45, %v552_v42 }
 0x1ee   : > { %v571_v2 = vmul.f32 %v564_v54, %v557_v61  ;;  %v572_v7 = vmul.f32 %v568_v55, %v554_v60 }
 0x1ef   : > { %v627_v56 = vpop.permute.xlu1 %626 }
 0x1f0   : > { %v623_v57 = vpop.permute.xlu0 %622  ;;  %v573_v15 = vadd.f32 %v571_v2, %v498_v8  ;;  %v574_v17 = vadd.f32 %v572_v7, %v499_v9 }
 0x1f1   : > { %v629_v3 = vsel %vm628_vm4, %v627_v56, %v623_v57  ;;  %v632_v4 = vsel %vm628_vm4, %v623_v57, %v627_v56 }
 0x1f2   : > { %v646_v10 = vmul.f32 %v639_v0, %v632_v4  ;;  %v647_v11 = vmul.f32 %v643_v1, %v629_v3 }
 0x1f4   : > { %v747_v13 = vpop.permute.xlu0 %746  ;;  %v749_v18 = vpop.permute.xlu1 %748  ;;  %v648_v21 = vadd.f32 %v646_v10, %v573_v15  ;;  %v649_v22 = vadd.f32 %v647_v11, %v574_v17 }
 0x1f5   : > { %v751_v25 = vsel %vm750_vm5, %v747_v13, %v749_v18  ;;  %v755_v26 = vsel %vm750_vm5, %v749_v18, %v747_v13 }
 0x1f6   : > { %v696_v35 = vadd.f32 %v1328_v14, %v648_v21  ;;  %v697_v36 = vadd.f32 %v1330_v16, %v649_v22  ;;  %v769_v37 = vmul.f32 %v762_v19, %v751_v25  ;;  %v770_v38 = vmul.f32 %v766_v23, %v755_v26 }
 0x1f7   : > { %v987_v14 = vrot.slane %v1139_v39, %v1332_v40  ;;  %v991_v16 = vrot.slane %v1139_v39, %v1340_v44 }
 0x1f8   : > { %v771_v48 = vadd.f32 %v769_v37, %v696_v35  ;;  %v772_v49 = vadd.f32 %v770_v38, %v697_v36 }
 0x1fb   : > { %v822_v27 = vpop.permute.xlu0 %821 }
 0x1fc   : > { %v824_v30 = vpop.permute.xlu1 %823 }
 0x1fd   : > { %v826_v31 = vsel %vm825_vm6, %v822_v27, %v824_v30  ;;  %v830_v32 = vsel %vm825_vm6, %v824_v30, %v822_v27 }
 0x1fe   : > { %v844_v42 = vmul.f32 %v837_v28, %v826_v31  ;;  %v845_v43 = vmul.f32 %v841_v29, %v830_v32 }
 0x1ff   : > { %v897_v41 = vpop.permute.xlu0 %896 }
 0x200   : > { %v899_v45 = vpop.permute.xlu1 %898  ;;  %v846_v53 = vadd.f32 %v844_v42, %v771_v48  ;;  %v847_v54 = vadd.f32 %v845_v43, %v772_v49 }
 0x201   : > { %v901_v46 = vsel %vm900_vm7, %v897_v41, %v899_v45  ;;  %v905_v47 = vsel %vm900_vm7, %v899_v45, %v897_v41 }
 0x202   : > { %v919_v50 = vmul.f32 %v912_v33, %v901_v46  ;;  %v920_v51 = vmul.f32 %v916_v34, %v905_v47 }
 0x203   : > { %v972_v52 = vpop.permute.xlu0 %971 }
 0x204   : > { %v974_v55 = vpop.permute.xlu1 %973  ;;  %v921_v58 = vadd.f32 %v919_v50, %v846_v53  ;;  %v922_v59 = vadd.f32 %v920_v51, %v847_v54 }
 0x205   : > { %v976_v56 = vsel %vm975_vm8, %v972_v52, %v974_v55  ;;  %v980_v57 = vsel %vm975_vm8, %v974_v55, %v972_v52 }
 0x206   : > { %v994_v60 = vmul.f32 %v987_v14, %v976_v56  ;;  %v995_v61 = vmul.f32 %v991_v16, %v980_v57 }
 0x208   : > { %v996_v40 = vadd.f32 %v994_v60, %v921_v58  ;;  %v997_v44 = vadd.f32 %v995_v61, %v922_v59 }
 0x20a   : > { %1140 = vst [vmem:[%s1062_s23 + $0x20] sm:$0xff] %v996_v40  ;;  %1141 = vst [vmem:[%s1062_s23 + $0x28] sm:$0xff] %v997_v44  ;;  %v1000_v62 = vadd.f32 %v997_v44, %v996_v40  ;;  %v1003_v63 = vmul.f32 %v996_v40, %v996_v40  ;;  %v1004_v0 = vmul.f32 %v997_v44, %v997_v44 }
 0x20c   : > { %1001 = vadd.xlane.f32.xlu0 %v1000_v62  ;;  %v1005_v1 = vadd.f32 %v1004_v0, %v1003_v63 }
 0x20e   : > { %1006 = vadd.xlane.f32.xlu1 %v1005_v1 }
 0x299   : > { %v1002_v3 = vpop.xlane.xlu0 %1001 }
 0x29b   : > { %v1007_v4 = vpop.xlane.xlu1 %1006 }
 0x29c   : > { %v1008_v5 = vsel %vm628_vm4, %v1002_v3, %v1007_v4 }
 0x29d   : > { %1010 = vst.msk [vmem:[%s265_s28] sm:$0xff] %vm1009_vm9, %v1008_v5 }
 0x29e PF: > { %s18_s24 = sadd.s32 1, %s1170_s24  }
 0x29f   : > { %p15_p4 = scmp.ge.s32.totalorder %s18_s24, 4  }
 0x2a1   :  { %17 = sbr.rel (!%p15_p4) target bundleno = 1 (0x1), region = 97 }

// kernel: dense_block.12
= control target key start
LH: loop header
LB: loop body
LE: loop exit
PB: predicated region body
PF: predicated region fallthrough
CT: control target
= control target key end

     0   :  { %s731_s18 = smov 0   ;;  %s733_s19 = smov 0   ;;  %s796_s0 = inlined_call_operand.vmem [shape: f32[2,40,256], index: 0, kind: input, shape index: {}]   ;;  %s797_s1 = inlined_call_operand.vmem [shape: f32[24,1], index: 1, kind: input, shape index: {}]   ;;  %s798_s2 = inlined_call_operand.vmem [shape: f32[24,1], index: 2, kind: input, shape index: {}]   ;;  %s799_s3 = inlined_call_operand.vmem [shape: bf16[32,24], index: 3, kind: input, shape index: {}]   ;;  %s800_s4 = inlined_call_operand.vmem [shape: f32[2,32,256], index: 4, kind: output, shape index: {0}]   ;;  %s801_s5 = inlined_call_operand.vmem [shape: f32[2,1,32,2], index: 5, kind: output, shape index: {1}]  }
   0x1   :  { %s735_s20 = smov 0  }
   0x2 LB: > { %s28_s21 = sadd.s32 1, %s694_s19  ;;  %p627_p0 = scmp.ge.s32.totalorder %s698_s20, 1  ;;  %s698_s20 = sphi %s735_s20, %s16_s20   ;;  %s694_s19 = sphi %s733_s19, %s803_s19   ;;  %s690_s18 = sphi %s731_s18, %s802_s18  }
   0x3   : > { %p30_p1 = scmp.ge.s32.totalorder %s28_s21, 2  ;;  %p213_p2 = scmp.lt.s32.totalorder %s698_s20, 3 }
   0x5   : > { %s805_s21 = smov (%p30_p1, %s28_s21), 0  ;;  %p214_p3 = pnand %p627_p0, %p213_p2 }
   0x6   : > { %v318_v0 = vld [vmem:[%s798_s2] sm:$0xff] (!%p214_p3)  ;;  %v700_v2 = vmov (!%p214_p3), 0   ;;  %v319_v3 = vld [vmem:[%s798_s2 + $0x8] sm:$0xff] (!%p214_p3)  ;;  %v320_v5 = vld [vmem:[%s798_s2 + $0x10] sm:$0xff] (!%p214_p3)  ;;  %p259_p4 = scmp.lt.s32.totalorder (!%p214_p3), %s690_s18, 1  ;;  %vm373_vm0 = vcmask (!%p214_p3), 1043456  }
   0x7   : > { %217 = sbr.rel (%p214_p3) target bundleno = 531 (0x213), region = 36  ;;  %v294_v1 = vld [vmem:[%s797_s1] sm:$0xff] (!%p214_p3)  ;;  %673 = vset.pattern.permute.xlu1 (!%p214_p3), %v700_v2  ;;  %672 = vset.pattern.permute.xlu0 (!%p214_p3), %v700_v2  ;;  %v295_v4 = vld [vmem:[%s797_s1 + $0x8] sm:$0xff] (!%p214_p3)  ;;  %v296_v6 = vld [vmem:[%s797_s1 + $0x10] sm:$0xff] (!%p214_p3)  ;;  %vm366_vm1 = vcmask (!%p214_p3), 195584   ;;  %vm473_vm2 = vcmask (!%p214_p3), 7168  }
   0x8   : > { %323 = vperm.xlu1 (!%p214_p3), %673, %v318_v0   ;;  %299 = vperm.xlu0 (!%p214_p3), %672, %v294_v1   ;;  %v674_v42 = vld [vmem:[%s799_s3] sm:$0xff] (!%p214_p3)   ;;  %v675_v43 = vld [vmem:[%s799_s3 + $0x8] sm:$0xff] (!%p214_p3)   ;;  %vm478_vm3 = vcmask (!%p214_p3), 15360  }
   0x9   : > { %412 = vmatprep.mubr.bf16.mxu0 (!%p214_p3), %v700_v2  ;;  %422 = vmatprep.mubr.bf16.mxu1 (!%p214_p3), %v700_v2 }
   0xc   : > { %328 = vperm.xlu1 (!%p214_p3), %673, %v319_v3   ;;  %304 = vperm.xlu0 (!%p214_p3), %672, %v295_v4  }
   0xe   : > { %s807_s18 = smov (!%p259_p4, %s690_s18), 1 }
   0xf   : > { %s646_s9 = smul.u32 80, %s807_s18  ;;  %s640_s17 = sshll.u32 %s807_s18, 6 }
  0x10   : > { %333 = vperm.xlu1 %673, %v320_v5   ;;  %309 = vperm.xlu0 %672, %v296_v6   ;;  %s276_s24 = scalar_lea.vmem %s800_s4, %s640_s17  ;;  %s641_s25 = sshll.u32 %s807_s18, 5 }
  0x11   : > { %s266_s12 = scalar_lea.vmem %s796_s0, %s646_s9  ;;  %s286_s28 = scalar_lea.vmem %s801_s5, %s641_s25 }
  0x12   : > { %v288_v7 = vld [vmem:[%s266_s12] sm:$0xff]  ;;  %v289_v8 = vld [vmem:[%s266_s12 + $0x8] sm:$0xff]  ;;  %v290_v13 = vld [vmem:[%s266_s12 + $0x10] sm:$0xff] }
  0x13   : > { %v291_v14 = vld [vmem:[%s266_s12 + $0x18] sm:$0xff]  ;;  %v292_v21 = vld [vmem:[%s266_s12 + $0x20] sm:$0xff]  ;;  %v293_v22 = vld [vmem:[%s266_s12 + $0x28] sm:$0xff] }
  0x87   : > { %v324_v9 = vpop.permute.xlu1 %323  ;;  %v300_v10 = vpop.permute.xlu0 %299 }
  0x88   : > { %v312_v11 = vmul.f32 %v300_v10, %v288_v7  ;;  %v313_v12 = vmul.f32 %v300_v10, %v289_v8 }
  0x8a   : > { %v336_v15 = vadd.f32 %v324_v9, %v312_v11  ;;  %v337_v16 = vadd.f32 %v324_v9, %v313_v12 }
  0x8b   : > { %v329_v17 = vpop.permute.xlu1 %328  ;;  %v305_v18 = vpop.permute.xlu0 %304 }
  0x8c   : > { %v314_v19 = vmul.f32 %v305_v18, %v290_v13  ;;  %v315_v20 = vmul.f32 %v305_v18, %v291_v14  ;;  %v343_v26 = vmax.f32 %v337_v16, 0.0  ;;  %v342_v27 = vmax.f32 %v336_v15, 0.0 }
  0x8e   : > { %v338_v23 = vadd.f32 %v329_v17, %v314_v19  ;;  %v339_v24 = vadd.f32 %v329_v17, %v315_v20 }
  0x8f   : > { %v310_v25 = vpop.permute.xlu0 %309  ;;  %v334_v32 = vpop.permute.xlu1 %333 }
  0x90   : > { %v316_v28 = vmul.f32 %v310_v25, %v292_v21  ;;  %v317_v29 = vmul.f32 %v310_v25, %v293_v22  ;;  %v345_v30 = vmax.f32 %v339_v24, 0.0  ;;  %v344_v31 = vmax.f32 %v338_v23, 0.0 }
  0x92   : > { %v340_v33 = vadd.f32 %v334_v32, %v316_v28  ;;  %v341_v34 = vadd.f32 %v334_v32, %v317_v29  ;;  %v353_v35 = vpack.c.bf16 %v345_v30, %v343_v26  ;;  %v352_v36 = vpack.c.bf16 %v344_v31, %v342_v27 }
  0x94   : > { %v347_v37 = vmax.f32 %v341_v34, 0.0  ;;  %380 = vmatprep.subr.bf16.mxu0 %v353_v35  ;;  %642 = vmatprep.subr.bf16.mxu1 %v353_v35  ;;  %v346_v38 = vmax.f32 %v340_v33, 0.0 }
  0x95   : > { %381 = vmatpush1.bf16.msra.mxu0 %v352_v36  ;;  %644 = vmatpush1.bf16.msra.mxu1 %v352_v36 }
  0x96   : > { %v355_v39 = vpack.c.bf16 %v347_v37, %v347_v37  ;;  %v354_v40 = vpack.c.bf16 %v346_v38, %v346_v38 }
  0x98   : > { %635 = vmatprep.subr.msk.bf16.mxu0 %vm373_vm0, %v355_v39  ;;  %643 = vmatprep.subr.msk.bf16.mxu1 %vm373_vm0, %v355_v39  ;;  %v375_v41 = vsel %vm373_vm0, %v354_v40, 0 }
  0x99   : > { %383 = vmatpush1.bf16.msra.mxu0 %v375_v41  ;;  %645 = vmatpush1.bf16.msra.mxu1 %v375_v41 }
  0x9c   : > { %636 = vmatmul.mubr.msk.bf16.vlgmr.msra.gmra.mrb[0].mxu0 %vm366_vm1, %v674_v42  ;;  %637 = vmatmul.mubr.msk.bf16.vlgmr.msra.gmra.mrb[0].mxu1 %vm366_vm1, %v675_v43 }
 0x16f   : > { %v414_v44 = vpop.f32.mrb[0].mxu0  ;;  %v424_v45 = vpop.f32.mrb[0].mxu1 }
 0x170   : > { %433 = vst [vmem:[%s276_s24] sm:$0xff] %v414_v44  ;;  %v416_v46 = vpop.f32.mrb[1].mxu0  ;;  %437 = vst [vmem:[%s276_s24 + $0x20] sm:$0xff] %v424_v45  ;;  %v426_v47 = vpop.f32.mrb[1].mxu1  ;;  %v453_v48 = vmul.f32 %v414_v44, %v414_v44  ;;  %v457_v49 = vmul.f32 %v424_v45, %v424_v45 }
 0x171   : > { %434 = vst [vmem:[%s276_s24 + $0x8] sm:$0xff] %v416_v46  ;;  %v418_v50 = vpop.f32.mrb[2].mxu0  ;;  %438 = vst [vmem:[%s276_s24 + $0x28] sm:$0xff] %v426_v47  ;;  %v428_v51 = vpop.f32.mrb[2].mxu1  ;;  %v441_v52 = vadd.f32 %v416_v46, %v414_v44  ;;  %v447_v53 = vadd.f32 %v426_v47, %v424_v45  ;;  %v454_v54 = vmul.f32 %v416_v46, %v416_v46 }
 0x172   : > { %v458_v55 = vmul.f32 %v426_v47, %v426_v47  ;;  %435 = vst [vmem:[%s276_s24 + $0x10] sm:$0xff] %v418_v50  ;;  %v420_v56 = vpop.f32.mrb[3].mxu0  ;;  %439 = vst [vmem:[%s276_s24 + $0x30] sm:$0xff] %v428_v51  ;;  %v430_v57 = vpop.f32.mrb[3].mxu1  ;;  %v455_v58 = vmul.f32 %v418_v50, %v418_v50  ;;  %v459_v59 = vmul.f32 %v428_v51, %v428_v51 }
 0x173   : > { %436 = vst [vmem:[%s276_s24 + $0x18] sm:$0xff] %v420_v56  ;;  %v456_v60 = vmul.f32 %v420_v56, %v420_v56  ;;  %440 = vst [vmem:[%s276_s24 + $0x38] sm:$0xff] %v430_v57  ;;  %v460_v61 = vmul.f32 %v430_v57, %v430_v57  ;;  %442 = vadd.xlane.f32.xlu0 %v441_v52  ;;  %v444_v62 = vadd.f32 %v420_v56, %v418_v50 }
 0x174   : > { %v461_v63 = vadd.f32 %v454_v54, %v453_v48  ;;  %v450_v0 = vadd.f32 %v430_v57, %v428_v51  ;;  %v467_v1 = vadd.f32 %v458_v55, %v457_v49 }
 0x175   : > { %445 = vadd.xlane.f32.xlu1 %v444_v62  ;;  %v464_v2 = vadd.f32 %v456_v60, %v455_v58  ;;  %v470_v3 = vadd.f32 %v460_v61, %v459_v59 }
 0x177   : > { %448 = vadd.xlane.f32.xlu0 %v447_v53 }
 0x179   : > { %462 = vadd.xlane.f32.xlu1 %v461_v63 }
 0x17b   : > { %451 = vadd.xlane.f32.xlu0 %v450_v0 }
 0x17d   : > { %468 = vadd.xlane.f32.xlu1 %v467_v1 }
 0x17f   : > { %465 = vadd.xlane.f32.xlu0 %v464_v2 }
 0x183   : > { %471 = vadd.xlane.f32.xlu0 %v470_v3 }
 0x200   : > { %v443_v4 = vpop.xlane.xlu0 %442 }
 0x202   : > { %v446_v5 = vpop.xlane.xlu1 %445 }
 0x204   : > { %v449_v6 = vpop.xlane.xlu0 %448 }
 0x206   : > { %v463_v7 = vpop.xlane.xlu1 %462 }
 0x207   : > { %v474_v8 = vsel %vm473_vm2, %v443_v4, %v463_v7 }
 0x208   : > { %479 = vst.msk [vmem:[%s286_s28] sm:$0xff] %vm478_vm3, %v474_v8  ;;  %v452_v9 = vpop.xlane.xlu0 %451 }
 0x20a   : > { %v469_v10 = vpop.xlane.xlu1 %468 }
 0x20b   : > { %v476_v11 = vsel %vm473_vm2, %v449_v6, %v469_v10 }
 0x20c   : > { %481 = vst.msk [vmem:[%s286_s28 + $0x10] sm:$0xff] %vm478_vm3, %v476_v11  ;;  %v466_v12 = vpop.xlane.xlu0 %465 }
 0x20d   : > { %v475_v13 = vsel %vm473_vm2, %v446_v5, %v466_v12 }
 0x20e   : > { %480 = vst.msk [vmem:[%s286_s28 + $0x8] sm:$0xff] %vm478_vm3, %v475_v13 }
 0x210   : > { %v472_v14 = vpop.xlane.xlu0 %471 }
 0x211   : > { %v477_v15 = vsel %vm473_vm2, %v452_v9, %v472_v14 }
 0x212   : > { %482 = vst.msk [vmem:[%s286_s28 + $0x18] sm:$0xff] %vm478_vm3, %v477_v15 }
 0x213 PF: > { %s16_s20 = sadd.s32 1, %s698_s20   ;;  %s802_s18 = smov %s694_s19 }
 0x214   : > { %p13_p5 = scmp.ge.s32.totalorder %s16_s20, 4   ;;  %s803_s19 = smov %s805_s21 }
 0x216   :  { %15 = sbr.rel (!%p13_p5) target bundleno = 2 (0x2), region = 78 }

// kernel: dense_block.13
= control target key start
LH: loop header
LB: loop body
LE: loop exit
PB: predicated region body
PF: predicated region fallthrough
CT: control target
= control target key end

     0   :  { %s1221_s24 = smov 0   ;;  %s1394_s0 = inlined_call_operand.vmem [shape: f32[2,32,256], index: 0, kind: input, shape index: {}]   ;;  %s1395_s1 = inlined_call_operand.vmem [shape: f32[32,1], index: 1, kind: input, shape index: {}]   ;;  %s1396_s2 = inlined_call_operand.vmem [shape: f32[32,1], index: 2, kind: input, shape index: {}]   ;;  %s1397_s3 = inlined_call_operand.vmem [shape: bf16[9,8,32], index: 3, kind: input, shape index: {}]   ;;  %s1398_s4 = inlined_call_operand.vmem [shape: f32[9,256], index: 4, kind: input, shape index: {}]   ;;  %s1399_s5 = inlined_call_operand.vmem [shape: f32[2,40,256], index: 5, kind: input, shape index: {}, may-alias: {5,6}]   ;;  %s1400_s6 = inlined_call_operand.vmem [shape: f32[2,40,256], index: 6, kind: output, shape index: {0}, may-alias: {5,6}]   ;;  %s1401_s7 = inlined_call_operand.vmem [shape: f32[2,8,2], index: 7, kind: output, shape index: {1}]  }
   0x1 LB: > { %s1107_s25 = sadd.s32 4294967295, %s1170_s24   ;;  %p1111_p0 = scmp.ge.s32.totalorder %s1170_s24, 1  ;;  %s1170_s24 = sphi %s1221_s24, %s18_s24  }
   0x2   : > { %p216_p1 = scmp.lt.s32.totalorder %s1170_s24, 3 }
   0x4   : > { %p217_p2 = pnand %p1111_p0, %p216_p1 }
   0x5   : > { %v307_v0 = vld [vmem:[%s1396_s2] sm:$0xff] (!%p217_p2)  ;;  %v1172_v2 = vmov (!%p217_p2), 0   ;;  %v308_v3 = vld [vmem:[%s1396_s2 + $0x8] sm:$0xff] (!%p217_p2)  ;;  %v278_v5 = vld [vmem:[%s1395_s1 + $0x18] sm:$0xff] (!%p217_p2)  ;;  %p251_p3 = scmp.lt.s32.totalorder (!%p217_p2), %s1107_s25, 1  ;;  %vm352_vm0 = vcmask (!%p217_p2), 261120  }
   0x6   : > { %220 = sbr.rel (%p217_p2) target bundleno = 670 (0x29e), region = 40  ;;  %v275_v1 = vld [vmem:[%s1395_s1] sm:$0xff] (!%p217_p2)  ;;  %1163 = vset.pattern.permute.xlu1 (!%p217_p2), %v1172_v2  ;;  %1162 = vset.pattern.permute.xlu0 (!%p217_p2), %v1172_v2  ;;  %v276_v4 = vld [vmem:[%s1395_s1 + $0x8] sm:$0xff] (!%p217_p2)  ;;  %v277_v6 = vld [vmem:[%s1395_s1 + $0x10] sm:$0xff] (!%p217_p2)  ;;  %s1174_s19 = smov (!%p217_p2), 16   ;;  %vm478_vm1 = vcmask (!%p217_p2), 130048  }
   0x7   : > { %313 = vperm.xlu1 (!%p217_p2), %1163, %v307_v0   ;;  %281 = vperm.xlu0 (!%p217_p2), %1162, %v275_v1   ;;  %v310_v7 = vld [vmem:[%s1396_s2 + $0x18] sm:$0xff] (!%p217_p2)  ;;  %v309_v8 = vld [vmem:[%s1396_s2 + $0x10] sm:$0xff] (!%p217_p2)  ;;  %v351_v53 = vld [vmem:[%s1397_s3] sm:$0xf] (!%p217_p2)  ;;  %s1175_s20 = smov (!%p217_p2), 15   ;;  %s1177_s22 = smov (!%p217_p2), 127  }
   0x8   : > { %388 = vmatprep.mubr.bf16.mxu0 (!%p217_p2), %v1172_v2  ;;  %462 = vmatprep.mubr.bf16.mxu1 (!%p217_p2), %v1172_v2  ;;  %v1117_v54 = vld [vmem:[%s1397_s3 + $0x4] sm:$0xf] (!%p217_p2)  ;;  %v1120_v55 = vld [vmem:[%s1397_s3 + $0x8] sm:$0xf] (!%p217_p2)  ;;  %v1123_v56 = vld [vmem:[%s1397_s3 + $0xc] sm:$0xf] (!%p217_p2) }
   0x9   : > { %v1126_v57 = vld [vmem:[%s1397_s3 + $0x10] sm:$0xf] (!%p217_p2)  ;;  %v1128_v58 = vld [vmem:[%s1397_s3 + $0x14] sm:$0xf] (!%p217_p2)  ;;  %v1131_v59 = vld [vmem:[%s1397_s3 + $0x18] sm:$0xf] (!%p217_p2) }
   0xa   : > { %v1134_v60 = vld [vmem:[%s1397_s3 + $0x1c] sm:$0xf] (!%p217_p2)  ;;  %v1137_v61 = vld [vmem:[%s1397_s3 + $0x20] sm:$0xf] (!%p217_p2)  ;;  %s1178_s23 = smov (!%p217_p2), 113   ;;  %s1179_s5 = smov (!%p217_p2), 112  }
   0xb   : > { %318 = vperm.xlu1 (!%p217_p2), %1163, %v308_v3   ;;  %286 = vperm.xlu0 (!%p217_p2), %1162, %v276_v4   ;;  %s1180_s26 = smov (!%p217_p2), 111   ;;  %vm404_vm2 = vcmask (!%p217_p2), 138240   ;;  %vm553_vm3 = vcmask (!%p217_p2), 121856   ;;  %vm628_vm4 = vcmask (!%p217_p2), 7168   ;;  %vm750_vm5 = vcmask (!%p217_p2), 1039360  }
   0xc   : > { %vm825_vm6 = vcmask (!%p217_p2), 924672   ;;  %vm900_vm7 = vcmask (!%p217_p2), 916480   ;;  %vm975_vm8 = vcmask (!%p217_p2), 908288   ;;  %vm1009_vm9 = vcmask (!%p217_p2), 15360  }
   0xd   : > { %s1403_s25 = smov (!%p251_p3, %s1107_s25), 1 }
   0xe   : > { %s1144_s18 = sshll.u32 %s1403_s25, 6 }
   0xf   : > { %296 = vperm.xlu1 %1163, %v278_v5   ;;  %291 = vperm.xlu0 %1162, %v277_v6   ;;  %s255_s21 = scalar_lea.vmem %s1394_s0, %s1144_s18  ;;  %s1173_s18 = smov 17  }
  0x10   : > { %v267_v9 = vld [vmem:[%s255_s21] sm:$0xff]  ;;  %v268_v10 = vld [vmem:[%s255_s21 + $0x8] sm:$0xff]  ;;  %v269_v15 = vld [vmem:[%s255_s21 + $0x10] sm:$0xff] }
  0x11   : > { %v270_v16 = vld [vmem:[%s255_s21 + $0x18] sm:$0xff]  ;;  %v273_v25 = vld [vmem:[%s255_s21 + $0x30] sm:$0xff]  ;;  %v271_v29 = vld [vmem:[%s255_s21 + $0x20] sm:$0xff] }
  0x12   : > { %v274_v26 = vld [vmem:[%s255_s21 + $0x38] sm:$0xff]  ;;  %v272_v30 = vld [vmem:[%s255_s21 + $0x28] sm:$0xff]  ;;  %s1176_s21 = smov 1  }
  0x13   : > { %328 = vperm.xlu1 %1163, %v310_v7   ;;  %323 = vperm.xlu0 %1162, %v309_v8  }
  0x86   : > { %v314_v11 = vpop.permute.xlu1 %313  ;;  %v282_v12 = vpop.permute.xlu0 %281 }
  0x87   : > { %v299_v13 = vmul.f32 %v282_v12, %v267_v9  ;;  %v300_v14 = vmul.f32 %v282_v12, %v268_v10 }
  0x89   : > { %v331_v19 = vadd.f32 %v314_v11, %v299_v13  ;;  %v332_v20 = vadd.f32 %v314_v11, %v300_v14 }
  0x8a   : > { %v319_v17 = vpop.permute.xlu1 %318  ;;  %v287_v18 = vpop.permute.xlu0 %286 }
  0x8b   : > { %v301_v21 = vmul.f32 %v287_v18, %v269_v15  ;;  %v302_v22 = vmul.f32 %v287_v18, %v270_v16  ;;  %v339_v31 = vmax.f32 %v331_v19, 0.0  ;;  %v340_v32 = vmax.f32 %v332_v20, 0.0 }
  0x8d   : > { %v333_v23 = vadd.f32 %v319_v17, %v301_v21  ;;  %v334_v24 = vadd.f32 %v319_v17, %v302_v22 }
  0x8e   : > { %v297_v27 = vpop.permute.xlu1 %296  ;;  %v292_v28 = vpop.permute.xlu0 %291 }
  0x8f   : > { %v341_v33 = vmax.f32 %v333_v23, 0.0  ;;  %v342_v34 = vmax.f32 %v334_v24, 0.0  ;;  %v305_v35 = vmul.f32 %v297_v27, %v273_v25  ;;  %v306_v36 = vmul.f32 %v297_v27, %v274_v26 }
  0x90   : > { %v303_v39 = vmul.f32 %v292_v28, %v271_v29  ;;  %v304_v40 = vmul.f32 %v292_v28, %v272_v30 }
  0x91   : > { %v1263_v37 = vpack.c.bf16 %v341_v33, %v339_v31  ;;  %v1265_v38 = vpack.c.bf16 %v342_v34, %v340_v32 }
  0x92   : > { %v329_v41 = vpop.permute.xlu1 %328  ;;  %v324_v42 = vpop.permute.xlu0 %323 }
  0x93   : > { %v337_v43 = vadd.f32 %v329_v41, %v305_v35  ;;  %v338_v44 = vadd.f32 %v329_v41, %v306_v36  ;;  %v335_v45 = vadd.f32 %v324_v42, %v303_v39  ;;  %v336_v46 = vadd.f32 %v324_v42, %v304_v40  ;;  %356 = vmatprep.subr.bf16.mxu0 %v1265_v38  ;;  %v1119_v41 = vld [vmem:[%s1398_s4 + $0x1] ss:$8 sm:$0x3] }
  0x94   : > { %430 = vmatprep.subr.bf16.mxu1 %v1265_v38  ;;  %357 = vmatpush1.bf16.msra.mxu0 %v1263_v37  ;;  %v411_v35 = vlaneseq }
  0x95   : > { %v345_v47 = vmax.f32 %v337_v43, 0.0  ;;  %v346_v48 = vmax.f32 %v338_v44, 0.0  ;;  %v343_v49 = vmax.f32 %v335_v45, 0.0  ;;  %v344_v50 = vmax.f32 %v336_v46, 0.0  ;;  %431 = vmatpush1.bf16.msra.mxu1 %v1263_v37 }
  0x96   : > { %v409_v43 = vld [vmem:[%s1398_s4] ss:$8 sm:$0x3]  ;;  %v1122_v46 = vld [vmem:[%s1398_s4 + $0x2] ss:$8 sm:$0x3] }
  0x97   : > { %v349_v51 = vpack.c.bf16 %v345_v47, %v343_v49  ;;  %v350_v52 = vpack.c.bf16 %v346_v48, %v344_v50 }
  0x99   : > { %358 = vmatprep.subr.bf16.mxu0 %v350_v52  ;;  %432 = vmatprep.subr.bf16.mxu1 %v350_v52 }
  0x9a   : > { %359 = vmatpush1.bf16.msra.mxu0 %v349_v51  ;;  %433 = vmatpush1.bf16.msra.mxu1 %v349_v51 }
  0x9b   : > { %505 = vmatprep.subr.bf16.mxu0 %v1265_v38  ;;  %580 = vmatprep.subr.bf16.mxu1 %v1265_v38 }
  0x9d   : > { %1116 = vmatmul.mubr.msk.bf16.vlgmr.msra.gmra.mrb[0].mxu0 %vm352_vm0, %v351_v53  ;;  %1118 = vmatmul.mubr.msk.bf16.vlgmr.msra.gmra.mrb[0].mxu1 %vm352_vm0, %v1117_v54 }
  0x9e   : > { %506 = vmatpush1.bf16.msra.mxu0 %v1263_v37  ;;  %581 = vmatpush1.bf16.msra.mxu1 %v1263_v37 }
  0x9f   : > { %507 = vmatprep.subr.bf16.mxu0 %v350_v52  ;;  %582 = vmatprep.subr.bf16.mxu1 %v350_v52 }
  0xa0   : > { %537 = vmatprep.mubr.bf16.mxu0 %v1172_v2  ;;  %612 = vmatprep.mubr.bf16.mxu1 %v1172_v2 }
  0xa2   : > { %508 = vmatpush1.bf16.msra.mxu0 %v349_v51  ;;  %583 = vmatpush1.bf16.msra.mxu1 %v349_v51 }
  0xa3   : > { %655 = vmatprep.subr.bf16.mxu0 %v1265_v38  ;;  %703 = vmatprep.subr.bf16.mxu1 %v1265_v38 }
  0xa5   : > { %1121 = vmatmul.mubr.msk.bf16.vlgmr.msra.gmra.mrb[4].mxu0 %vm352_vm0, %v1120_v55  ;;  %1124 = vmatmul.mubr.msk.bf16.vlgmr.msra.gmra.mrb[4].mxu1 %vm352_vm0, %v1123_v56 }
  0xa6   : > { %656 = vmatpush1.bf16.msra.mxu0 %v1263_v37  ;;  %704 = vmatpush1.bf16.msra.mxu1 %v1263_v37 }
  0xa7   : > { %657 = vmatprep.subr.bf16.mxu0 %v350_v52  ;;  %705 = vmatprep.subr.bf16.mxu1 %v350_v52 }
  0xa8   : > { %687 = vmatprep.mubr.bf16.mxu0 %v1172_v2  ;;  %735 = vmatprep.mubr.bf16.mxu1 %v1172_v2 }
  0xaa   : > { %658 = vmatpush1.bf16.msra.mxu0 %v349_v51  ;;  %706 = vmatpush1.bf16.msra.mxu1 %v349_v51 }
  0xab   : > { %778 = vmatprep.subr.bf16.mxu0 %v1265_v38  ;;  %853 = vmatprep.subr.bf16.mxu1 %v1265_v38 }
  0xad   : > { %1127 = vmatmul.mubr.msk.bf16.vlgmr.msra.gmra.mrb[8].mxu0 %vm352_vm0, %v1126_v57  ;;  %1129 = vmatmul.mubr.msk.bf16.vlgmr.msra.gmra.mrb[8].mxu1 %vm352_vm0, %v1128_v58 }
  0xae   : > { %779 = vmatpush1.bf16.msra.mxu0 %v1263_v37  ;;  %854 = vmatpush1.bf16.msra.mxu1 %v1263_v37 }
  0xaf   : > { %780 = vmatprep.subr.bf16.mxu0 %v350_v52  ;;  %855 = vmatprep.subr.bf16.mxu1 %v350_v52 }
  0xb0   : > { %810 = vmatprep.mubr.bf16.mxu0 %v1172_v2  ;;  %885 = vmatprep.mubr.bf16.mxu1 %v1172_v2 }
  0xb2   : > { %781 = vmatpush1.bf16.msra.mxu0 %v349_v51  ;;  %856 = vmatpush1.bf16.msra.mxu1 %v349_v51 }
  0xb3   : > { %928 = vmatprep.subr.bf16.mxu0 %v1265_v38 }
  0xb5   : > { %1132 = vmatmul.mubr.msk.bf16.vlgmr.msra.gmra.mrb[12].mxu0 %vm352_vm0, %v1131_v59  ;;  %1135 = vmatmul.mubr.msk.bf16.vlgmr.msra.gmra.mrb[12].mxu1 %vm352_vm0, %v1134_v60 }
  0xb6   : > { %929 = vmatpush1.bf16.msra.mxu0 %v1263_v37  ;;  %960 = vmatprep.mubr.bf16.mxu0 %v1172_v2  ;;  %v412_v37 = vshrl.u32 %v411_v35, 7 }
  0xb7   : > { %930 = vmatprep.subr.bf16.mxu0 %v350_v52  ;;  %v1125_v52 = vld [vmem:[%s1398_s4 + $0x3] ss:$8 sm:$0x3] }
  0xb8   : > { %v1332_v40 = vsub.s32 0, %v412_v37  ;;  %v1340_v44 = vsub.s32 1, %v412_v37 }
  0xba   : > { %931 = vmatpush1.bf16.msra.mxu0 %v349_v51  ;;  %v489_v47 = vrot.slane %v1119_v41, %v1332_v40  ;;  %v493_v48 = vrot.slane %v1119_v41, %v1340_v44  ;;  %v414_v49 = vrot.slane %v409_v43, %v1332_v40  ;;  %v418_v53 = vrot.slane %v409_v43, %v1340_v44 }
  0xbb   : > { %v564_v54 = vrot.slane %v1122_v46, %v1332_v40  ;;  %v568_v55 = vrot.slane %v1122_v46, %v1340_v44 }
  0xbd   : > { %1138 = vmatmul.mubr.msk.bf16.vlgmr.msra.gmra.mrb[16].mxu0 %vm352_vm0, %v1137_v61 }
 0x170   : > { %v390_v62 = vpop.f32.mrb[0].mxu0  ;;  %v464_v63 = vpop.f32.mrb[0].mxu1 }
 0x171   : > { %v392_v0 = vpop.f32.mrb[1].mxu0  ;;  %402 = vrot.lane.b32.xlu1 %v390_v62, %s1173_s18  ;;  %v466_v1 = vpop.f32.mrb[1].mxu1 }
 0x172   : > { %398 = vrot.lane.b32.xlu0 %v392_v0, %s1173_s18  ;;  %v394_v3 = vpop.f32.mrb[2].mxu0  ;;  %v468_v4 = vpop.f32.mrb[2].mxu1  ;;  %v639_v0 = vrot.slane %v1125_v52, %v1332_v40 }
 0x173   : > { %v395_v5 = vpop.f32.mrb[3].mxu0  ;;  %v469_v6 = vpop.f32.mrb[3].mxu1 }
 0x175   : > { %476 = vrot.lane.b32.xlu1 %v464_v63, %s1174_s19 }
 0x176   : > { %472 = vrot.lane.b32.xlu0 %v466_v1, %s1174_s19  ;;  %v643_v1 = vrot.slane %v1125_v52, %v1340_v44 }
 0x178   : > { %v539_v2 = vpop.f32.mrb[4].mxu0  ;;  %v614_v7 = vpop.f32.mrb[4].mxu1 }
 0x179   : > { %v541_v8 = vpop.f32.mrb[5].mxu0  ;;  %551 = vrot.lane.b32.xlu1 %v539_v2, %s1175_s20  ;;  %v616_v9 = vpop.f32.mrb[5].mxu1 }
 0x17a   : > { %547 = vrot.lane.b32.xlu0 %v541_v8, %s1175_s20  ;;  %v543_v10 = vpop.f32.mrb[6].mxu0  ;;  %v618_v11 = vpop.f32.mrb[6].mxu1  ;;  %s1114_s20 = smul.u32 80, %s1403_s25 }
 0x17b   : > { %v544_v12 = vpop.f32.mrb[7].mxu0  ;;  %v619_v13 = vpop.f32.mrb[7].mxu1 }
 0x17c   : > { %v1130_v12 = vld [vmem:[%s1398_s4 + $0x5] ss:$8 sm:$0x3] }
 0x17d   : > { %626 = vrot.lane.b32.xlu1 %v614_v7, %s1176_s21 }
 0x17e   : > { %622 = vrot.lane.b32.xlu0 %v616_v9, %s1176_s21 }
 0x180   : > { %v1328_v14 = vpop.f32.mrb[8].mxu0  ;;  %v737_v15 = vpop.f32.mrb[8].mxu1 }
 0x181   : > { %v1330_v16 = vpop.f32.mrb[9].mxu0  ;;  %v739_v17 = vpop.f32.mrb[9].mxu1 }
 0x182   : > { %748 = vrot.lane.b32.xlu1 %v739_v17, %s1177_s22  ;;  %746 = vrot.lane.b32.xlu0 %v737_v15, %s1177_s22  ;;  %v693_v18 = vpop.f32.mrb[10].mxu0  ;;  %v741_v19 = vpop.f32.mrb[10].mxu1 }
 0x183   : > { %v694_v20 = vpop.f32.mrb[11].mxu0  ;;  %v742_v21 = vpop.f32.mrb[11].mxu1  ;;  %v762_v19 = vrot.slane %v1130_v12, %v1332_v40 }
 0x184   : > { %v1133_v20 = vld [vmem:[%s1398_s4 + $0x6] ss:$8 sm:$0x3] }
 0x188   : > { %v812_v22 = vpop.f32.mrb[12].mxu0  ;;  %v887_v23 = vpop.f32.mrb[12].mxu1 }
 0x189   : > { %v814_v24 = vpop.f32.mrb[13].mxu0  ;;  %821 = vrot.lane.b32.xlu0 %v812_v22, %s1178_s23  ;;  %v889_v25 = vpop.f32.mrb[13].mxu1 }
 0x18a   : > { %823 = vrot.lane.b32.xlu1 %v814_v24, %s1178_s23  ;;  %v816_v26 = vpop.f32.mrb[14].mxu0  ;;  %v891_v27 = vpop.f32.mrb[14].mxu1  ;;  %v1136_v24 = vld [vmem:[%s1398_s4 + $0x7] ss:$8 sm:$0x3]  ;;  %s1062_s23 = scalar_lea.vmem %s1400_s6, %s1114_s20 }
 0x18b   : > { %v817_v28 = vpop.f32.mrb[15].mxu0  ;;  %v892_v29 = vpop.f32.mrb[15].mxu1 }
 0x18c   : > { %v837_v28 = vrot.slane %v1133_v20, %v1332_v40  ;;  %v841_v29 = vrot.slane %v1133_v20, %v1340_v44 }
 0x18d   : > { %896 = vrot.lane.b32.xlu0 %v887_v23, %s1179_s5  ;;  %v766_v23 = vrot.slane %v1130_v12, %v1340_v44 }
 0x18e   : > { %898 = vrot.lane.b32.xlu1 %v889_v25, %s1179_s5  ;;  %s1115_s5 = sshll.u32 %s1403_s25, 3 }
 0x18f   : > { %s265_s28 = scalar_lea.vmem %s1401_s7, %s1115_s5 }
 0x190   : > { %v962_v30 = vpop.f32.mrb[16].mxu0 }
 0x191   : > { %v964_v31 = vpop.f32.mrb[17].mxu0  ;;  %971 = vrot.lane.b32.xlu0 %v962_v30, %s1180_s26 }
 0x192   : > { %973 = vrot.lane.b32.xlu1 %v964_v31, %s1180_s26  ;;  %v966_v32 = vpop.f32.mrb[18].mxu0 }
 0x193   : > { %v967_v33 = vpop.f32.mrb[19].mxu0 }
 0x194   : > { %v912_v33 = vrot.slane %v1136_v24, %v1332_v40 }
 0x1e3   : > { %v403_v34 = vpop.permute.xlu1 %402 }
 0x1e4   : > { %v399_v36 = vpop.permute.xlu0 %398 }
 0x1e5   : > { %v405_v58 = vsel %vm404_vm2, %v403_v34, %v399_v36  ;;  %v408_v59 = vsel %vm404_vm2, %v399_v36, %v403_v34  ;;  %v916_v34 = vrot.slane %v1136_v24, %v1340_v44 }
 0x1e6   : > { %v421_v5 = vmul.f32 %v414_v49, %v408_v59  ;;  %v422_v6 = vmul.f32 %v418_v53, %v405_v58 }
 0x1e7   : > { %v477_v38 = vpop.permute.xlu1 %476 }
 0x1e8   : > { %v473_v39 = vpop.permute.xlu0 %472 }
 0x1e9   : > { %v479_v50 = vsel %vm478_vm1, %v477_v38, %v473_v39  ;;  %v482_v51 = vsel %vm478_vm1, %v473_v39, %v477_v38  ;;  %v1139_v39 = vld [vmem:[%s1398_s4 + $0x10] ss:$8 sm:$0x3] }
 0x1ea   : > { %v496_v62 = vmul.f32 %v489_v47, %v482_v51  ;;  %v497_v63 = vmul.f32 %v493_v48, %v479_v50 }
 0x1eb   : > { %v552_v42 = vpop.permute.xlu1 %551 }
 0x1ec   : > { %v548_v45 = vpop.permute.xlu0 %547  ;;  %v498_v8 = vadd.f32 %v496_v62, %v421_v5  ;;  %v499_v9 = vadd.f32 %v497_v63, %v422_v6 }
 0x1ed   : > { %v554_v60 = vsel %vm553_vm3, %v552_v42, %v548_v45  ;;  %v557_v61 = vsel %vm553_vm3, %v548_v45, %v552_v42 }
 0x1ee   : > { %v571_v2 = vmul.f32 %v564_v54, %v557_v61  ;;  %v572_v7 = vmul.f32 %v568_v55, %v554_v60 }
 0x1ef   : > { %v627_v56 = vpop.permute.xlu1 %626 }
 0x1f0   : > { %v623_v57 = vpop.permute.xlu0 %622  ;;  %v573_v15 = vadd.f32 %v571_v2, %v498_v8  ;;  %v574_v17 = vadd.f32 %v572_v7, %v499_v9 }
 0x1f1   : > { %v629_v3 = vsel %vm628_vm4, %v627_v56, %v623_v57  ;;  %v632_v4 = vsel %vm628_vm4, %v623_v57, %v627_v56 }
 0x1f2   : > { %v646_v10 = vmul.f32 %v639_v0, %v632_v4  ;;  %v647_v11 = vmul.f32 %v643_v1, %v629_v3 }
 0x1f4   : > { %v747_v13 = vpop.permute.xlu0 %746  ;;  %v749_v18 = vpop.permute.xlu1 %748  ;;  %v648_v21 = vadd.f32 %v646_v10, %v573_v15  ;;  %v649_v22 = vadd.f32 %v647_v11, %v574_v17 }
 0x1f5   : > { %v751_v25 = vsel %vm750_vm5, %v747_v13, %v749_v18  ;;  %v755_v26 = vsel %vm750_vm5, %v749_v18, %v747_v13 }
 0x1f6   : > { %v696_v35 = vadd.f32 %v1328_v14, %v648_v21  ;;  %v697_v36 = vadd.f32 %v1330_v16, %v649_v22  ;;  %v769_v37 = vmul.f32 %v762_v19, %v751_v25  ;;  %v770_v38 = vmul.f32 %v766_v23, %v755_v26 }
 0x1f7   : > { %v987_v14 = vrot.slane %v1139_v39, %v1332_v40  ;;  %v991_v16 = vrot.slane %v1139_v39, %v1340_v44 }
 0x1f8   : > { %v771_v48 = vadd.f32 %v769_v37, %v696_v35  ;;  %v772_v49 = vadd.f32 %v770_v38, %v697_v36 }
 0x1fb   : > { %v822_v27 = vpop.permute.xlu0 %821 }
 0x1fc   : > { %v824_v30 = vpop.permute.xlu1 %823 }
 0x1fd   : > { %v826_v31 = vsel %vm825_vm6, %v822_v27, %v824_v30  ;;  %v830_v32 = vsel %vm825_vm6, %v824_v30, %v822_v27 }
 0x1fe   : > { %v844_v42 = vmul.f32 %v837_v28, %v826_v31  ;;  %v845_v43 = vmul.f32 %v841_v29, %v830_v32 }
 0x1ff   : > { %v897_v41 = vpop.permute.xlu0 %896 }
 0x200   : > { %v899_v45 = vpop.permute.xlu1 %898  ;;  %v846_v53 = vadd.f32 %v844_v42, %v771_v48  ;;  %v847_v54 = vadd.f32 %v845_v43, %v772_v49 }
 0x201   : > { %v901_v46 = vsel %vm900_vm7, %v897_v41, %v899_v45  ;;  %v905_v47 = vsel %vm900_vm7, %v899_v45, %v897_v41 }
 0x202   : > { %v919_v50 = vmul.f32 %v912_v33, %v901_v46  ;;  %v920_v51 = vmul.f32 %v916_v34, %v905_v47 }
 0x203   : > { %v972_v52 = vpop.permute.xlu0 %971 }
 0x204   : > { %v974_v55 = vpop.permute.xlu1 %973  ;;  %v921_v58 = vadd.f32 %v919_v50, %v846_v53  ;;  %v922_v59 = vadd.f32 %v920_v51, %v847_v54 }
 0x205   : > { %v976_v56 = vsel %vm975_vm8, %v972_v52, %v974_v55  ;;  %v980_v57 = vsel %vm975_vm8, %v974_v55, %v972_v52 }
 0x206   : > { %v994_v60 = vmul.f32 %v987_v14, %v976_v56  ;;  %v995_v61 = vmul.f32 %v991_v16, %v980_v57 }
 0x208   : > { %v996_v40 = vadd.f32 %v994_v60, %v921_v58  ;;  %v997_v44 = vadd.f32 %v995_v61, %v922_v59 }
 0x20a   : > { %1140 = vst [vmem:[%s1062_s23 + $0x30] sm:$0xff] %v996_v40  ;;  %1141 = vst [vmem:[%s1062_s23 + $0x38] sm:$0xff] %v997_v44  ;;  %v1000_v62 = vadd.f32 %v997_v44, %v996_v40  ;;  %v1003_v63 = vmul.f32 %v996_v40, %v996_v40  ;;  %v1004_v0 = vmul.f32 %v997_v44, %v997_v44 }
 0x20c   : > { %1001 = vadd.xlane.f32.xlu0 %v1000_v62  ;;  %v1005_v1 = vadd.f32 %v1004_v0, %v1003_v63 }
 0x20e   : > { %1006 = vadd.xlane.f32.xlu1 %v1005_v1 }
 0x299   : > { %v1002_v3 = vpop.xlane.xlu0 %1001 }
 0x29b   : > { %v1007_v4 = vpop.xlane.xlu1 %1006 }
 0x29c   : > { %v1008_v5 = vsel %vm628_vm4, %v1002_v3, %v1007_v4 }
 0x29d   : > { %1010 = vst.msk [vmem:[%s265_s28] sm:$0xff] %vm1009_vm9, %v1008_v5 }
 0x29e PF: > { %s18_s24 = sadd.s32 1, %s1170_s24  }
 0x29f   : > { %p15_p4 = scmp.ge.s32.totalorder %s18_s24, 4  }
 0x2a1   :  { %17 = sbr.rel (!%p15_p4) target bundleno = 1 (0x1), region = 97 }

// kernel: dense_block.14
= control target key start
LH: loop header
LB: loop body
LE: loop exit
PB: predicated region body
PF: predicated region fallthrough
CT: control target
= control target key end

     0   :  { %s743_s18 = smov 0   ;;  %s745_s19 = smov 0   ;;  %s818_s0 = inlined_call_operand.vmem [shape: f32[2,40,256], index: 0, kind: input, shape index: {}]   ;;  %s819_s1 = inlined_call_operand.vmem [shape: f32[32,1], index: 1, kind: input, shape index: {}]   ;;  %s820_s2 = inlined_call_operand.vmem [shape: f32[32,1], index: 2, kind: input, shape index: {}]   ;;  %s821_s3 = inlined_call_operand.vmem [shape: bf16[32,32], index: 3, kind: input, shape index: {}]   ;;  %s822_s4 = inlined_call_operand.vmem [shape: f32[2,32,256], index: 4, kind: output, shape index: {0}]   ;;  %s823_s5 = inlined_call_operand.vmem [shape: f32[2,1,32,2], index: 5, kind: output, shape index: {1}]  }
   0x1   :  { %s747_s20 = smov 0  }
   0x2 LB: > { %s28_s21 = sadd.s32 1, %s706_s19  ;;  %p640_p0 = scmp.ge.s32.totalorder %s710_s20, 1  ;;  %s710_s20 = sphi %s747_s20, %s16_s20   ;;  %s706_s19 = sphi %s745_s19, %s825_s19   ;;  %s702_s18 = sphi %s743_s18, %s824_s18  }
   0x3   : > { %p30_p1 = scmp.ge.s32.totalorder %s28_s21, 2  ;;  %p213_p2 = scmp.lt.s32.totalorder %s710_s20, 3 }
   0x5   : > { %s827_s21 = smov (%p30_p1, %s28_s21), 0  ;;  %p214_p3 = pnand %p640_p0, %p213_p2 }
   0x6   : > { %v328_v0 = vld [vmem:[%s820_s2] sm:$0xff] (!%p214_p3)  ;;  %v712_v2 = vmov (!%p214_p3), 0   ;;  %v329_v3 = vld [vmem:[%s820_s2 + $0x8] sm:$0xff] (!%p214_p3)  ;;  %v299_v5 = vld [vmem:[%s819_s1 + $0x18] sm:$0xff] (!%p214_p3)  ;;  %p259_p4 = scmp.lt.s32.totalorder (!%p214_p3), %s702_s18, 1  ;;  %vm386_vm0 = vcmask (!%p214_p3), 261120  }
   0x7   : > { %217 = sbr.rel (%p214_p3) target bundleno = 533 (0x215), region = 36  ;;  %v296_v1 = vld [vmem:[%s819_s1] sm:$0xff] (!%p214_p3)  ;;  %685 = vset.pattern.permute.xlu1 (!%p214_p3), %v712_v2  ;;  %684 = vset.pattern.permute.xlu0 (!%p214_p3), %v712_v2  ;;  %v297_v4 = vld [vmem:[%s819_s1 + $0x8] sm:$0xff] (!%p214_p3)  ;;  %v298_v6 = vld [vmem:[%s819_s1 + $0x10] sm:$0xff] (!%p214_p3)  ;;  %vm486_vm1 = vcmask (!%p214_p3), 7168   ;;  %vm491_vm2 = vcmask (!%p214_p3), 15360  }
   0x8   : > { %334 = vperm.xlu1 (!%p214_p3), %685, %v328_v0   ;;  %302 = vperm.xlu0 (!%p214_p3), %684, %v296_v1   ;;  %v331_v7 = vld [vmem:[%s820_s2 + $0x18] sm:$0xff] (!%p214_p3)  ;;  %v330_v8 = vld [vmem:[%s820_s2 + $0x10] sm:$0xff] (!%p214_p3)  ;;  %v686_v53 = vld [vmem:[%s821_s3] sm:$0xff] (!%p214_p3)  }
   0x9   : > { %425 = vmatprep.mubr.bf16.mxu0 (!%p214_p3), %v712_v2  ;;  %435 = vmatprep.mubr.bf16.mxu1 (!%p214_p3), %v712_v2  ;;  %v687_v54 = vld [vmem:[%s821_s3 + $0x8] sm:$0xff] (!%p214_p3)  }
   0xc   : > { %339 = vperm.xlu1 (!%p214_p3), %685, %v329_v3   ;;  %307 = vperm.xlu0 (!%p214_p3), %684, %v297_v4  }
   0xe   : > { %s829_s18 = smov (!%p259_p4, %s702_s18), 1 }
   0xf   : > { %s658_s13 = smul.u32 80, %s829_s18  ;;  %s652_s25 = sshll.u32 %s829_s18, 6 }
  0x10   : > { %317 = vperm.xlu1 %685, %v299_v5   ;;  %312 = vperm.xlu0 %684, %v298_v6   ;;  %s276_s28 = scalar_lea.vmem %s822_s4, %s652_s25  ;;  %s653_s29 = sshll.u32 %s829_s18, 5 }
  0x11   : > { %s266_s16 = scalar_lea.vmem %s818_s0, %s658_s13  ;;  %s286_s7 = scalar_lea.vmem %s823_s5, %s653_s29 }
  0x12   : > { %v288_v9 = vld [vmem:[%s266_s16] sm:$0xff]  ;;  %v289_v10 = vld [vmem:[%s266_s16 + $0x8] sm:$0xff]  ;;  %v290_v15 = vld [vmem:[%s266_s16 + $0x10] sm:$0xff] }
  0x13   : > { %v291_v16 = vld [vmem:[%s266_s16 + $0x18] sm:$0xff]  ;;  %v294_v25 = vld [vmem:[%s266_s16 + $0x30] sm:$0xff]  ;;  %v292_v29 = vld [vmem:[%s266_s16 + $0x20] sm:$0xff] }
  0x14   : > { %349 = vperm.xlu1 %685, %v331_v7   ;;  %344 = vperm.xlu0 %684, %v330_v8   ;;  %v295_v27 = vld [vmem:[%s266_s16 + $0x38] sm:$0xff]  ;;  %v293_v30 = vld [vmem:[%s266_s16 + $0x28] sm:$0xff] }
  0x87   : > { %v335_v11 = vpop.permute.xlu1 %334  ;;  %v303_v12 = vpop.permute.xlu0 %302 }
  0x88   : > { %v320_v13 = vmul.f32 %v303_v12, %v288_v9  ;;  %v321_v14 = vmul.f32 %v303_v12, %v289_v10 }
  0x8a   : > { %v352_v21 = vadd.f32 %v335_v11, %v320_v13  ;;  %v353_v22 = vadd.f32 %v335_v11, %v321_v14 }
  0x8b   : > { %v340_v17 = vpop.permute.xlu1 %339  ;;  %v308_v18 = vpop.permute.xlu0 %307 }
  0x8c   : > { %v322_v19 = vmul.f32 %v308_v18, %v290_v15  ;;  %v323_v20 = vmul.f32 %v308_v18, %v291_v16  ;;  %v361_v31 = vmax.f32 %v353_v22, 0.0  ;;  %v360_v33 = vmax.f32 %v352_v21, 0.0 }
  0x8e   : > { %v354_v23 = vadd.f32 %v340_v17, %v322_v19  ;;  %v355_v24 = vadd.f32 %v340_v17, %v323_v20 }
  0x8f   : > { %v318_v26 = vpop.permute.xlu1 %317  ;;  %v313_v28 = vpop.permute.xlu0 %312 }
  0x90   : > { %v363_v32 = vmax.f32 %v355_v24, 0.0  ;;  %v362_v34 = vmax.f32 %v354_v23, 0.0  ;;  %v326_v35 = vmul.f32 %v318_v26, %v294_v25  ;;  %v327_v36 = vmul.f32 %v318_v26, %v295_v27 }
  0x91   : > { %v324_v37 = vmul.f32 %v313_v28, %v292_v29  ;;  %v325_v38 = vmul.f32 %v313_v28, %v293_v30 }
  0x92   : > { %v373_v41 = vpack.c.bf16 %v363_v32, %v361_v31  ;;  %v372_v42 = vpack.c.bf16 %v362_v34, %v360_v33 }
  0x93   : > { %v350_v39 = vpop.permute.xlu1 %349  ;;  %v345_v40 = vpop.permute.xlu0 %344 }
  0x94   : > { %v358_v43 = vadd.f32 %v350_v39, %v326_v35  ;;  %v359_v44 = vadd.f32 %v350_v39, %v327_v36  ;;  %v356_v45 = vadd.f32 %v345_v40, %v324_v37  ;;  %v357_v46 = vadd.f32 %v345_v40, %v325_v38  ;;  %393 = vmatprep.subr.bf16.mxu0 %v373_v41 }
  0x95   : > { %654 = vmatprep.subr.bf16.mxu1 %v373_v41  ;;  %394 = vmatpush1.bf16.msra.mxu0 %v372_v42 }
  0x96   : > { %v366_v47 = vmax.f32 %v358_v43, 0.0  ;;  %v367_v48 = vmax.f32 %v359_v44, 0.0  ;;  %v364_v49 = vmax.f32 %v356_v45, 0.0  ;;  %v365_v50 = vmax.f32 %v357_v46, 0.0  ;;  %656 = vmatpush1.bf16.msra.mxu1 %v372_v42 }
  0x98   : > { %v375_v51 = vpack.c.bf16 %v367_v48, %v365_v50  ;;  %v374_v52 = vpack.c.bf16 %v366_v47, %v364_v49 }
  0x9a   : > { %395 = vmatprep.subr.bf16.mxu0 %v375_v51  ;;  %655 = vmatprep.subr.bf16.mxu1 %v375_v51 }
  0x9b   : > { %396 = vmatpush1.bf16.msra.mxu0 %v374_v52  ;;  %657 = vmatpush1.bf16.msra.mxu1 %v374_v52 }
  0x9e   : > { %648 = vmatmul.mubr.msk.bf16.vlgmr.msra.gmra.mrb[0].mxu0 %vm386_vm0, %v686_v53  ;;  %649 = vmatmul.mubr.msk.bf16.vlgmr.msra.gmra.mrb[0].mxu1 %vm386_vm0, %v687_v54 }
 0x171   : > { %v427_v55 = vpop.f32.mrb[0].mxu0  ;;  %v437_v56 = vpop.f32.mrb[0].mxu1 }
 0x172   : > { %446 = vst [vmem:[%s276_s28] sm:$0xff] %v427_v55  ;;  %v429_v57 = vpop.f32.mrb[1].mxu0  ;;  %450 = vst [vmem:[%s276_s28 + $0x20] sm:$0xff] %v437_v56  ;;  %v439_v58 = vpop.f32.mrb[1].mxu1  ;;  %v466_v59 = vmul.f32 %v427_v55, %v427_v55  ;;  %v470_v60 = vmul.f32 %v437_v56, %v437_v56 }
 0x173   : > { %447 = vst [vmem:[%s276_s28 + $0x8] sm:$0xff] %v429_v57  ;;  %v431_v61 = vpop.f32.mrb[2].mxu0  ;;  %451 = vst [vmem:[%s276_s28 + $0x28] sm:$0xff] %v439_v58  ;;  %v441_v62 = vpop.f32.mrb[2].mxu1  ;;  %v454_v63 = vadd.f32 %v429_v57, %v427_v55  ;;  %v460_v0 = vadd.f32 %v439_v58, %v437_v56  ;;  %v467_v1 = vmul.f32 %v429_v57, %v429_v57 }
 0x174   : > { %v471_v2 = vmul.f32 %v439_v58, %v439_v58  ;;  %448 = vst [vmem:[%s276_s28 + $0x10] sm:$0xff] %v431_v61  ;;  %v433_v3 = vpop.f32.mrb[3].mxu0  ;;  %452 = vst [vmem:[%s276_s28 + $0x30] sm:$0xff] %v441_v62  ;;  %v443_v4 = vpop.f32.mrb[3].mxu1  ;;  %v468_v5 = vmul.f32 %v431_v61, %v431_v61  ;;  %v472_v6 = vmul.f32 %v441_v62, %v441_v62 }
 0x175   : > { %449 = vst [vmem:[%s276_s28 + $0x18] sm:$0xff] %v433_v3  ;;  %v469_v7 = vmul.f32 %v433_v3, %v433_v3  ;;  %453 = vst [vmem:[%s276_s28 + $0x38] sm:$0xff] %v443_v4  ;;  %v473_v8 = vmul.f32 %v443_v4, %v443_v4  ;;  %455 = vadd.xlane.f32.xlu0 %v454_v63  ;;  %v457_v9 = vadd.f32 %v433_v3, %v431_v61 }
 0x176   : > { %v474_v10 = vadd.f32 %v467_v1, %v466_v59  ;;  %v463_v11 = vadd.f32 %v443_v4, %v441_v62  ;;  %v480_v12 = vadd.f32 %v471_v2, %v470_v60 }
 0x177   : > { %458 = vadd.xlane.f32.xlu1 %v457_v9  ;;  %v477_v13 = vadd.f32 %v469_v7, %v468_v5  ;;  %v483_v14 = vadd.f32 %v473_v8, %v472_v6 }
 0x179   : > { %461 = vadd.xlane.f32.xlu0 %v460_v0 }
 0x17b   : > { %475 = vadd.xlane.f32.xlu1 %v474_v10 }
 0x17d   : > { %464 = vadd.xlane.f32.xlu0 %v463_v11 }
 0x17f   : > { %481 = vadd.xlane.f32.xlu1 %v480_v12 }
 0x181   : > { %478 = vadd.xlane.f32.xlu0 %v477_v13 }
 0x185   : > { %484 = vadd.xlane.f32.xlu0 %v483_v14 }
 0x202   : > { %v456_v15 = vpop.xlane.xlu0 %455 }
 0x204   : > { %v459_v16 = vpop.xlane.xlu1 %458 }
 0x206   : > { %v462_v17 = vpop.xlane.xlu0 %461 }
 0x208   : > { %v476_v18 = vpop.xlane.xlu1 %475 }
 0x209   : > { %v487_v19 = vsel %vm486_vm1, %v456_v15, %v476_v18 }
 0x20a   : > { %492 = vst.msk [vmem:[%s286_s7] sm:$0xff] %vm491_vm2, %v487_v19  ;;  %v465_v20 = vpop.xlane.xlu0 %464 }
 0x20c   : > { %v482_v21 = vpop.xlane.xlu1 %481 }
 0x20d   : > { %v489_v22 = vsel %vm486_vm1, %v462_v17, %v482_v21 }
 0x20e   : > { %494 = vst.msk [vmem:[%s286_s7 + $0x10] sm:$0xff] %vm491_vm2, %v489_v22  ;;  %v479_v23 = vpop.xlane.xlu0 %478 }
 0x20f   : > { %v488_v24 = vsel %vm486_vm1, %v459_v16, %v479_v23 }
 0x210   : > { %493 = vst.msk [vmem:[%s286_s7 + $0x8] sm:$0xff] %vm491_vm2, %v488_v24 }
 0x212   : > { %v485_v25 = vpop.xlane.xlu0 %484 }
 0x213   : > { %v490_v26 = vsel %vm486_vm1, %v465_v20, %v485_v25 }
 0x214   : > { %495 = vst.msk [vmem:[%s286_s7 + $0x18] sm:$0xff] %vm491_vm2, %v490_v26 }
 0x215 PF: > { %s16_s20 = sadd.s32 1, %s710_s20   ;;  %s824_s18 = smov %s706_s19 }
 0x216   : > { %p13_p5 = scmp.ge.s32.totalorder %s16_s20, 4   ;;  %s825_s19 = smov %s827_s21 }
 0x218   :  { %15 = sbr.rel (!%p13_p5) target bundleno = 2 (0x2), region = 78 }

// kernel: dense_block.15
= control target key start
LH: loop header
LB: loop body
LE: loop exit
PB: predicated region body
PF: predicated region fallthrough
CT: control target
= control target key end

     0   :  { %13 = vsyncpa [#allocation3], 0  ;;  %s1585_s0 = inlined_call_operand.vmem [shape: f32[2,32,256], index: 0, kind: input, shape index: {}]   ;;  %s1586_s1 = inlined_call_operand.vmem [shape: f32[32,1], index: 1, kind: input, shape index: {}]   ;;  %s1587_s2 = inlined_call_operand.vmem [shape: f32[32,1], index: 2, kind: input, shape index: {}]   ;;  %s1588_s3 = inlined_call_operand.vmem [shape: bf16[9,8,32], index: 3, kind: input, shape index: {}]   ;;  %s1589_s4 = inlined_call_operand.vmem [shape: f32[9,256], index: 4, kind: input, shape index: {}]   ;;  %s1590_s5 = inlined_call_operand.vmem [shape: f32[2,40,256], index: 5, kind: input, shape index: {}, may-alias: {5,6}]   ;;  %s1591_s6 = inlined_call_operand.vmem [shape: f32[2,40,256], index: 6, kind: output, shape index: {0}, may-alias: {5,6}]   ;;  %s1592_s7 = inlined_call_operand.hbm [shape: f32[2,8,2], index: 7, kind: output, shape index: {1}]  }
   0x1   :  { %15 = vsyncpa [#allocation3 + $0x1], 0  ;;  %s1330_s24 = smov 0   ;;  %s1332_s25 = smov 0  }
   0x2   :  { %s1334_s26 = smov 0   ;;  %s1336_s27 = smov 0  }
   0x3 LB: > { %s1351_s5 = sadd.s32 4294967295, %s1278_s27   ;;  %s1127_s28 = sadd.s32 4294967294, %s1278_s27   ;;  %s1278_s27 = sphi %s1336_s27, %s1598_s27   ;;  %s1274_s26 = sphi %s1334_s26, %s1597_s26   ;;  %s1270_s25 = sphi %s1332_s25, %s1596_s25   ;;  %s1266_s24 = sphi %s1330_s24, %s1595_s24  }
   0x4   : > { %s1355_s29 = sadd.s32 1, %s1278_s27   ;;  %s164_s30 = sadd.s32 1, %s1274_s26 }
   0x5   : > { %s161_s8 = ssub.s32 %s1278_s27, %s1355_s29  ;;  %p174_p0 = scmp.ne.s32.totalorder %s1274_s26, %s1270_s25 }
   0x6   : > { %p162_p1 = scmp.eq.s32.totalorder %s161_s8, 0  ;;  %p175_p2 = scmp.eq.s32.totalorder %s1351_s5, 1 }
   0x7   : > { %p180_p3 = scmp.ne.s32.totalorder %s1270_s25, %s1266_s24  ;;  %p181_p4 = scmp.eq.s32.totalorder %s1127_s28, 1 }
   0x8   : > { %s1366_s9 = scalar_select %p162_p1, %s1274_s26, %s164_s30  }
   0x9   : > { %p1368_p5 = por %p175_p2, %p174_p0  ;;  %p1372_p6 = por %p181_p4, %p180_p3 }
   0xa   : > { %p1130_p7 = scmp.ge.s32.totalorder %s1278_s27, 1  ;;  %p219_p8 = scmp.lt.s32.totalorder %s1278_s27, 3 }
   0xc   : > { %p220_p9 = pnand %p1130_p7, %p219_p8 }
   0xd   : > { %v307_v0 = vld [vmem:[%s1587_s2] sm:$0xff] (!%p220_p9)  ;;  %v1280_v2 = vmov (!%p220_p9), 0   ;;  %v308_v3 = vld [vmem:[%s1587_s2 + $0x8] sm:$0xff] (!%p220_p9)  ;;  %v278_v5 = vld [vmem:[%s1586_s1 + $0x18] sm:$0xff] (!%p220_p9)  ;;  %p255_p10 = scmp.lt.s32.totalorder (!%p220_p9), %s1351_s5, 1  ;;  %vm352_vm0 = vcmask (!%p220_p9), 261120  }
   0xe   : > { %223 = sbr.rel (%p220_p9) target bundleno = 691 (0x2b3), region = 40  ;;  %v275_v1 = vld [vmem:[%s1586_s1] sm:$0xff] (!%p220_p9)  ;;  %1215 = vset.pattern.permute.xlu1 (!%p220_p9), %v1280_v2  ;;  %1214 = vset.pattern.permute.xlu0 (!%p220_p9), %v1280_v2  ;;  %v276_v4 = vld [vmem:[%s1586_s1 + $0x8] sm:$0xff] (!%p220_p9)  ;;  %v277_v6 = vld [vmem:[%s1586_s1 + $0x10] sm:$0xff] (!%p220_p9)  ;;  %s1281_s22 = smov (!%p220_p9), 17   ;;  %vm478_vm1 = vcmask (!%p220_p9), 130048  }
   0xf   : > { %313 = vperm.xlu1 (!%p220_p9), %1215, %v307_v0   ;;  %281 = vperm.xlu0 (!%p220_p9), %1214, %v275_v1   ;;  %v310_v7 = vld [vmem:[%s1587_s2 + $0x18] sm:$0xff] (!%p220_p9)  ;;  %v309_v8 = vld [vmem:[%s1587_s2 + $0x10] sm:$0xff] (!%p220_p9)  ;;  %v351_v53 = vld [vmem:[%s1588_s3] sm:$0xf] (!%p220_p9)  ;;  %s1282_s23 = smov (!%p220_p9), 16   ;;  %s1283_s28 = smov (!%p220_p9), 15  }
  0x10   : > { %388 = vmatprep.mubr.bf16.mxu0 (!%p220_p9), %v1280_v2  ;;  %462 = vmatprep.mubr.bf16.mxu1 (!%p220_p9), %v1280_v2  ;;  %v1136_v54 = vld [vmem:[%s1588_s3 + $0x4] sm:$0xf] (!%p220_p9)  ;;  %v1139_v55 = vld [vmem:[%s1588_s3 + $0x8] sm:$0xf] (!%p220_p9)  ;;  %v1142_v56 = vld [vmem:[%s1588_s3 + $0xc] sm:$0xf] (!%p220_p9) }
  0x11   : > { %v1145_v57 = vld [vmem:[%s1588_s3 + $0x10] sm:$0xf] (!%p220_p9)  ;;  %v1147_v58 = vld [vmem:[%s1588_s3 + $0x14] sm:$0xf] (!%p220_p9)  ;;  %v1150_v59 = vld [vmem:[%s1588_s3 + $0x18] sm:$0xf] (!%p220_p9) }
  0x12   : > { %v1153_v60 = vld [vmem:[%s1588_s3 + $0x1c] sm:$0xf] (!%p220_p9)  ;;  %v1156_v61 = vld [vmem:[%s1588_s3 + $0x20] sm:$0xf] (!%p220_p9)  ;;  %s1284_s30 = smov (!%p220_p9), 1   ;;  %s1285_s8 = smov (!%p220_p9), 127  }
  0x13   : > { %318 = vperm.xlu1 (!%p220_p9), %1215, %v308_v3   ;;  %286 = vperm.xlu0 (!%p220_p9), %1214, %v276_v4   ;;  %s1286_s12 = smov (!%p220_p9), 113   ;;  %s1288_s15 = smov (!%p220_p9), 111   ;;  %vm404_vm2 = vcmask (!%p220_p9), 138240   ;;  %vm553_vm3 = vcmask (!%p220_p9), 121856   ;;  %vm628_vm4 = vcmask (!%p220_p9), 7168   ;;  %vm750_vm5 = vcmask (!%p220_p9), 1039360  }
  0x14   : > { %vm825_vm6 = vcmask (!%p220_p9), 924672   ;;  %vm900_vm7 = vcmask (!%p220_p9), 916480   ;;  %vm975_vm8 = vcmask (!%p220_p9), 908288   ;;  %vm1009_vm9 = vcmask (!%p220_p9), 15360   ;;  %s1289_s16 = smov (!%p220_p9), [#allocation2]  }
  0x15   : > { %s1408_s13 = scalar_select %p255_p10, %s1351_s5, 1 }
  0x17   : > { %296 = vperm.xlu1 %1215, %v278_v5   ;;  %291 = vperm.xlu0 %1214, %v277_v6   ;;  %s1165_s14 = sshll.u32 %s1408_s13, 6  ;;  %s1134_s18 = smul.u32 80, %s1408_s13 }
  0x18   : > { %s259_s17 = scalar_lea.vmem %s1585_s0, %s1165_s14  ;;  %s1287_s14 = smov 112  }
  0x19   : > { %v267_v9 = vld [vmem:[%s259_s17] sm:$0xff]  ;;  %v268_v10 = vld [vmem:[%s259_s17 + $0x8] sm:$0xff]  ;;  %v269_v15 = vld [vmem:[%s259_s17 + $0x10] sm:$0xff]  ;;  %s1079_s21 = scalar_lea.vmem %s1591_s6, %s1134_s18  ;;  %s252_s13 = sand.u32 1, %s1270_s25  }
  0x1a   : > { %v270_v16 = vld [vmem:[%s259_s17 + $0x18] sm:$0xff]  ;;  %v273_v25 = vld [vmem:[%s259_s17 + $0x30] sm:$0xff]  ;;  %v271_v29 = vld [vmem:[%s259_s17 + $0x20] sm:$0xff] }
  0x1b   : > { %328 = vperm.xlu1 %1215, %v310_v7   ;;  %323 = vperm.xlu0 %1214, %v309_v8   ;;  %v274_v26 = vld [vmem:[%s259_s17 + $0x38] sm:$0xff]  ;;  %v272_v30 = vld [vmem:[%s259_s17 + $0x28] sm:$0xff]  ;;  %s1220_s17 = sshll.u32 %s1289_s16, 4  ;;  %s1221_s17 = int_to_ptr.vmem [resolvable:$false] %s1220_s17 }
  0x1c   : > { %s1222_s18 = scalar_lea.vmem %s1221_s17, 256 }
  0x8e   : > { %v314_v11 = vpop.permute.xlu1 %313  ;;  %v282_v12 = vpop.permute.xlu0 %281 }
  0x8f   : > { %v299_v13 = vmul.f32 %v282_v12, %v267_v9  ;;  %v300_v14 = vmul.f32 %v282_v12, %v268_v10 }
  0x91   : > { %v331_v19 = vadd.f32 %v314_v11, %v299_v13  ;;  %v332_v20 = vadd.f32 %v314_v11, %v300_v14 }
  0x92   : > { %v319_v17 = vpop.permute.xlu1 %318  ;;  %v287_v18 = vpop.permute.xlu0 %286 }
  0x93   : > { %v301_v21 = vmul.f32 %v287_v18, %v269_v15  ;;  %v302_v22 = vmul.f32 %v287_v18, %v270_v16  ;;  %v339_v31 = vmax.f32 %v331_v19, 0.0  ;;  %v340_v32 = vmax.f32 %v332_v20, 0.0 }
  0x95   : > { %v333_v23 = vadd.f32 %v319_v17, %v301_v21  ;;  %v334_v24 = vadd.f32 %v319_v17, %v302_v22 }
  0x96   : > { %v297_v27 = vpop.permute.xlu1 %296  ;;  %v292_v28 = vpop.permute.xlu0 %291 }
  0x97   : > { %v341_v33 = vmax.f32 %v333_v23, 0.0  ;;  %v342_v34 = vmax.f32 %v334_v24, 0.0  ;;  %v305_v35 = vmul.f32 %v297_v27, %v273_v25  ;;  %v306_v36 = vmul.f32 %v297_v27, %v274_v26 }
  0x98   : > { %v303_v39 = vmul.f32 %v292_v28, %v271_v29  ;;  %v304_v40 = vmul.f32 %v292_v28, %v272_v30 }
  0x99   : > { %v1414_v37 = vpack.c.bf16 %v341_v33, %v339_v31  ;;  %v1416_v38 = vpack.c.bf16 %v342_v34, %v340_v32 }
  0x9a   : > { %v329_v41 = vpop.permute.xlu1 %328  ;;  %v324_v42 = vpop.permute.xlu0 %323 }
  0x9b   : > { %v337_v43 = vadd.f32 %v329_v41, %v305_v35  ;;  %v338_v44 = vadd.f32 %v329_v41, %v306_v36  ;;  %v335_v45 = vadd.f32 %v324_v42, %v303_v39  ;;  %v336_v46 = vadd.f32 %v324_v42, %v304_v40  ;;  %356 = vmatprep.subr.bf16.mxu0 %v1416_v38  ;;  %v1138_v41 = vld [vmem:[%s1589_s4 + $0x1] ss:$8 sm:$0x3] }
  0x9c   : > { %430 = vmatprep.subr.bf16.mxu1 %v1416_v38  ;;  %357 = vmatpush1.bf16.msra.mxu0 %v1414_v37  ;;  %v411_v35 = vlaneseq }
  0x9d   : > { %v345_v47 = vmax.f32 %v337_v43, 0.0  ;;  %v346_v48 = vmax.f32 %v338_v44, 0.0  ;;  %v343_v49 = vmax.f32 %v335_v45, 0.0  ;;  %v344_v50 = vmax.f32 %v336_v46, 0.0  ;;  %431 = vmatpush1.bf16.msra.mxu1 %v1414_v37 }
  0x9e   : > { %v409_v43 = vld [vmem:[%s1589_s4] ss:$8 sm:$0x3]  ;;  %v1141_v46 = vld [vmem:[%s1589_s4 + $0x2] ss:$8 sm:$0x3] }
  0x9f   : > { %v349_v51 = vpack.c.bf16 %v345_v47, %v343_v49  ;;  %v350_v52 = vpack.c.bf16 %v346_v48, %v344_v50 }
  0xa1   : > { %358 = vmatprep.subr.bf16.mxu0 %v350_v52  ;;  %432 = vmatprep.subr.bf16.mxu1 %v350_v52 }
  0xa2   : > { %359 = vmatpush1.bf16.msra.mxu0 %v349_v51  ;;  %433 = vmatpush1.bf16.msra.mxu1 %v349_v51 }
  0xa3   : > { %505 = vmatprep.subr.bf16.mxu0 %v1416_v38  ;;  %580 = vmatprep.subr.bf16.mxu1 %v1416_v38 }
  0xa5   : > { %1135 = vmatmul.mubr.msk.bf16.vlgmr.msra.gmra.mrb[0].mxu0 %vm352_vm0, %v351_v53  ;;  %1137 = vmatmul.mubr.msk.bf16.vlgmr.msra.gmra.mrb[0].mxu1 %vm352_vm0, %v1136_v54 }
  0xa6   : > { %506 = vmatpush1.bf16.msra.mxu0 %v1414_v37  ;;  %581 = vmatpush1.bf16.msra.mxu1 %v1414_v37 }
  0xa7   : > { %507 = vmatprep.subr.bf16.mxu0 %v350_v52  ;;  %582 = vmatprep.subr.bf16.mxu1 %v350_v52 }
  0xa8   : > { %537 = vmatprep.mubr.bf16.mxu0 %v1280_v2  ;;  %612 = vmatprep.mubr.bf16.mxu1 %v1280_v2 }
  0xaa   : > { %508 = vmatpush1.bf16.msra.mxu0 %v349_v51  ;;  %583 = vmatpush1.bf16.msra.mxu1 %v349_v51 }
  0xab   : > { %655 = vmatprep.subr.bf16.mxu0 %v1416_v38  ;;  %703 = vmatprep.subr.bf16.mxu1 %v1416_v38 }
  0xad   : > { %1140 = vmatmul.mubr.msk.bf16.vlgmr.msra.gmra.mrb[4].mxu0 %vm352_vm0, %v1139_v55  ;;  %1143 = vmatmul.mubr.msk.bf16.vlgmr.msra.gmra.mrb[4].mxu1 %vm352_vm0, %v1142_v56 }
  0xae   : > { %656 = vmatpush1.bf16.msra.mxu0 %v1414_v37  ;;  %704 = vmatpush1.bf16.msra.mxu1 %v1414_v37 }
  0xaf   : > { %657 = vmatprep.subr.bf16.mxu0 %v350_v52  ;;  %705 = vmatprep.subr.bf16.mxu1 %v350_v52 }
  0xb0   : > { %687 = vmatprep.mubr.bf16.mxu0 %v1280_v2  ;;  %735 = vmatprep.mubr.bf16.mxu1 %v1280_v2 }
  0xb2   : > { %658 = vmatpush1.bf16.msra.mxu0 %v349_v51  ;;  %706 = vmatpush1.bf16.msra.mxu1 %v349_v51 }
  0xb3   : > { %778 = vmatprep.subr.bf16.mxu0 %v1416_v38  ;;  %853 = vmatprep.subr.bf16.mxu1 %v1416_v38 }
  0xb5   : > { %1146 = vmatmul.mubr.msk.bf16.vlgmr.msra.gmra.mrb[8].mxu0 %vm352_vm0, %v1145_v57  ;;  %1148 = vmatmul.mubr.msk.bf16.vlgmr.msra.gmra.mrb[8].mxu1 %vm352_vm0, %v1147_v58 }
  0xb6   : > { %779 = vmatpush1.bf16.msra.mxu0 %v1414_v37  ;;  %854 = vmatpush1.bf16.msra.mxu1 %v1414_v37 }
  0xb7   : > { %780 = vmatprep.subr.bf16.mxu0 %v350_v52  ;;  %855 = vmatprep.subr.bf16.mxu1 %v350_v52 }
  0xb8   : > { %810 = vmatprep.mubr.bf16.mxu0 %v1280_v2  ;;  %885 = vmatprep.mubr.bf16.mxu1 %v1280_v2 }
  0xba   : > { %781 = vmatpush1.bf16.msra.mxu0 %v349_v51  ;;  %856 = vmatpush1.bf16.msra.mxu1 %v349_v51 }
  0xbb   : > { %928 = vmatprep.subr.bf16.mxu0 %v1416_v38 }
  0xbd   : > { %1151 = vmatmul.mubr.msk.bf16.vlgmr.msra.gmra.mrb[12].mxu0 %vm352_vm0, %v1150_v59  ;;  %1154 = vmatmul.mubr.msk.bf16.vlgmr.msra.gmra.mrb[12].mxu1 %vm352_vm0, %v1153_v60 }
  0xbe   : > { %929 = vmatpush1.bf16.msra.mxu0 %v1414_v37  ;;  %960 = vmatprep.mubr.bf16.mxu0 %v1280_v2  ;;  %v412_v37 = vshrl.u32 %v411_v35, 7 }
  0xbf   : > { %930 = vmatprep.subr.bf16.mxu0 %v350_v52  ;;  %v1144_v52 = vld [vmem:[%s1589_s4 + $0x3] ss:$8 sm:$0x3] }
  0xc0   : > { %v1483_v40 = vsub.s32 0, %v412_v37  ;;  %v1491_v44 = vsub.s32 1, %v412_v37 }
  0xc2   : > { %931 = vmatpush1.bf16.msra.mxu0 %v349_v51  ;;  %v489_v47 = vrot.slane %v1138_v41, %v1483_v40  ;;  %v493_v48 = vrot.slane %v1138_v41, %v1491_v44  ;;  %v414_v49 = vrot.slane %v409_v43, %v1483_v40  ;;  %v418_v53 = vrot.slane %v409_v43, %v1491_v44 }
  0xc3   : > { %v564_v54 = vrot.slane %v1141_v46, %v1483_v40  ;;  %v568_v55 = vrot.slane %v1141_v46, %v1491_v44 }
  0xc5   : > { %1157 = vmatmul.mubr.msk.bf16.vlgmr.msra.gmra.mrb[16].mxu0 %vm352_vm0, %v1156_v61 }
 0x178   : > { %v390_v62 = vpop.f32.mrb[0].mxu0  ;;  %v464_v63 = vpop.f32.mrb[0].mxu1 }
 0x179   : > { %v392_v0 = vpop.f32.mrb[1].mxu0  ;;  %402 = vrot.lane.b32.xlu1 %v390_v62, %s1281_s22  ;;  %v466_v1 = vpop.f32.mrb[1].mxu1 }
 0x17a   : > { %398 = vrot.lane.b32.xlu0 %v392_v0, %s1281_s22  ;;  %v394_v3 = vpop.f32.mrb[2].mxu0  ;;  %v468_v4 = vpop.f32.mrb[2].mxu1  ;;  %v639_v0 = vrot.slane %v1144_v52, %v1483_v40  ;;  %s1131_s22 = sshll.u32 %s252_s13, 3 }
 0x17b   : > { %v395_v5 = vpop.f32.mrb[3].mxu0  ;;  %v469_v6 = vpop.f32.mrb[3].mxu1 }
 0x17d   : > { %476 = vrot.lane.b32.xlu1 %v464_v63, %s1282_s23 }
 0x17e   : > { %472 = vrot.lane.b32.xlu0 %v466_v1, %s1282_s23  ;;  %v643_v1 = vrot.slane %v1144_v52, %v1491_v44  ;;  %s1162_s23 = sshll.u32 %s1351_s5, 7 }
 0x180   : > { %v539_v2 = vpop.f32.mrb[4].mxu0  ;;  %v614_v7 = vpop.f32.mrb[4].mxu1 }
 0x181   : > { %v541_v8 = vpop.f32.mrb[5].mxu0  ;;  %551 = vrot.lane.b32.xlu1 %v539_v2, %s1283_s28  ;;  %v616_v9 = vpop.f32.mrb[5].mxu1 }
 0x182   : > { %547 = vrot.lane.b32.xlu0 %v541_v8, %s1283_s28  ;;  %v543_v10 = vpop.f32.mrb[6].mxu0  ;;  %v618_v11 = vpop.f32.mrb[6].mxu1  ;;  %s254_s28 = scalar_lea.vmem [#allocation2], %s1131_s22 }
 0x183   : > { %v544_v12 = vpop.f32.mrb[7].mxu0  ;;  %v619_v13 = vpop.f32.mrb[7].mxu1 }
 0x184   : > { %v1149_v12 = vld [vmem:[%s1589_s4 + $0x5] ss:$8 sm:$0x3] }
 0x185   : > { %626 = vrot.lane.b32.xlu1 %v614_v7, %s1284_s30 }
 0x186   : > { %622 = vrot.lane.b32.xlu0 %v616_v9, %s1284_s30  ;;  %s1034_s30 = sshll.u32 %s254_s28, 4  ;;  %s1544_s30 = int_to_ptr.vmem [resolvable:$true] %s1034_s30 }
 0x187   : > { %s1216_s5 = scalar_lea.vmem %s1544_s30, 128  ;;  %p1223_p0 = scmp.lt.s32.totalorder %s1544_s30, %s1221_s17 }
 0x188   : > { %v1479_v14 = vpop.f32.mrb[8].mxu0  ;;  %v737_v15 = vpop.f32.mrb[8].mxu1  ;;  %p1217_p11 = scmp.ne.s32.totalorder %s1544_s30, %s1216_s5  ;;  %p1224_p1 = scmp.lt.s32.totalorder %s1222_s18, %s1216_s5 }
 0x189   : > { %v1481_v16 = vpop.f32.mrb[9].mxu0  ;;  %v739_v17 = vpop.f32.mrb[9].mxu1 }
 0x18a   : > { %748 = vrot.lane.b32.xlu1 %v739_v17, %s1285_s8  ;;  %746 = vrot.lane.b32.xlu0 %v737_v15, %s1285_s8  ;;  %v693_v18 = vpop.f32.mrb[10].mxu0  ;;  %v741_v19 = vpop.f32.mrb[10].mxu1  ;;  %p1218_p12 = pnand %p1217_p11, %p1368_p5  ;;  %p1225_p2 = por %p1224_p1, %p1223_p0 }
 0x18b   : > { %v694_v20 = vpop.f32.mrb[11].mxu0  ;;  %v742_v21 = vpop.f32.mrb[11].mxu1  ;;  %v762_v19 = vrot.slane %v1149_v12, %v1483_v40 }
 0x18c   : > { %v1152_v20 = vld [vmem:[%s1589_s4 + $0x6] ss:$8 sm:$0x3]  ;;  %p1219_p13 = pneg %p1218_p12 }
 0x18e   : > { %p1226_p3 = pnand %p1225_p2, %p1219_p13 }
 0x190   : > { %v812_v22 = vpop.f32.mrb[12].mxu0  ;;  %v887_v23 = vpop.f32.mrb[12].mxu1 }
 0x191   : > { %v814_v24 = vpop.f32.mrb[13].mxu0  ;;  %821 = vrot.lane.b32.xlu0 %v812_v22, %s1286_s12  ;;  %v889_v25 = vpop.f32.mrb[13].mxu1 }
 0x192   : > { %823 = vrot.lane.b32.xlu1 %v814_v24, %s1286_s12  ;;  %v816_v26 = vpop.f32.mrb[14].mxu0  ;;  %v891_v27 = vpop.f32.mrb[14].mxu1  ;;  %v1155_v24 = vld [vmem:[%s1589_s4 + $0x7] ss:$8 sm:$0x3] }
 0x193   : > { %v817_v28 = vpop.f32.mrb[15].mxu0  ;;  %v892_v29 = vpop.f32.mrb[15].mxu1 }
 0x194   : > { %v837_v28 = vrot.slane %v1152_v20, %v1483_v40  ;;  %v841_v29 = vrot.slane %v1152_v20, %v1491_v44 }
 0x195   : > { %896 = vrot.lane.b32.xlu0 %v887_v23, %s1287_s14  ;;  %v766_v23 = vrot.slane %v1149_v12, %v1491_v44 }
 0x196   : > { %898 = vrot.lane.b32.xlu1 %v889_v25, %s1287_s14  ;;  %s1542_s14 = scalar_lea.hbm %s1592_s7, %s1162_s23 }
 0x198   : > { %v962_v30 = vpop.f32.mrb[16].mxu0 }
 0x199   : > { %v964_v31 = vpop.f32.mrb[17].mxu0  ;;  %971 = vrot.lane.b32.xlu0 %v962_v30, %s1288_s15 }
 0x19a   : > { %973 = vrot.lane.b32.xlu1 %v964_v31, %s1288_s15  ;;  %v966_v32 = vpop.f32.mrb[18].mxu0  ;;  %s1018_s15 = scalar_lea.sflag [#allocation3], %s252_s13 }
 0x19b   : > { %v967_v33 = vpop.f32.mrb[19].mxu0 }
 0x19c   : > { %v912_v33 = vrot.slane %v1155_v24, %v1483_v40 }
 0x1eb   : > { %v403_v34 = vpop.permute.xlu1 %402 }
 0x1ec   : > { %v399_v36 = vpop.permute.xlu0 %398 }
 0x1ed   : > { %v405_v58 = vsel %vm404_vm2, %v403_v34, %v399_v36  ;;  %v408_v59 = vsel %vm404_vm2, %v399_v36, %v403_v34  ;;  %v916_v34 = vrot.slane %v1155_v24, %v1491_v44 }
 0x1ee   : > { %v421_v5 = vmul.f32 %v414_v49, %v408_v59  ;;  %v422_v6 = vmul.f32 %v418_v53, %v405_v58 }
 0x1ef   : > { %v477_v38 = vpop.permute.xlu1 %476 }
 0x1f0   : > { %v473_v39 = vpop.permute.xlu0 %472 }
 0x1f1   : > { %v479_v50 = vsel %vm478_vm1, %v477_v38, %v473_v39  ;;  %v482_v51 = vsel %vm478_vm1, %v473_v39, %v477_v38  ;;  %v1158_v39 = vld [vmem:[%s1589_s4 + $0x10] ss:$8 sm:$0x3] }
 0x1f2   : > { %v496_v62 = vmul.f32 %v489_v47, %v482_v51  ;;  %v497_v63 = vmul.f32 %v493_v48, %v479_v50 }
 0x1f3   : > { %v552_v42 = vpop.permute.xlu1 %551 }
 0x1f4   : > { %v548_v45 = vpop.permute.xlu0 %547  ;;  %v498_v8 = vadd.f32 %v496_v62, %v421_v5  ;;  %v499_v9 = vadd.f32 %v497_v63, %v422_v6 }
 0x1f5   : > { %v554_v60 = vsel %vm553_vm3, %v552_v42, %v548_v45  ;;  %v557_v61 = vsel %vm553_vm3, %v548_v45, %v552_v42 }
 0x1f6   : > { %v571_v2 = vmul.f32 %v564_v54, %v557_v61  ;;  %v572_v7 = vmul.f32 %v568_v55, %v554_v60 }
 0x1f7   : > { %v627_v56 = vpop.permute.xlu1 %626 }
 0x1f8   : > { %v623_v57 = vpop.permute.xlu0 %622  ;;  %v573_v15 = vadd.f32 %v571_v2, %v498_v8  ;;  %v574_v17 = vadd.f32 %v572_v7, %v499_v9 }
 0x1f9   : > { %v629_v3 = vsel %vm628_vm4, %v627_v56, %v623_v57  ;;  %v632_v4 = vsel %vm628_vm4, %v623_v57, %v627_v56 }
 0x1fa   : > { %v646_v10 = vmul.f32 %v639_v0, %v632_v4  ;;  %v647_v11 = vmul.f32 %v643_v1, %v629_v3 }
 0x1fc   : > { %v747_v13 = vpop.permute.xlu0 %746  ;;  %v749_v18 = vpop.permute.xlu1 %748  ;;  %v648_v21 = vadd.f32 %v646_v10, %v573_v15  ;;  %v649_v22 = vadd.f32 %v647_v11, %v574_v17 }
 0x1fd   : > { %v751_v25 = vsel %vm750_vm5, %v747_v13, %v749_v18  ;;  %v755_v26 = vsel %vm750_vm5, %v749_v18, %v747_v13 }
 0x1fe   : > { %v696_v35 = vadd.f32 %v1479_v14, %v648_v21  ;;  %v697_v36 = vadd.f32 %v1481_v16, %v649_v22  ;;  %v769_v37 = vmul.f32 %v762_v19, %v751_v25  ;;  %v770_v38 = vmul.f32 %v766_v23, %v755_v26 }
 0x1ff   : > { %v987_v14 = vrot.slane %v1158_v39, %v1483_v40  ;;  %v991_v16 = vrot.slane %v1158_v39, %v1491_v44 }
 0x200   : > { %v771_v48 = vadd.f32 %v769_v37, %v696_v35  ;;  %v772_v49 = vadd.f32 %v770_v38, %v697_v36 }
 0x203   : > { %v822_v27 = vpop.permute.xlu0 %821 }
 0x204   : > { %v824_v30 = vpop.permute.xlu1 %823 }
 0x205   : > { %v826_v31 = vsel %vm825_vm6, %v822_v27, %v824_v30  ;;  %v830_v32 = vsel %vm825_vm6, %v824_v30, %v822_v27 }
 0x206   : > { %v844_v42 = vmul.f32 %v837_v28, %v826_v31  ;;  %v845_v43 = vmul.f32 %v841_v29, %v830_v32 }
 0x207   : > { %v897_v41 = vpop.permute.xlu0 %896 }
 0x208   : > { %v899_v45 = vpop.permute.xlu1 %898  ;;  %v846_v53 = vadd.f32 %v844_v42, %v771_v48  ;;  %v847_v54 = vadd.f32 %v845_v43, %v772_v49 }
 0x209   : > { %v901_v46 = vsel %vm900_vm7, %v897_v41, %v899_v45  ;;  %v905_v47 = vsel %vm900_vm7, %v899_v45, %v897_v41 }
 0x20a   : > { %v919_v50 = vmul.f32 %v912_v33, %v901_v46  ;;  %v920_v51 = vmul.f32 %v916_v34, %v905_v47 }
 0x20b   : > { %v972_v52 = vpop.permute.xlu0 %971 }
 0x20c   : > { %v974_v55 = vpop.permute.xlu1 %973  ;;  %v921_v58 = vadd.f32 %v919_v50, %v846_v53  ;;  %v922_v59 = vadd.f32 %v920_v51, %v847_v54 }
 0x20d   : > { %v976_v56 = vsel %vm975_vm8, %v972_v52, %v974_v55  ;;  %v980_v57 = vsel %vm975_vm8, %v974_v55, %v972_v52 }
 0x20e   : > { %v994_v60 = vmul.f32 %v987_v14, %v976_v56  ;;  %v995_v61 = vmul.f32 %v991_v16, %v980_v57 }
 0x210   : > { %v996_v40 = vadd.f32 %v994_v60, %v921_v58  ;;  %v997_v44 = vadd.f32 %v995_v61, %v922_v59 }
 0x212   : > { %1159 = vst [vmem:[%s1079_s21 + $0x40] sm:$0xff] %v996_v40  ;;  %1160 = vst [vmem:[%s1079_s21 + $0x48] sm:$0xff] %v997_v44  ;;  %v1000_v62 = vadd.f32 %v997_v44, %v996_v40  ;;  %v1003_v63 = vmul.f32 %v996_v40, %v996_v40  ;;  %v1004_v0 = vmul.f32 %v997_v44, %v997_v44 }
 0x214   : > { %1001 = vadd.xlane.f32.xlu0 %v1000_v62  ;;  %v1005_v1 = vadd.f32 %v1004_v0, %v1003_v63 }
 0x216   : > { %1006 = vadd.xlane.f32.xlu1 %v1005_v1 }
 0x2a1   : > { %v1002_v3 = vpop.xlane.xlu0 %1001 }
 0x2a3   : > { %v1007_v4 = vpop.xlane.xlu1 %1006 }
 0x2a4   : > { %v1008_v5 = vsel %vm628_vm4, %v1002_v3, %v1007_v4 }
 0x2a5   : > { %1010 = vst.msk [vmem:[%s254_s28] sm:$0xff] %vm1009_vm9, %v1008_v5 }
 0x2a6   : > { %1229 = shalt.err (!%p1226_p3)
}
 0x2a7   : > { %s1230_s19 = scalar_lea.hbm %s1542_s14, 128  ;;  %s1234_s13 = scalar_lea.hbm %s1592_s7, 256 }
 0x2a8   : > { %p1231_p4 = scmp.ne.s32.totalorder %s1542_s14, %s1230_s19  ;;  %p1235_p9 = scmp.lt.u32.totalorder %s1542_s14, %s1592_s7 }
 0x2a9   : > { %p1236_p10 = scmp.lt.u32.totalorder %s1234_s13, %s1230_s19  ;;  %p1238_p12 = scmp.lt.u32.totalorder %s1230_s19, %s1542_s14 }
 0x2aa   : > { %p1232_p7 = pnand %p1231_p4, %p1368_p5 }
 0x2ab   : > { %p1237_p11 = por %p1236_p10, %p1235_p9 }
 0x2ac   : > { %p1233_p8 = pneg %p1232_p7 }
 0x2ad   : > { %p1239_p13 = por %p1238_p12, %p1237_p11 }
 0x2af   : > { %p1240_p0 = pnand %p1239_p13, %p1233_p8 }
 0x2b1   : > { %1243 = shalt.err (!%p1240_p0)
}
 0x2b2   : > { %1166 = dma.vmem_to_hbm [thread:$0]  (%p1368_p5), %s1544_s30, 128, %s1542_s14, %s1018_s15  }
 0x2b3 PF: > { %p1172_p1 = scmp.ge.s32.totalorder %s1278_s27, 2  ;;  %s1055_s28 = sand.u32 1, %s1266_s24  }
 0x2b4   : > { %s1056_s8 = scalar_lea.sflag [#allocation3], %s1055_s28 }
 0x2b5   : > { %p1169_p2 = pnand %p1172_p1, %p1372_p6 }
 0x2b7   : > { %1261 = dma.done.wait (!%p1169_p2), %s1056_s8, 128  }
 0x2b8   : > { %1263 = vsyncadd (!%p1169_p2), %s1056_s8, 4294967168  ;;  %p18_p3 = scmp.ge.s32.totalorder %s1355_s29, 4   ;;  %s1595_s24 = smov %s1270_s25 }
 0x2b9   : > { %s1596_s25 = smov %s1274_s26  ;;  %s1597_s26 = smov %s1366_s9 }
 0x2ba   : > { %s1598_s27 = smov %s1355_s29  ;;  %20 = sbr.rel (!%p18_p3) target bundleno = 3 (0x3), region = 102 }
 0x2c1   :  { %1061 = vsyncpa [#allocation3], 1 }
 0x2c2   :  { %1063 = vsyncpa [#allocation3 + $0x1], 1 }

</bundles_post_ra>
